<compile_context>
chip_gen: v5e
topology: v5e:2x2
jax: 0.10.0
libtpu: 0.0.40
codegen_flags: <defaults>
</compile_context>

<pallas_src>
import functools

import jax
import jax.numpy as jnp
import numpy as np
from jax.experimental import pallas as pl
from jax.experimental.pallas import tpu as pltpu

EPS = 1e-5          # nn.BatchNorm2d default eps
LANE = 128
SUBLANE = 8


def _rup(x, m):
    return ((x + m - 1) // m) * m


def _pick_batch_block(N, HoWo):
    """Images per grid step: target >= ~256 matmul rows, keep >= 2 grid steps when
    possible (dual-TensorCore parts), and divide N exactly."""
    b = max(1, min(N, 256 // max(HoWo, 1)))
    while b > 1 and (N // b) < 2:
        b -= 1
    while N % b:
        b -= 1
    return b


# ---------------------------------------------------------------------------
# In-kernel helpers
# ---------------------------------------------------------------------------

def _stats2(acc):
    """Per-channel partial (sum, sum_sq) of an (M, C) f32 tile as one (2, C) value."""
    return jnp.concatenate(
        [jnp.sum(acc, axis=0, keepdims=True),
         jnp.sum(acc * acc, axis=0, keepdims=True)], axis=0)


def _build_patch(x_ref, patch_ref, *, Ho, Wo, Hn, stride, want_center=False):
    """Copy the 9 shifted 3x3-tap windows of a stride-phase input block into a
    (B*Ho*Wo, 9*cin) bf16 patch scratch (tap-major along the lane axis).

    x_ref: (B, P*Hn, Wn, cin) bf16, phase planes stacked along the row axis
           (P == 1 for stride 1).  Returns the centre (1,1) tap value if requested
           (reused by the 1x1 projection shortcut).
    """
    B, cin = x_ref.shape[0], x_ref.shape[3]
    M = B * Ho * Wo
    center = None
    for kh in range(3):
        for kw in range(3):
            ah, qh = kh % stride, kh // stride
            aw, qw = kw % stride, kw // stride
            r0 = (ah * stride + aw) * Hn + qh          # phase plane (ah, aw), row qh
            sl = x_ref[:, r0:r0 + Ho, qw:qw + Wo, :].reshape(M, cin)
            t = kh * 3 + kw
            patch_ref[:, t * cin:(t + 1) * cin] = sl
            if want_center and kh == 1 and kw == 1:
                center = sl
    return center


# ---------------------------------------------------------------------------
# Pallas kernels
# ---------------------------------------------------------------------------

def _stage1_kernel(x_ref, w1_ref, y1_ref, s1_ref, patch_ref,
                   *, Ho, Wo, Hn, stride):
    """conv1 (raw, pre-BN) as a single K=9*cin matmul + partial BN1 statistics."""
    _build_patch(x_ref, patch_ref, Ho=Ho, Wo=Wo, Hn=Hn, stride=stride)
    acc = jnp.dot(patch_ref[...], w1_ref[...], preferred_element_type=jnp.float32)
    y1_ref[...] = acc.reshape(y1_ref.shape).astype(y1_ref.dtype)
    s1_ref[0] = _stats2(acc)


def _stage1_proj_kernel(x_ref, w1_ref, ws_ref, y1_ref, s1_ref, ys_ref, ss_ref, patch_ref,
                        *, Ho, Wo, Hn, stride):
    """conv1 + BN1 partial stats, fused with the 1x1 projection shortcut conv + its
    stats (reuses the already-extracted centre tap, so x is read from HBM once)."""
    center = _build_patch(x_ref, patch_ref, Ho=Ho, Wo=Wo, Hn=Hn, stride=stride,
                          want_center=True)
    acc = jnp.dot(patch_ref[...], w1_ref[...], preferred_element_type=jnp.float32)
    y1_ref[...] = acc.reshape(y1_ref.shape).astype(y1_ref.dtype)
    s1_ref[0] = _stats2(acc)
    # 1x1 conv, stride s, pad 0 == the (kh, kw) = (1, 1) tap of the padded input.
    # (Row/column phases coincide only because the tap is (1, 1).)
    sacc = jnp.dot(center, ws_ref[...], preferred_element_type=jnp.float32)
    ys_ref[...] = sacc.reshape(ys_ref.shape).astype(ys_ref.dtype)
    ss_ref[0] = _stats2(sacc)


def _stage2_kernel(y1_ref, sc1_ref, sh1_ref, w2_ref, y2_ref, s2_ref, pad_ref, patch_ref,
                   *, Ho, Wo):
    """BN1(scale/shift)+ReLU applied to the resident conv1 tile, conv2 (3x3, stride 1)
    as a single K=9*cp matmul, raw conv2 + partial BN2 stats emitted."""
    B, cp = y1_ref.shape[0], y1_ref.shape[2]
    M = B * Ho * Wo
    act = jnp.maximum(y1_ref[...].astype(jnp.float32) * sc1_ref[...] + sh1_ref[...], 0.0)
    # Zero only the 1-pixel border each step (interior fully overwritten below).
    # Cheap, and correct even if the "parallel" grid is split across TensorCores.
    zr = jnp.zeros((B, 1, Wo + 2, cp), pad_ref.dtype)
    zc = jnp.zeros((B, Ho + 2, 1, cp), pad_ref.dtype)
    pad_ref[:, 0:1, :, :] = zr
    pad_ref[:, Ho + 1:Ho + 2, :, :] = zr
    pad_ref[:, :, 0:1, :] = zc
    pad_ref[:, :, Wo + 1:Wo + 2, :] = zc
    pad_ref[:, 1:Ho + 1, 1:Wo + 1, :] = act.reshape(B, Ho, Wo, cp).astype(pad_ref.dtype)
    # Fold all 9 taps into the contraction dim (lane-aligned offsets since cp % 128 == 0).
    for kh in range(3):
        for kw in range(3):
            t = kh * 3 + kw
            patch_ref[:, t * cp:(t + 1) * cp] = (
                pad_ref[:, kh:kh + Ho, kw:kw + Wo, :].reshape(M, cp))
    acc = jnp.dot(patch_ref[...], w2_ref[...], preferred_element_type=jnp.float32)
    y2_ref[...] = acc.reshape(y2_ref.shape).astype(y2_ref.dtype)
    s2_ref[0] = _stats2(acc)


def _stage3_proj_kernel(y2_ref, sc2_ref, sh2_ref, ys_ref, scs_ref, shs_ref, o_ref):
    """BN2 apply + BN_s apply on the projection shortcut + add + ReLU (pure VPU FMAs)."""
    out = y2_ref[...].astype(jnp.float32) * sc2_ref[...] + sh2_ref[...]
    out = out + ys_ref[...].astype(jnp.float32) * scs_ref[...] + shs_ref[...]
    o_ref[...] = jnp.maximum(out, 0.0)


def _stage3_id_kernel(y2_ref, sc2_ref, sh2_ref, x_ref, o_ref, *, cin):
    """BN2 apply + identity shortcut add + ReLU.  x arrives unpadded (cin channels);
    only the first `cin` lanes need the residual (padded lanes are sliced off outside)."""
    bn = y2_ref[...].astype(jnp.float32) * sc2_ref[...] + sh2_ref[...]
    o_ref[...] = jnp.maximum(bn, 0.0)
    o_ref[:, :, 0:cin] = jnp.maximum(bn[:, :, 0:cin] + x_ref[...], 0.0)


# ---------------------------------------------------------------------------
# JAX-side glue (pure data movement / tiny per-channel math)
# ---------------------------------------------------------------------------

def _phase_split(x_pad, stride, Ho, Wo):
    """Re-layout the spatially padded NHWC input into stride-phase planes stacked
    along the row axis: (N, stride*stride*Hn, Wn, C).  ~1x HBM traffic; lets the
    kernel do strided 3x3 convs (and the strided 1x1 shortcut) with only unstrided
    static slices.  Only called for stride != 1."""
    q = 2 // stride
    Hn, Wn = Ho + q, Wo + q
    phases = []
    for a in range(stride):
        for b in range(stride):
            ph = x_pad[:, a::stride, b::stride, :][:, :Hn, :Wn, :]
            ph = jnp.pad(ph, ((0, 0), (0, Hn - ph.shape[1]),
                              (0, Wn - ph.shape[2]), (0, 0)))
            phases.append(ph)
    return jnp.concatenate(phases, axis=1), Hn, Wn


def _prep_w3x3_folded(w_oihw, cin_p, cout_p):
    """(Cout, Cin, 3, 3) -> (9*cin_p, cout_p) bf16, tap-major rows matching the patch."""
    cout, cin = w_oihw.shape[0], w_oihw.shape[1]
    w = jnp.transpose(w_oihw, (2, 3, 1, 0))                         # (kh, kw, Cin, Cout)
    w = jnp.pad(w, ((0, 0), (0, 0), (0, cin_p - cin), (0, cout_p - cout)))
    return w.reshape(9 * cin_p, cout_p).astype(jnp.bfloat16)


def _pad_ch(v, n):
    return jnp.pad(v.astype(jnp.float32), (0, n - v.shape[0]))


def _bn_scale_shift(partials, count, gamma_p, beta_p):
    """Finalize global batch stats from per-step partials; fold into scale/shift.
    TODO(synk): use pairwise/Kahan summation if N*Ho*Wo gets very large."""
    s = jnp.sum(partials, axis=0)                      # (2, Cp), f32
    mean = s[0] / count
    var = s[1] / count - mean * mean                   # biased variance (training BN)
    scale = gamma_p * jax.lax.rsqrt(var + EPS)
    shift = beta_p - mean * scale
    return scale.reshape(1, -1), shift.reshape(1, -1)


def init_basic_block_params(key, in_planes, planes, stride, option='B'):
    k1, k2, k3 = jax.random.split(key, 3)

    def conv_init(k, cout, cin, kh, kw):
        fan_in = cin * kh * kw
        return jax.random.normal(k, (cout, cin, kh, kw), jnp.float32) * np.sqrt(2.0 / fan_in)

    params = {
        'conv1_w': conv_init(k1, planes, in_planes, 3, 3),      # OIHW, like PyTorch
        'bn1_gamma': jnp.ones((planes,), jnp.float32),
        'bn1_beta': jnp.zeros((planes,), jnp.float32),
        'conv2_w': conv_init(k2, planes, planes, 3, 3),
        'bn2_gamma': jnp.ones((planes,), jnp.float32),
        'bn2_beta': jnp.zeros((planes,), jnp.float32),
    }
    if stride != 1 or in_planes != planes:
        assert option == 'B'
        params['convs_w'] = conv_init(k3, planes, in_planes, 1, 1)
        params['bns_gamma'] = jnp.ones((planes,), jnp.float32)
        params['bns_beta'] = jnp.zeros((planes,), jnp.float32)
    return params


def basic_block_forward(x_nchw, params, in_planes, planes, stride=1, option='B'):
    assert option == 'B'
    N, C, H, W = x_nchw.shape
    assert C == in_planes
    Ho = (H - 1) // stride + 1
    Wo = (W - 1) // stride + 1
    HoWo = Ho * Wo
    M_total = N * HoWo
    cin_p = _rup(in_planes, SUBLANE)      # contraction-dim channel padding
    cp = _rup(planes, LANE)               # lane-dense output channel padding
    proj = (stride != 1) or (in_planes != planes)

    B_blk = _pick_batch_block(N, HoWo)
    G = N // B_blk
    M_blk = B_blk * HoWo

    # ---- layout prep (one fused transpose+pad+cast chain; ~1x data movement) ----
    x = jnp.transpose(x_nchw, (0, 2, 3, 1)).astype(jnp.float32)               # NHWC
    x_pad = jnp.pad(x, ((0, 0), (1, 1), (1, 1),
                        (0, cin_p - in_planes))).astype(jnp.bfloat16)
    if stride == 1:
        xph, Hn, Wn = x_pad, H + 2, W + 2                # no phase split needed
    else:
        xph, Hn, Wn = _phase_split(x_pad, stride, Ho, Wo)

    w1 = _prep_w3x3_folded(params['conv1_w'], cin_p, cp)          # (9*cin_p, cp)
    w2 = _prep_w3x3_folded(params['conv2_w'], cp, cp)             # (9*cp, cp)
    g1, b1 = _pad_ch(params['bn1_gamma'], cp), _pad_ch(params['bn1_beta'], cp)
    g2, b2 = _pad_ch(params['bn2_gamma'], cp), _pad_ch(params['bn2_beta'], cp)

    # ---- shared specs: 1-D grid over batch blocks ----
    x_spec = pl.BlockSpec((B_blk,) + xph.shape[1:], lambda g: (g, 0, 0, 0))
    w1_spec = pl.BlockSpec(w1.shape, lambda g: (0, 0))            # resident weights
    w2_spec = pl.BlockSpec(w2.shape, lambda g: (0, 0))
    ws_spec = pl.BlockSpec((cin_p, cp), lambda g: (0, 0))
    y_spec = pl.BlockSpec((B_blk, HoWo, cp), lambda g: (g, 0, 0))
    st_spec = pl.BlockSpec((1, 2, cp), lambda g: (g, 0, 0))
    vec_spec = pl.BlockSpec((1, cp), lambda g: (0, 0))
    y_bf16 = jax.ShapeDtypeStruct((N, HoWo, cp), jnp.bfloat16)    # bf16 inter-stage HBM
    st_shape = jax.ShapeDtypeStruct((G, 2, cp), jnp.float32)
    out_f32 = jax.ShapeDtypeStruct((N, HoWo, cp), jnp.float32)
    cparams = pltpu.CompilerParams(
        dimension_semantics=("parallel",),            # independent per-batch-block tiles
        vmem_limit_bytes=48 * 1024 * 1024,            # <= v7x physical 64 MiB w/ headroom
    )
    patch1 = pltpu.VMEM((M_blk, 9 * cin_p), jnp.bfloat16)
    patch2 = pltpu.VMEM((M_blk, 9 * cp), jnp.bfloat16)
    pad_scr = pltpu.VMEM((B_blk, Ho + 2, Wo + 2, cp), jnp.bfloat16)

    # ---- stage 1: conv1 (+ projection shortcut conv) + partial BN stats ----
    if proj:
        ws = jnp.pad(jnp.transpose(params['convs_w'].reshape(planes, in_planes), (1, 0)),
                     ((0, cin_p - in_planes), (0, cp - planes))).astype(jnp.bfloat16)
        gs, bs = _pad_ch(params['bns_gamma'], cp), _pad_ch(params['bns_beta'], cp)
        k1 = functools.partial(_stage1_proj_kernel, Ho=Ho, Wo=Wo, Hn=Hn, stride=stride)
        y1, st1, ys, sts = pl.pallas_call(
            k1, grid=(G,),
            in_specs=[x_spec, w1_spec, ws_spec],
            out_specs=[y_spec, st_spec, y_spec, st_spec],
            out_shape=(y_bf16, st_shape, y_bf16, st_shape),
            scratch_shapes=[patch1],
            compiler_params=cparams,
        )(xph, w1, ws)
    else:
        k1 = functools.partial(_stage1_kernel, Ho=Ho, Wo=Wo, Hn=Hn, stride=stride)
        y1, st1 = pl.pallas_call(
            k1, grid=(G,),
            in_specs=[x_spec, w1_spec],
            out_specs=[y_spec, st_spec],
            out_shape=(y_bf16, st_shape),
            scratch_shapes=[patch1],
            compiler_params=cparams,
        )(xph, w1)

    scale1, shift1 = _bn_scale_shift(st1, M_total, g1, b1)

    # ---- stage 2: BN1+ReLU apply (in VMEM) + conv2 + partial BN2 stats ----
    k2 = functools.partial(_stage2_kernel, Ho=Ho, Wo=Wo)
    y2, st2 = pl.pallas_call(
        k2, grid=(G,),
        in_specs=[y_spec, vec_spec, vec_spec, w2_spec],
        out_specs=[y_spec, st_spec],
        out_shape=(y_bf16, st_shape),
        scratch_shapes=[pad_scr, patch2],
        compiler_params=cparams,
    )(y1, scale1, shift1, w2)

    scale2, shift2 = _bn_scale_shift(st2, M_total, g2, b2)

    # ---- stage 3: BN2 apply + shortcut (+ its BN) + residual add + ReLU ----
    if proj:
        scale_s, shift_s = _bn_scale_shift(sts, M_total, gs, bs)
        out = pl.pallas_call(
            _stage3_proj_kernel, grid=(G,),
            in_specs=[y_spec, vec_spec, vec_spec, y_spec, vec_spec, vec_spec],
            out_specs=y_spec, out_shape=out_f32,
            compiler_params=cparams,
        )(y2, scale2, shift2, ys, scale_s, shift_s)
    else:
        # Unpadded NHWC activation (f32) -- no channel-padded HBM copy of x.
        xid = x.reshape(N, H * W, in_planes)
        xid_spec = pl.BlockSpec((B_blk, H * W, in_planes), lambda g: (g, 0, 0))
        k3 = functools.partial(_stage3_id_kernel, cin=in_planes)
        out = pl.pallas_call(
            k3, grid=(G,),
            in_specs=[y_spec, vec_spec, vec_spec, xid_spec],
            out_specs=y_spec, out_shape=out_f32,
            compiler_params=cparams,
        )(y2, scale2, shift2, xid)

    out = out[:, :, :planes].reshape(N, Ho, Wo, planes)
    return jnp.transpose(out, (0, 3, 1, 2))                             # back to NCHW


# ---------------------------------------------------------------------------
# Pure-JAX reference (PyTorch training-mode forward; conv operands in bf16 to
# match the kernel's MXU precision, accumulation in f32)
# ---------------------------------------------------------------------------

def _ref_forward(x, params, in_planes, planes, stride):
    dn = ('NCHW', 'OIHW', 'NCHW')

    def conv(xx, w, s, pad):
        return jax.lax.conv_general_dilated(
            xx.astype(jnp.bfloat16), w.astype(jnp.bfloat16), (s, s),
            ((pad, pad), (pad, pad)), dimension_numbers=dn,
            preferred_element_type=jnp.float32)

    def bn(y, g, b):
        mu = jnp.mean(y, axis=(0, 2, 3), keepdims=True)
        var = jnp.mean((y - mu) ** 2, axis=(0, 2, 3), keepdims=True)
        return ((y - mu) * jax.lax.rsqrt(var + EPS) * g.reshape(1, -1, 1, 1)
                + b.reshape(1, -1, 1, 1))

    out = jax.nn.relu(bn(conv(x, params['conv1_w'], stride, 1),
                         params['bn1_gamma'], params['bn1_beta']))
    out = bn(conv(out, params['conv2_w'], 1, 1),
             params['bn2_gamma'], params['bn2_beta'])
    if stride != 1 or in_planes != planes:
        sc = bn(conv(x, params['convs_w'], stride, 0),
                params['bns_gamma'], params['bns_beta'])
    else:
        sc = x
    return jax.nn.relu(out + sc)


if __name__ == "__main__":
    key = jax.random.PRNGKey(0)
    kx, kp, kx2, kp2 = jax.random.split(key, 4)

    fwd = jax.jit(basic_block_forward, static_argnums=(2, 3, 4, 5))

    # Tolerances account for bf16 storage of inter-stage activations (y1/ys/y2)
    # on top of bf16 MXU operands used by both kernel and reference.
    RTOL, ATOL = 1e-2, 2e-2

    # Case 1: downsampling block (stride=2, in_planes != planes) -> option 'B' projection.
    N, in_planes, planes, H, W, stride = 2, 4, 8, 16, 16, 2
    x = jax.random.normal(kx, (N, in_planes, H, W), jnp.float32)
    params = init_basic_block_params(kp, in_planes, planes, stride, option='B')
    out = jax.block_until_ready(fwd(x, params, in_planes, planes, stride, 'B'))
    ref = _ref_forward(x, params, in_planes, planes, stride)
    np.testing.assert_allclose(np.asarray(out), np.asarray(ref), rtol=RTOL, atol=ATOL)

    # Case 2: identity block (stride=1, in_planes == planes).
    N2, planes2, H2, W2 = 2, 8, 16, 16
    x2 = jax.random.normal(kx2, (N2, planes2, H2, W2), jnp.float32)
    params2 = init_basic_block_params(kp2, planes2, planes2, 1, option='B')
    out2 = jax.block_until_ready(fwd(x2, params2, planes2, planes2, 1, 'B'))
    ref2 = _ref_forward(x2, params2, planes2, planes2, 1)
    np.testing.assert_allclose(np.asarray(out2), np.asarray(ref2), rtol=RTOL, atol=ATOL)

    print("KERNEL_OK")
</pallas_src>

<mosaic_0001>
module attributes {stable_mosaic.version = 11 : i64} {
  func.func @_stage1_proj_kernel(%arg0: i32, %arg1: memref<1x36x9x8xbf16, #tpu.memory_space<vmem>>, %arg2: memref<72x128xbf16, #tpu.memory_space<vmem>>, %arg3: memref<8x128xbf16, #tpu.memory_space<vmem>>, %arg4: memref<1x64x128xbf16, #tpu.memory_space<vmem>>, %arg5: memref<1x2x128xf32, #tpu.memory_space<vmem>>, %arg6: memref<1x64x128xbf16, #tpu.memory_space<vmem>>, %arg7: memref<1x2x128xf32, #tpu.memory_space<vmem>>, %arg8: memref<64x72xbf16, #tpu.memory_space<vmem>>) attributes {dimension_semantics = [#tpu.dimension_semantics<parallel>], iteration_bounds = array<i64: 2>, scalar_prefetch = 0 : i64, scratch_operands = 1 : i64, tpu.core_type = #tpu.core_type<tc>, window_params = [{transform_indices = @transform_0, window_bounds = array<i64: 1, 36, 9, 8>}, {pipeline_mode = #tpu.pipeline_mode<synchronous>, transform_indices = @transform_1, window_bounds = array<i64: 72, 128>}, {pipeline_mode = #tpu.pipeline_mode<synchronous>, transform_indices = @transform_2, window_bounds = array<i64: 8, 128>}, {transform_indices = @transform_3, window_bounds = array<i64: 1, 64, 128>}, {transform_indices = @transform_4, window_bounds = array<i64: 1, 2, 128>}, {transform_indices = @transform_5, window_bounds = array<i64: 1, 64, 128>}, {transform_indices = @transform_6, window_bounds = array<i64: 1, 2, 128>}]} {
    %c0 = arith.constant 0 : index
    %c0_0 = arith.constant 0 : index
    %c0_1 = arith.constant 0 : index
    %c0_2 = arith.constant 0 : index
    %0 = vector.load %arg1[%c0, %c0_0, %c0_1, %c0_2] : memref<1x36x9x8xbf16, #tpu.memory_space<vmem>>, vector<1x8x8x8xbf16>
    %1 = vector.shape_cast %0 : vector<1x8x8x8xbf16> to vector<64x8xbf16>
    %c0_3 = arith.constant 0 : index
    %c0_4 = arith.constant 0 : index
    %2 = vector.load %arg8[%c0_3, %c0_4] : memref<64x72xbf16, #tpu.memory_space<vmem>>, vector<64x8xbf16>
    tpu.vector_store %arg8[%c0_3, %c0_4], %1 {strides = array<i32>} : memref<64x72xbf16, #tpu.memory_space<vmem>>, vector<64x8xbf16>,
    %c0_5 = arith.constant 0 : index
    %c9 = arith.constant 9 : index
    %c0_6 = arith.constant 0 : index
    %c0_7 = arith.constant 0 : index
    %3 = vector.load %arg1[%c0_5, %c9, %c0_6, %c0_7] : memref<1x36x9x8xbf16, #tpu.memory_space<vmem>>, vector<1x8x8x8xbf16>
    %4 = vector.shape_cast %3 : vector<1x8x8x8xbf16> to vector<64x8xbf16>
    %c0_8 = arith.constant 0 : index
    %c8 = arith.constant 8 : index
    %5 = vector.load %arg8[%c0_8, %c8] : memref<64x72xbf16, #tpu.memory_space<vmem>>, vector<64x8xbf16>
    tpu.vector_store %arg8[%c0_8, %c8], %4 {strides = array<i32>} : memref<64x72xbf16, #tpu.memory_space<vmem>>, vector<64x8xbf16>,
    %c0_9 = arith.constant 0 : index
    %c0_10 = arith.constant 0 : index
    %c1 = arith.constant 1 : index
    %c0_11 = arith.constant 0 : index
    %6 = vector.load %arg1[%c0_9, %c0_10, %c1, %c0_11] : memref<1x36x9x8xbf16, #tpu.memory_space<vmem>>, vector<1x8x8x8xbf16>
    %7 = vector.shape_cast %6 : vector<1x8x8x8xbf16> to vector<64x8xbf16>
    %c0_12 = arith.constant 0 : index
    %c16 = arith.constant 16 : index
    %8 = vector.load %arg8[%c0_12, %c16] : memref<64x72xbf16, #tpu.memory_space<vmem>>, vector<64x8xbf16>
    tpu.vector_store %arg8[%c0_12, %c16], %7 {strides = array<i32>} : memref<64x72xbf16, #tpu.memory_space<vmem>>, vector<64x8xbf16>,
    %c0_13 = arith.constant 0 : index
    %c18 = arith.constant 18 : index
    %c0_14 = arith.constant 0 : index
    %c0_15 = arith.constant 0 : index
    %9 = vector.load %arg1[%c0_13, %c18, %c0_14, %c0_15] : memref<1x36x9x8xbf16, #tpu.memory_space<vmem>>, vector<1x8x8x8xbf16>
    %10 = vector.shape_cast %9 : vector<1x8x8x8xbf16> to vector<64x8xbf16>
    %c0_16 = arith.constant 0 : index
    %c24 = arith.constant 24 : index
    %11 = vector.load %arg8[%c0_16, %c24] : memref<64x72xbf16, #tpu.memory_space<vmem>>, vector<64x8xbf16>
    tpu.vector_store %arg8[%c0_16, %c24], %10 {strides = array<i32>} : memref<64x72xbf16, #tpu.memory_space<vmem>>, vector<64x8xbf16>,
    %c0_17 = arith.constant 0 : index
    %c27 = arith.constant 27 : index
    %c0_18 = arith.constant 0 : index
    %c0_19 = arith.constant 0 : index
    %12 = vector.load %arg1[%c0_17, %c27, %c0_18, %c0_19] : memref<1x36x9x8xbf16, #tpu.memory_space<vmem>>, vector<1x8x8x8xbf16>
    %13 = vector.shape_cast %12 : vector<1x8x8x8xbf16> to vector<64x8xbf16>
    %c0_20 = arith.constant 0 : index
    %c32 = arith.constant 32 : index
    %14 = vector.load %arg8[%c0_20, %c32] : memref<64x72xbf16, #tpu.memory_space<vmem>>, vector<64x8xbf16>
    tpu.vector_store %arg8[%c0_20, %c32], %13 {strides = array<i32>} : memref<64x72xbf16, #tpu.memory_space<vmem>>, vector<64x8xbf16>,
    %c0_21 = arith.constant 0 : index
    %c18_22 = arith.constant 18 : index
    %c1_23 = arith.constant 1 : index
    %c0_24 = arith.constant 0 : index
    %15 = vector.load %arg1[%c0_21, %c18_22, %c1_23, %c0_24] : memref<1x36x9x8xbf16, #tpu.memory_space<vmem>>, vector<1x8x8x8xbf16>
    %16 = vector.shape_cast %15 : vector<1x8x8x8xbf16> to vector<64x8xbf16>
    %c0_25 = arith.constant 0 : index
    %c40 = arith.constant 40 : index
    %17 = vector.load %arg8[%c0_25, %c40] : memref<64x72xbf16, #tpu.memory_space<vmem>>, vector<64x8xbf16>
    tpu.vector_store %arg8[%c0_25, %c40], %16 {strides = array<i32>} : memref<64x72xbf16, #tpu.memory_space<vmem>>, vector<64x8xbf16>,
    %c0_26 = arith.constant 0 : index
    %c1_27 = arith.constant 1 : index
    %c0_28 = arith.constant 0 : index
    %c0_29 = arith.constant 0 : index
    %18 = vector.load %arg1[%c0_26, %c1_27, %c0_28, %c0_29] : memref<1x36x9x8xbf16, #tpu.memory_space<vmem>>, vector<1x8x8x8xbf16>
    %19 = vector.shape_cast %18 : vector<1x8x8x8xbf16> to vector<64x8xbf16>
    %c0_30 = arith.constant 0 : index
    %c48 = arith.constant 48 : index
    %20 = vector.load %arg8[%c0_30, %c48] : memref<64x72xbf16, #tpu.memory_space<vmem>>, vector<64x8xbf16>
    tpu.vector_store %arg8[%c0_30, %c48], %19 {strides = array<i32>} : memref<64x72xbf16, #tpu.memory_space<vmem>>, vector<64x8xbf16>,
    %c0_31 = arith.constant 0 : index
    %c10 = arith.constant 10 : index
    %c0_32 = arith.constant 0 : index
    %c0_33 = arith.constant 0 : index
    %21 = vector.load %arg1[%c0_31, %c10, %c0_32, %c0_33] : memref<1x36x9x8xbf16, #tpu.memory_space<vmem>>, vector<1x8x8x8xbf16>
    %22 = vector.shape_cast %21 : vector<1x8x8x8xbf16> to vector<64x8xbf16>
    %c0_34 = arith.constant 0 : index
    %c56 = arith.constant 56 : index
    %23 = vector.load %arg8[%c0_34, %c56] : memref<64x72xbf16, #tpu.memory_space<vmem>>, vector<64x8xbf16>
    tpu.vector_store %arg8[%c0_34, %c56], %22 {strides = array<i32>} : memref<64x72xbf16, #tpu.memory_space<vmem>>, vector<64x8xbf16>,
    %c0_35 = arith.constant 0 : index
    %c1_36 = arith.constant 1 : index
    %c1_37 = arith.constant 1 : index
    %c0_38 = arith.constant 0 : index
    %24 = vector.load %arg1[%c0_35, %c1_36, %c1_37, %c0_38] : memref<1x36x9x8xbf16, #tpu.memory_space<vmem>>, vector<1x8x8x8xbf16>
    %25 = vector.shape_cast %24 : vector<1x8x8x8xbf16> to vector<64x8xbf16>
    %c0_39 = arith.constant 0 : index
    %c64 = arith.constant 64 : index
    %26 = vector.load %arg8[%c0_39, %c64] : memref<64x72xbf16, #tpu.memory_space<vmem>>, vector<64x8xbf16>
    tpu.vector_store %arg8[%c0_39, %c64], %25 {strides = array<i32>} : memref<64x72xbf16, #tpu.memory_space<vmem>>, vector<64x8xbf16>,
    %c0_40 = arith.constant 0 : index
    %c0_41 = arith.constant 0 : index
    %27 = vector.load %arg8[%c0_40, %c0_41] : memref<64x72xbf16, #tpu.memory_space<vmem>>, vector<64x72xbf16>
    %c0_42 = arith.constant 0 : index
    %c0_43 = arith.constant 0 : index
    %28 = vector.load %arg2[%c0_42, %c0_43] : memref<72x128xbf16, #tpu.memory_space<vmem>>, vector<72x128xbf16>
    %cst = arith.constant dense<0.000000e+00> : vector<64x128xf32>
    %29 = tpu.matmul %27, %28, %cst {dimension_numbers = #tpu.dot_dimension_numbers<[1], [0], [0], [1], [0, 0, 1, 1], [], []>} : vector<64x72xbf16>, vector<72x128xbf16>, vector<64x128xf32> -> vector<64x128xf32>
    %30 = vector.shape_cast %29 : vector<64x128xf32> to vector<1x64x128xf32>
    %31 = arith.truncf %30 : vector<1x64x128xf32> to vector<1x64x128xbf16>
    %c0_44 = arith.constant 0 : index
    %c0_45 = arith.constant 0 : index
    %c0_46 = arith.constant 0 : index
    %32 = vector.load %arg4[%c0_44, %c0_45, %c0_46] : memref<1x64x128xbf16, #tpu.memory_space<vmem>>, vector<1x64x128xbf16>
    tpu.vector_store %arg4[%c0_44, %c0_45, %c0_46], %31 {strides = array<i32>} : memref<1x64x128xbf16, #tpu.memory_space<vmem>>, vector<1x64x128xbf16>,
    %cst_47 = arith.constant dense<0.000000e+00> : vector<128xf32>
    %33 = vector.multi_reduction <add>, %29, %cst_47 [0] : vector<64x128xf32> to vector<128xf32>
    %34 = vector.shape_cast %33 : vector<128xf32> to vector<1x128xf32>
    %35 = arith.mulf %29, %29 : vector<64x128xf32>
    %cst_48 = arith.constant dense<0.000000e+00> : vector<128xf32>
    %36 = vector.multi_reduction <add>, %35, %cst_48 [0] : vector<64x128xf32> to vector<128xf32>
    %37 = vector.shape_cast %36 : vector<128xf32> to vector<1x128xf32>
    %38 = tpu.concatenate %34, %37 in 0 : vector<1x128xf32>, vector<1x128xf32> -> vector<2x128xf32>
    %c0_49 = arith.constant 0 : index
    %c0_50 = arith.constant 0 : index
    %c0_51 = arith.constant 0 : index
    %39 = vector.load %arg5[%c0_49, %c0_50, %c0_51] : memref<1x2x128xf32, #tpu.memory_space<vmem>>, vector<1x2x128xf32>
    %40 = vector.shape_cast %39 : vector<1x2x128xf32> to vector<2x128xf32>
    %41 = vector.shape_cast %38 : vector<2x128xf32> to vector<1x2x128xf32>
    tpu.vector_store %arg5[%c0_49, %c0_50, %c0_51], %41 {strides = array<i32>} : memref<1x2x128xf32, #tpu.memory_space<vmem>>, vector<1x2x128xf32>,
    %c0_52 = arith.constant 0 : index
    %c0_53 = arith.constant 0 : index
    %42 = vector.load %arg3[%c0_52, %c0_53] : memref<8x128xbf16, #tpu.memory_space<vmem>>, vector<8x128xbf16>
    %cst_54 = arith.constant dense<0.000000e+00> : vector<64x128xf32>
    %43 = tpu.matmul %13, %42, %cst_54 {dimension_numbers = #tpu.dot_dimension_numbers<[1], [0], [0], [1], [0, 0, 1, 1], [], []>} : vector<64x8xbf16>, vector<8x128xbf16>, vector<64x128xf32> -> vector<64x128xf32>
    %44 = vector.shape_cast %43 : vector<64x128xf32> to vector<1x64x128xf32>
    %45 = arith.truncf %44 : vector<1x64x128xf32> to vector<1x64x128xbf16>
    %c0_55 = arith.constant 0 : index
    %c0_56 = arith.constant 0 : index
    %c0_57 = arith.constant 0 : index
    %46 = vector.load %arg6[%c0_55, %c0_56, %c0_57] : memref<1x64x128xbf16, #tpu.memory_space<vmem>>, vector<1x64x128xbf16>
    tpu.vector_store %arg6[%c0_55, %c0_56, %c0_57], %45 {strides = array<i32>} : memref<1x64x128xbf16, #tpu.memory_space<vmem>>, vector<1x64x128xbf16>,
    %cst_58 = arith.constant dense<0.000000e+00> : vector<128xf32>
    %47 = vector.multi_reduction <add>, %43, %cst_58 [0] : vector<64x128xf32> to vector<128xf32>
    %48 = vector.shape_cast %47 : vector<128xf32> to vector<1x128xf32>
    %49 = arith.mulf %43, %43 : vector<64x128xf32>
    %cst_59 = arith.constant dense<0.000000e+00> : vector<128xf32>
    %50 = vector.multi_reduction <add>, %49, %cst_59 [0] : vector<64x128xf32> to vector<128xf32>
    %51 = vector.shape_cast %50 : vector<128xf32> to vector<1x128xf32>
    %52 = tpu.concatenate %48, %51 in 0 : vector<1x128xf32>, vector<1x128xf32> -> vector<2x128xf32>
    %c0_60 = arith.constant 0 : index
    %c0_61 = arith.constant 0 : index
    %c0_62 = arith.constant 0 : index
    %53 = vector.load %arg7[%c0_60, %c0_61, %c0_62] : memref<1x2x128xf32, #tpu.memory_space<vmem>>, vector<1x2x128xf32>
    %54 = vector.shape_cast %53 : vector<1x2x128xf32> to vector<2x128xf32>
    %55 = vector.shape_cast %52 : vector<2x128xf32> to vector<1x2x128xf32>
    tpu.vector_store %arg7[%c0_60, %c0_61, %c0_62], %55 {strides = array<i32>} : memref<1x2x128xf32, #tpu.memory_space<vmem>>, vector<1x2x128xf32>,
    return
  }
  func.func @transform_0(%arg0: i32) -> (i32, i32, i32, i32) {
    %c0_i32 = arith.constant 0 : i32
    %c0_i32_0 = arith.constant 0 : i32
    %c0_i32_1 = arith.constant 0 : i32
    %c0_i32_2 = arith.constant 0 : i32
    return %arg0, %c0_i32, %c0_i32_0, %c0_i32_1 : i32, i32, i32, i32
  }
  func.func @transform_1(%arg0: i32) -> (i32, i32) {
    %c0_i32 = arith.constant 0 : i32
    %c0_i32_0 = arith.constant 0 : i32
    %c0_i32_1 = arith.constant 0 : i32
    return %c0_i32, %c0_i32_0 : i32, i32
  }
  func.func @transform_2(%arg0: i32) -> (i32, i32) {
    %c0_i32 = arith.constant 0 : i32
    %c0_i32_0 = arith.constant 0 : i32
    %c0_i32_1 = arith.constant 0 : i32
    return %c0_i32, %c0_i32_0 : i32, i32
  }
  func.func @transform_3(%arg0: i32) -> (i32, i32, i32) {
    %c0_i32 = arith.constant 0 : i32
    %c0_i32_0 = arith.constant 0 : i32
    %c0_i32_1 = arith.constant 0 : i32
    return %arg0, %c0_i32, %c0_i32_0 : i32, i32, i32
  }
  func.func @transform_4(%arg0: i32) -> (i32, i32, i32) {
    %c0_i32 = arith.constant 0 : i32
    %c0_i32_0 = arith.constant 0 : i32
    %c0_i32_1 = arith.constant 0 : i32
    return %arg0, %c0_i32, %c0_i32_0 : i32, i32, i32
  }
  func.func @transform_5(%arg0: i32) -> (i32, i32, i32) {
    %c0_i32 = arith.constant 0 : i32
    %c0_i32_0 = arith.constant 0 : i32
    %c0_i32_1 = arith.constant 0 : i32
    return %arg0, %c0_i32, %c0_i32_0 : i32, i32, i32
  }
  func.func @transform_6(%arg0: i32) -> (i32, i32, i32) {
    %c0_i32 = arith.constant 0 : i32
    %c0_i32_0 = arith.constant 0 : i32
    %c0_i32_1 = arith.constant 0 : i32
    return %arg0, %c0_i32, %c0_i32_0 : i32, i32, i32
  }
}

module attributes {stable_mosaic.version = 11 : i64} {
  func.func @_stage3_proj_kernel(%arg0: i32, %arg1: memref<1x64x128xbf16, #tpu.memory_space<vmem>>, %arg2: memref<1x128xf32, #tpu.memory_space<vmem>>, %arg3: memref<1x128xf32, #tpu.memory_space<vmem>>, %arg4: memref<1x64x128xbf16, #tpu.memory_space<vmem>>, %arg5: memref<1x128xf32, #tpu.memory_space<vmem>>, %arg6: memref<1x128xf32, #tpu.memory_space<vmem>>, %arg7: memref<1x64x128xf32, #tpu.memory_space<vmem>>) attributes {dimension_semantics = [#tpu.dimension_semantics<parallel>], iteration_bounds = array<i64: 2>, scalar_prefetch = 0 : i64, scratch_operands = 0 : i64, tpu.core_type = #tpu.core_type<tc>, window_params = [{transform_indices = @transform_0, window_bounds = array<i64: 1, 64, 128>}, {pipeline_mode = #tpu.pipeline_mode<synchronous>, transform_indices = @transform_1, window_bounds = array<i64: 1, 128>}, {pipeline_mode = #tpu.pipeline_mode<synchronous>, transform_indices = @transform_2, window_bounds = array<i64: 1, 128>}, {transform_indices = @transform_3, window_bounds = array<i64: 1, 64, 128>}, {pipeline_mode = #tpu.pipeline_mode<synchronous>, transform_indices = @transform_4, window_bounds = array<i64: 1, 128>}, {pipeline_mode = #tpu.pipeline_mode<synchronous>, transform_indices = @transform_5, window_bounds = array<i64: 1, 128>}, {transform_indices = @transform_6, window_bounds = array<i64: 1, 64, 128>}]} {
    %c0 = arith.constant 0 : index
    %c0_0 = arith.constant 0 : index
    %c0_1 = arith.constant 0 : index
    %0 = vector.load %arg1[%c0, %c0_0, %c0_1] : memref<1x64x128xbf16, #tpu.memory_space<vmem>>, vector<1x64x128xbf16>
    %1 = arith.extf %0 : vector<1x64x128xbf16> to vector<1x64x128xf32>
    %c0_2 = arith.constant 0 : index
    %c0_3 = arith.constant 0 : index
    %2 = vector.load %arg2[%c0_2, %c0_3] : memref<1x128xf32, #tpu.memory_space<vmem>>, vector<1x128xf32>
    %3 = vector.shape_cast %2 : vector<1x128xf32> to vector<1x1x128xf32>
    %4 = vector.broadcast %3 : vector<1x1x128xf32> to vector<1x64x128xf32>
    %5 = arith.mulf %1, %4 : vector<1x64x128xf32>
    %c0_4 = arith.constant 0 : index
    %c0_5 = arith.constant 0 : index
    %6 = vector.load %arg3[%c0_4, %c0_5] : memref<1x128xf32, #tpu.memory_space<vmem>>, vector<1x128xf32>
    %7 = vector.shape_cast %6 : vector<1x128xf32> to vector<1x1x128xf32>
    %8 = vector.broadcast %7 : vector<1x1x128xf32> to vector<1x64x128xf32>
    %9 = arith.addf %5, %8 : vector<1x64x128xf32>
    %c0_6 = arith.constant 0 : index
    %c0_7 = arith.constant 0 : index
    %c0_8 = arith.constant 0 : index
    %10 = vector.load %arg4[%c0_6, %c0_7, %c0_8] : memref<1x64x128xbf16, #tpu.memory_space<vmem>>, vector<1x64x128xbf16>
    %11 = arith.extf %10 : vector<1x64x128xbf16> to vector<1x64x128xf32>
    %c0_9 = arith.constant 0 : index
    %c0_10 = arith.constant 0 : index
    %12 = vector.load %arg5[%c0_9, %c0_10] : memref<1x128xf32, #tpu.memory_space<vmem>>, vector<1x128xf32>
    %13 = vector.shape_cast %12 : vector<1x128xf32> to vector<1x1x128xf32>
    %14 = vector.broadcast %13 : vector<1x1x128xf32> to vector<1x64x128xf32>
    %15 = arith.mulf %11, %14 : vector<1x64x128xf32>
    %16 = arith.addf %9, %15 : vector<1x64x128xf32>
    %c0_11 = arith.constant 0 : index
    %c0_12 = arith.constant 0 : index
    %17 = vector.load %arg6[%c0_11, %c0_12] : memref<1x128xf32, #tpu.memory_space<vmem>>, vector<1x128xf32>
    %18 = vector.shape_cast %17 : vector<1x128xf32> to vector<1x1x128xf32>
    %19 = vector.broadcast %18 : vector<1x1x128xf32> to vector<1x64x128xf32>
    %20 = arith.addf %16, %19 : vector<1x64x128xf32>
    %cst = arith.constant 0.000000e+00 : f32
    %21 = vector.broadcast %cst : f32 to vector<1x64x128xf32>
    %22 = arith.maximumf %20, %21 : vector<1x64x128xf32>
    %c0_13 = arith.constant 0 : index
    %c0_14 = arith.constant 0 : index
    %c0_15 = arith.constant 0 : index
    %23 = vector.load %arg7[%c0_13, %c0_14, %c0_15] : memref<1x64x128xf32, #tpu.memory_space<vmem>>, vector<1x64x128xf32>
    tpu.vector_store %arg7[%c0_13, %c0_14, %c0_15], %22 {strides = array<i32>} : memref<1x64x128xf32, #tpu.memory_space<vmem>>, vector<1x64x128xf32>,
    return
  }
  func.func @transform_0(%arg0: i32) -> (i32, i32, i32) {
    %c0_i32 = arith.constant 0 : i32
    %c0_i32_0 = arith.constant 0 : i32
    %c0_i32_1 = arith.constant 0 : i32
    return %arg0, %c0_i32, %c0_i32_0 : i32, i32, i32
  }
  func.func @transform_1(%arg0: i32) -> (i32, i32) {
    %c0_i32 = arith.constant 0 : i32
    %c0_i32_0 = arith.constant 0 : i32
    %c0_i32_1 = arith.constant 0 : i32
    return %c0_i32, %c0_i32_0 : i32, i32
  }
  func.func @transform_2(%arg0: i32) -> (i32, i32) {
    %c0_i32 = arith.constant 0 : i32
    %c0_i32_0 = arith.constant 0 : i32
    %c0_i32_1 = arith.constant 0 : i32
    return %c0_i32, %c0_i32_0 : i32, i32
  }
  func.func @transform_3(%arg0: i32) -> (i32, i32, i32) {
    %c0_i32 = arith.constant 0 : i32
    %c0_i32_0 = arith.constant 0 : i32
    %c0_i32_1 = arith.constant 0 : i32
    return %arg0, %c0_i32, %c0_i32_0 : i32, i32, i32
  }
  func.func @transform_4(%arg0: i32) -> (i32, i32) {
    %c0_i32 = arith.constant 0 : i32
    %c0_i32_0 = arith.constant 0 : i32
    %c0_i32_1 = arith.constant 0 : i32
    return %c0_i32, %c0_i32_0 : i32, i32
  }
  func.func @transform_5(%arg0: i32) -> (i32, i32) {
    %c0_i32 = arith.constant 0 : i32
    %c0_i32_0 = arith.constant 0 : i32
    %c0_i32_1 = arith.constant 0 : i32
    return %c0_i32, %c0_i32_0 : i32, i32
  }
  func.func @transform_6(%arg0: i32) -> (i32, i32, i32) {
    %c0_i32 = arith.constant 0 : i32
    %c0_i32_0 = arith.constant 0 : i32
    %c0_i32_1 = arith.constant 0 : i32
    return %arg0, %c0_i32, %c0_i32_0 : i32, i32, i32
  }
}

module attributes {stable_mosaic.version = 11 : i64} {
  func.func @_stage2_kernel(%arg0: i32, %arg1: memref<1x64x128xbf16, #tpu.memory_space<vmem>>, %arg2: memref<1x128xf32, #tpu.memory_space<vmem>>, %arg3: memref<1x128xf32, #tpu.memory_space<vmem>>, %arg4: memref<1152x128xbf16, #tpu.memory_space<vmem>>, %arg5: memref<1x64x128xbf16, #tpu.memory_space<vmem>>, %arg6: memref<1x2x128xf32, #tpu.memory_space<vmem>>, %arg7: memref<1x10x10x128xbf16, #tpu.memory_space<vmem>>, %arg8: memref<64x1152xbf16, #tpu.memory_space<vmem>>) attributes {dimension_semantics = [#tpu.dimension_semantics<parallel>], iteration_bounds = array<i64: 2>, scalar_prefetch = 0 : i64, scratch_operands = 2 : i64, tpu.core_type = #tpu.core_type<tc>, window_params = [{transform_indices = @transform_0, window_bounds = array<i64: 1, 64, 128>}, {pipeline_mode = #tpu.pipeline_mode<synchronous>, transform_indices = @transform_1, window_bounds = array<i64: 1, 128>}, {pipeline_mode = #tpu.pipeline_mode<synchronous>, transform_indices = @transform_2, window_bounds = array<i64: 1, 128>}, {pipeline_mode = #tpu.pipeline_mode<synchronous>, transform_indices = @transform_3, window_bounds = array<i64: 1152, 128>}, {transform_indices = @transform_4, window_bounds = array<i64: 1, 64, 128>}, {transform_indices = @transform_5, window_bounds = array<i64: 1, 2, 128>}]} {
    %c0 = arith.constant 0 : index
    %c0_0 = arith.constant 0 : index
    %c0_1 = arith.constant 0 : index
    %0 = vector.load %arg1[%c0, %c0_0, %c0_1] : memref<1x64x128xbf16, #tpu.memory_space<vmem>>, vector<1x64x128xbf16>
    %1 = arith.extf %0 : vector<1x64x128xbf16> to vector<1x64x128xf32>
    %c0_2 = arith.constant 0 : index
    %c0_3 = arith.constant 0 : index
    %2 = vector.load %arg2[%c0_2, %c0_3] : memref<1x128xf32, #tpu.memory_space<vmem>>, vector<1x128xf32>
    %3 = vector.shape_cast %2 : vector<1x128xf32> to vector<1x1x128xf32>
    %4 = vector.broadcast %3 : vector<1x1x128xf32> to vector<1x64x128xf32>
    %5 = arith.mulf %1, %4 : vector<1x64x128xf32>
    %c0_4 = arith.constant 0 : index
    %c0_5 = arith.constant 0 : index
    %6 = vector.load %arg3[%c0_4, %c0_5] : memref<1x128xf32, #tpu.memory_space<vmem>>, vector<1x128xf32>
    %7 = vector.shape_cast %6 : vector<1x128xf32> to vector<1x1x128xf32>
    %8 = vector.broadcast %7 : vector<1x1x128xf32> to vector<1x64x128xf32>
    %9 = arith.addf %5, %8 : vector<1x64x128xf32>
    %cst = arith.constant 0.000000e+00 : f32
    %10 = vector.broadcast %cst : f32 to vector<1x64x128xf32>
    %11 = arith.maximumf %9, %10 : vector<1x64x128xf32>
    %cst_6 = arith.constant 0.000000e+00 : bf16
    %12 = vector.broadcast %cst_6 : bf16 to vector<1x1x10x128xbf16>
    %cst_7 = arith.constant 0.000000e+00 : bf16
    %13 = vector.broadcast %cst_7 : bf16 to vector<1x10x1x128xbf16>
    %c0_8 = arith.constant 0 : index
    %c0_9 = arith.constant 0 : index
    %c0_10 = arith.constant 0 : index
    %c0_11 = arith.constant 0 : index
    %14 = vector.load %arg7[%c0_8, %c0_9, %c0_10, %c0_11] : memref<1x10x10x128xbf16, #tpu.memory_space<vmem>>, vector<1x1x10x128xbf16>
    tpu.vector_store %arg7[%c0_8, %c0_9, %c0_10, %c0_11], %12 {strides = array<i32>} : memref<1x10x10x128xbf16, #tpu.memory_space<vmem>>, vector<1x1x10x128xbf16>,
    %c0_12 = arith.constant 0 : index
    %c9 = arith.constant 9 : index
    %c0_13 = arith.constant 0 : index
    %c0_14 = arith.constant 0 : index
    %15 = vector.load %arg7[%c0_12, %c9, %c0_13, %c0_14] : memref<1x10x10x128xbf16, #tpu.memory_space<vmem>>, vector<1x1x10x128xbf16>
    tpu.vector_store %arg7[%c0_12, %c9, %c0_13, %c0_14], %12 {strides = array<i32>} : memref<1x10x10x128xbf16, #tpu.memory_space<vmem>>, vector<1x1x10x128xbf16>,
    %c0_15 = arith.constant 0 : index
    %c0_16 = arith.constant 0 : index
    %c0_17 = arith.constant 0 : index
    %c0_18 = arith.constant 0 : index
    %16 = vector.load %arg7[%c0_15, %c0_16, %c0_17, %c0_18] : memref<1x10x10x128xbf16, #tpu.memory_space<vmem>>, vector<1x10x1x128xbf16>
    tpu.vector_store %arg7[%c0_15, %c0_16, %c0_17, %c0_18], %13 {strides = array<i32>} : memref<1x10x10x128xbf16, #tpu.memory_space<vmem>>, vector<1x10x1x128xbf16>,
    %c0_19 = arith.constant 0 : index
    %c0_20 = arith.constant 0 : index
    %c9_21 = arith.constant 9 : index
    %c0_22 = arith.constant 0 : index
    %17 = vector.load %arg7[%c0_19, %c0_20, %c9_21, %c0_22] : memref<1x10x10x128xbf16, #tpu.memory_space<vmem>>, vector<1x10x1x128xbf16>
    tpu.vector_store %arg7[%c0_19, %c0_20, %c9_21, %c0_22], %13 {strides = array<i32>} : memref<1x10x10x128xbf16, #tpu.memory_space<vmem>>, vector<1x10x1x128xbf16>,
    %18 = vector.shape_cast %11 : vector<1x64x128xf32> to vector<1x8x8x128xf32>
    %19 = arith.truncf %18 : vector<1x8x8x128xf32> to vector<1x8x8x128xbf16>
    %c0_23 = arith.constant 0 : index
    %c1 = arith.constant 1 : index
    %c1_24 = arith.constant 1 : index
    %c0_25 = arith.constant 0 : index
    %20 = vector.load %arg7[%c0_23, %c1, %c1_24, %c0_25] : memref<1x10x10x128xbf16, #tpu.memory_space<vmem>>, vector<1x8x8x128xbf16>
    tpu.vector_store %arg7[%c0_23, %c1, %c1_24, %c0_25], %19 {strides = array<i32>} : memref<1x10x10x128xbf16, #tpu.memory_space<vmem>>, vector<1x8x8x128xbf16>,
    %c0_26 = arith.constant 0 : index
    %c0_27 = arith.constant 0 : index
    %c0_28 = arith.constant 0 : index
    %c0_29 = arith.constant 0 : index
    %21 = vector.load %arg7[%c0_26, %c0_27, %c0_28, %c0_29] : memref<1x10x10x128xbf16, #tpu.memory_space<vmem>>, vector<1x8x8x128xbf16>
    %22 = vector.shape_cast %21 : vector<1x8x8x128xbf16> to vector<64x128xbf16>
    %c0_30 = arith.constant 0 : index
    %c0_31 = arith.constant 0 : index
    %23 = vector.load %arg8[%c0_30, %c0_31] : memref<64x1152xbf16, #tpu.memory_space<vmem>>, vector<64x128xbf16>
    tpu.vector_store %arg8[%c0_30, %c0_31], %22 {strides = array<i32>} : memref<64x1152xbf16, #tpu.memory_space<vmem>>, vector<64x128xbf16>,
    %c0_32 = arith.constant 0 : index
    %c0_33 = arith.constant 0 : index
    %c1_34 = arith.constant 1 : index
    %c0_35 = arith.constant 0 : index
    %24 = vector.load %arg7[%c0_32, %c0_33, %c1_34, %c0_35] : memref<1x10x10x128xbf16, #tpu.memory_space<vmem>>, vector<1x8x8x128xbf16>
    %25 = vector.shape_cast %24 : vector<1x8x8x128xbf16> to vector<64x128xbf16>
    %c0_36 = arith.constant 0 : index
    %c128 = arith.constant 128 : index
    %26 = vector.load %arg8[%c0_36, %c128] : memref<64x1152xbf16, #tpu.memory_space<vmem>>, vector<64x128xbf16>
    tpu.vector_store %arg8[%c0_36, %c128], %25 {strides = array<i32>} : memref<64x1152xbf16, #tpu.memory_space<vmem>>, vector<64x128xbf16>,
    %c0_37 = arith.constant 0 : index
    %c0_38 = arith.constant 0 : index
    %c2 = arith.constant 2 : index
    %c0_39 = arith.constant 0 : index
    %27 = vector.load %arg7[%c0_37, %c0_38, %c2, %c0_39] : memref<1x10x10x128xbf16, #tpu.memory_space<vmem>>, vector<1x8x8x128xbf16>
    %28 = vector.shape_cast %27 : vector<1x8x8x128xbf16> to vector<64x128xbf16>
    %c0_40 = arith.constant 0 : index
    %c256 = arith.constant 256 : index
    %29 = vector.load %arg8[%c0_40, %c256] : memref<64x1152xbf16, #tpu.memory_space<vmem>>, vector<64x128xbf16>
    tpu.vector_store %arg8[%c0_40, %c256], %28 {strides = array<i32>} : memref<64x1152xbf16, #tpu.memory_space<vmem>>, vector<64x128xbf16>,
    %c0_41 = arith.constant 0 : index
    %c1_42 = arith.constant 1 : index
    %c0_43 = arith.constant 0 : index
    %c0_44 = arith.constant 0 : index
    %30 = vector.load %arg7[%c0_41, %c1_42, %c0_43, %c0_44] : memref<1x10x10x128xbf16, #tpu.memory_space<vmem>>, vector<1x8x8x128xbf16>
    %31 = vector.shape_cast %30 : vector<1x8x8x128xbf16> to vector<64x128xbf16>
    %c0_45 = arith.constant 0 : index
    %c384 = arith.constant 384 : index
    %32 = vector.load %arg8[%c0_45, %c384] : memref<64x1152xbf16, #tpu.memory_space<vmem>>, vector<64x128xbf16>
    tpu.vector_store %arg8[%c0_45, %c384], %31 {strides = array<i32>} : memref<64x1152xbf16, #tpu.memory_space<vmem>>, vector<64x128xbf16>,
    %c0_46 = arith.constant 0 : index
    %c1_47 = arith.constant 1 : index
    %c1_48 = arith.constant 1 : index
    %c0_49 = arith.constant 0 : index
    %33 = vector.load %arg7[%c0_46, %c1_47, %c1_48, %c0_49] : memref<1x10x10x128xbf16, #tpu.memory_space<vmem>>, vector<1x8x8x128xbf16>
    %34 = vector.shape_cast %33 : vector<1x8x8x128xbf16> to vector<64x128xbf16>
    %c0_50 = arith.constant 0 : index
    %c512 = arith.constant 512 : index
    %35 = vector.load %arg8[%c0_50, %c512] : memref<64x1152xbf16, #tpu.memory_space<vmem>>, vector<64x128xbf16>
    tpu.vector_store %arg8[%c0_50, %c512], %34 {strides = array<i32>} : memref<64x1152xbf16, #tpu.memory_space<vmem>>, vector<64x128xbf16>,
    %c0_51 = arith.constant 0 : index
    %c1_52 = arith.constant 1 : index
    %c2_53 = arith.constant 2 : index
    %c0_54 = arith.constant 0 : index
    %36 = vector.load %arg7[%c0_51, %c1_52, %c2_53, %c0_54] : memref<1x10x10x128xbf16, #tpu.memory_space<vmem>>, vector<1x8x8x128xbf16>
    %37 = vector.shape_cast %36 : vector<1x8x8x128xbf16> to vector<64x128xbf16>
    %c0_55 = arith.constant 0 : index
    %c640 = arith.constant 640 : index
    %38 = vector.load %arg8[%c0_55, %c640] : memref<64x1152xbf16, #tpu.memory_space<vmem>>, vector<64x128xbf16>
    tpu.vector_store %arg8[%c0_55, %c640], %37 {strides = array<i32>} : memref<64x1152xbf16, #tpu.memory_space<vmem>>, vector<64x128xbf16>,
    %c0_56 = arith.constant 0 : index
    %c2_57 = arith.constant 2 : index
    %c0_58 = arith.constant 0 : index
    %c0_59 = arith.constant 0 : index
    %39 = vector.load %arg7[%c0_56, %c2_57, %c0_58, %c0_59] : memref<1x10x10x128xbf16, #tpu.memory_space<vmem>>, vector<1x8x8x128xbf16>
    %40 = vector.shape_cast %39 : vector<1x8x8x128xbf16> to vector<64x128xbf16>
    %c0_60 = arith.constant 0 : index
    %c768 = arith.constant 768 : index
    %41 = vector.load %arg8[%c0_60, %c768] : memref<64x1152xbf16, #tpu.memory_space<vmem>>, vector<64x128xbf16>
    tpu.vector_store %arg8[%c0_60, %c768], %40 {strides = array<i32>} : memref<64x1152xbf16, #tpu.memory_space<vmem>>, vector<64x128xbf16>,
    %c0_61 = arith.constant 0 : index
    %c2_62 = arith.constant 2 : index
    %c1_63 = arith.constant 1 : index
    %c0_64 = arith.constant 0 : index
    %42 = vector.load %arg7[%c0_61, %c2_62, %c1_63, %c0_64] : memref<1x10x10x128xbf16, #tpu.memory_space<vmem>>, vector<1x8x8x128xbf16>
    %43 = vector.shape_cast %42 : vector<1x8x8x128xbf16> to vector<64x128xbf16>
    %c0_65 = arith.constant 0 : index
    %c896 = arith.constant 896 : index
    %44 = vector.load %arg8[%c0_65, %c896] : memref<64x1152xbf16, #tpu.memory_space<vmem>>, vector<64x128xbf16>
    tpu.vector_store %arg8[%c0_65, %c896], %43 {strides = array<i32>} : memref<64x1152xbf16, #tpu.memory_space<vmem>>, vector<64x128xbf16>,
    %c0_66 = arith.constant 0 : index
    %c2_67 = arith.constant 2 : index
    %c2_68 = arith.constant 2 : index
    %c0_69 = arith.constant 0 : index
    %45 = vector.load %arg7[%c0_66, %c2_67, %c2_68, %c0_69] : memref<1x10x10x128xbf16, #tpu.memory_space<vmem>>, vector<1x8x8x128xbf16>
    %46 = vector.shape_cast %45 : vector<1x8x8x128xbf16> to vector<64x128xbf16>
    %c0_70 = arith.constant 0 : index
    %c1024 = arith.constant 1024 : index
    %47 = vector.load %arg8[%c0_70, %c1024] : memref<64x1152xbf16, #tpu.memory_space<vmem>>, vector<64x128xbf16>
    tpu.vector_store %arg8[%c0_70, %c1024], %46 {strides = array<i32>} : memref<64x1152xbf16, #tpu.memory_space<vmem>>, vector<64x128xbf16>,
    %c0_71 = arith.constant 0 : index
    %c0_72 = arith.constant 0 : index
    %48 = vector.load %arg8[%c0_71, %c0_72] : memref<64x1152xbf16, #tpu.memory_space<vmem>>, vector<64x1152xbf16>
    %c0_73 = arith.constant 0 : index
    %c0_74 = arith.constant 0 : index
    %49 = vector.load %arg4[%c0_73, %c0_74] : memref<1152x128xbf16, #tpu.memory_space<vmem>>, vector<1152x128xbf16>
    %cst_75 = arith.constant dense<0.000000e+00> : vector<64x128xf32>
    %50 = tpu.matmul %48, %49, %cst_75 {dimension_numbers = #tpu.dot_dimension_numbers<[1], [0], [0], [1], [0, 0, 1, 1], [], []>} : vector<64x1152xbf16>, vector<1152x128xbf16>, vector<64x128xf32> -> vector<64x128xf32>
    %51 = vector.shape_cast %50 : vector<64x128xf32> to vector<1x64x128xf32>
    %52 = arith.truncf %51 : vector<1x64x128xf32> to vector<1x64x128xbf16>
    %c0_76 = arith.constant 0 : index
    %c0_77 = arith.constant 0 : index
    %c0_78 = arith.constant 0 : index
    %53 = vector.load %arg5[%c0_76, %c0_77, %c0_78] : memref<1x64x128xbf16, #tpu.memory_space<vmem>>, vector<1x64x128xbf16>
    tpu.vector_store %arg5[%c0_76, %c0_77, %c0_78], %52 {strides = array<i32>} : memref<1x64x128xbf16, #tpu.memory_space<vmem>>, vector<1x64x128xbf16>,
    %cst_79 = arith.constant dense<0.000000e+00> : vector<128xf32>
    %54 = vector.multi_reduction <add>, %50, %cst_79 [0] : vector<64x128xf32> to vector<128xf32>
    %55 = vector.shape_cast %54 : vector<128xf32> to vector<1x128xf32>
    %56 = arith.mulf %50, %50 : vector<64x128xf32>
    %cst_80 = arith.constant dense<0.000000e+00> : vector<128xf32>
    %57 = vector.multi_reduction <add>, %56, %cst_80 [0] : vector<64x128xf32> to vector<128xf32>
    %58 = vector.shape_cast %57 : vector<128xf32> to vector<1x128xf32>
    %59 = tpu.concatenate %55, %58 in 0 : vector<1x128xf32>, vector<1x128xf32> -> vector<2x128xf32>
    %c0_81 = arith.constant 0 : index
    %c0_82 = arith.constant 0 : index
    %c0_83 = arith.constant 0 : index
    %60 = vector.load %arg6[%c0_81, %c0_82, %c0_83] : memref<1x2x128xf32, #tpu.memory_space<vmem>>, vector<1x2x128xf32>
    %61 = vector.shape_cast %60 : vector<1x2x128xf32> to vector<2x128xf32>
    %62 = vector.shape_cast %59 : vector<2x128xf32> to vector<1x2x128xf32>
    tpu.vector_store %arg6[%c0_81, %c0_82, %c0_83], %62 {strides = array<i32>} : memref<1x2x128xf32, #tpu.memory_space<vmem>>, vector<1x2x128xf32>,
    return
  }
  func.func @transform_0(%arg0: i32) -> (i32, i32, i32) {
    %c0_i32 = arith.constant 0 : i32
    %c0_i32_0 = arith.constant 0 : i32
    %c0_i32_1 = arith.constant 0 : i32
    return %arg0, %c0_i32, %c0_i32_0 : i32, i32, i32
  }
  func.func @transform_1(%arg0: i32) -> (i32, i32) {
    %c0_i32 = arith.constant 0 : i32
    %c0_i32_0 = arith.constant 0 : i32
    %c0_i32_1 = arith.constant 0 : i32
    return %c0_i32, %c0_i32_0 : i32, i32
  }
  func.func @transform_2(%arg0: i32) -> (i32, i32) {
    %c0_i32 = arith.constant 0 : i32
    %c0_i32_0 = arith.constant 0 : i32
    %c0_i32_1 = arith.constant 0 : i32
    return %c0_i32, %c0_i32_0 : i32, i32
  }
  func.func @transform_3(%arg0: i32) -> (i32, i32) {
    %c0_i32 = arith.constant 0 : i32
    %c0_i32_0 = arith.constant 0 : i32
    %c0_i32_1 = arith.constant 0 : i32
    return %c0_i32, %c0_i32_0 : i32, i32
  }
  func.func @transform_4(%arg0: i32) -> (i32, i32, i32) {
    %c0_i32 = arith.constant 0 : i32
    %c0_i32_0 = arith.constant 0 : i32
    %c0_i32_1 = arith.constant 0 : i32
    return %arg0, %c0_i32, %c0_i32_0 : i32, i32, i32
  }
  func.func @transform_5(%arg0: i32) -> (i32, i32, i32) {
    %c0_i32 = arith.constant 0 : i32
    %c0_i32_0 = arith.constant 0 : i32
    %c0_i32_1 = arith.constant 0 : i32
    return %arg0, %c0_i32, %c0_i32_0 : i32, i32, i32
  }
}

</mosaic_0001>

<bundles_post_ra>
// kernel: basic_block_forward.5
= control target key start
LH: loop header
LB: loop body
LE: loop exit
PB: predicated region body
PF: predicated region fallthrough
CT: control target
= control target key end

     0   :  { %s552_s21 = smov 0   ;;  %s640_s0 = inlined_call_operand.vmem [shape: bf16[2,64,128], index: 0, kind: input, shape index: {}]   ;;  %s641_s1 = inlined_call_operand.vmem [shape: f32[1,128], index: 1, kind: input, shape index: {}]   ;;  %s642_s2 = inlined_call_operand.vmem [shape: f32[1,128], index: 2, kind: input, shape index: {}]   ;;  %s643_s3 = inlined_call_operand.vmem [shape: bf16[2,64,128], index: 3, kind: input, shape index: {}]   ;;  %s644_s4 = inlined_call_operand.vmem [shape: f32[1,128], index: 4, kind: input, shape index: {}]   ;;  %s645_s5 = inlined_call_operand.vmem [shape: f32[1,128], index: 5, kind: input, shape index: {}]   ;;  %s646_s6 = inlined_call_operand.vmem [shape: f32[2,64,128], index: 6, kind: output, shape index: {}]  }
   0x1 LB: > { %s443_s22 = sadd.s32 4294967295, %s515_s21   ;;  %p447_p0 = scmp.ge.s32.totalorder %s515_s21, 1  ;;  %s515_s21 = sphi %s552_s21, %s16_s21  }
   0x2   : > { %p222_p1 = scmp.lt.s32.totalorder %s515_s21, 3 }
   0x4   : > { %p223_p2 = pnand %p447_p0, %p222_p1 }
   0x5   : > { %p257_p3 = scmp.lt.s32.totalorder (!%p223_p2), %s443_s22, 1 }
   0x6   : > { %226 = sbr.rel (%p223_p2) target bundleno = 40 (0x28), region = 44 }
   0xb   : > { %s648_s22 = smov (!%p257_p3, %s443_s22), 1  ;;  %v576_v0 = vld [vmem:[%s641_s1] ss:$0 sm:$0xff] }
   0xc   : > { %s456_s23 = sshll.u32 %s648_s22, 5  ;;  %v581_v1 = vld [vmem:[%s644_s4] ss:$0 sm:$0xff]  ;;  %s458_s14 = sshll.u32 %s648_s22, 6 }
   0xd   : > { %s566_s26 = scalar_lea.vmem %s640_s0, %s456_s23  ;;  %s571_s29 = scalar_lea.vmem %s643_s3, %s456_s23  ;;  %v589_v6 = vld [vmem:[%s642_s2] ss:$0 sm:$0xff] }
   0xe   : > { %v460_v2 = vld [vmem:[%s566_s26] sm:$0xff]   ;;  %v491_v4 = vld [vmem:[%s566_s26 + $0x8] sm:$0xff]   ;;  %v492_v15 = vld [vmem:[%s566_s26 + $0x10] sm:$0xff]   ;;  %s620_s17 = scalar_lea.vmem %s646_s6, %s458_s14 }
   0xf   : > { %v476_v3 = vld [vmem:[%s571_s29] sm:$0xff]   ;;  %v461_v5 = vunpack.c.l.bf16 %v460_v2  ;;  %v462_v8 = vunpack.c.h.bf16 %v460_v2  ;;  %v494_v10 = vld [vmem:[%s571_s29 + $0x8] sm:$0xff]   ;;  %v465_v11 = vunpack.c.l.bf16 %v491_v4  ;;  %v466_v13 = vunpack.c.h.bf16 %v491_v4  ;;  %v495_v16 = vld [vmem:[%s571_s29 + $0x10] sm:$0xff]  }
  0x10   : > { %v477_v7 = vunpack.c.l.bf16 %v476_v3  ;;  %v478_v9 = vunpack.c.h.bf16 %v476_v3  ;;  %v481_v12 = vunpack.c.l.bf16 %v494_v10  ;;  %v482_v14 = vunpack.c.h.bf16 %v494_v10  ;;  %v508_v26 = vld [vmem:[%s645_s5] ss:$0 sm:$0xff]  ;;  %v493_v34 = vld [vmem:[%s566_s26 + $0x18] sm:$0xff]  }
  0x11   : > { %v292_v17 = vmul.f32 %v576_v0, %v461_v5  ;;  %v293_v19 = vmul.f32 %v576_v0, %v462_v8  ;;  %v294_v21 = vmul.f32 %v576_v0, %v465_v11  ;;  %v295_v23 = vmul.f32 %v576_v0, %v466_v13  ;;  %v496_v39 = vld [vmem:[%s571_s29 + $0x18] sm:$0xff]  }
  0x12   : > { %v332_v18 = vmul.f32 %v581_v1, %v477_v7  ;;  %v333_v20 = vmul.f32 %v581_v1, %v478_v9  ;;  %v334_v22 = vmul.f32 %v581_v1, %v481_v12  ;;  %v335_v24 = vmul.f32 %v581_v1, %v482_v14 }
  0x13   : > { %v304_v25 = vadd.f32 %v589_v6, %v292_v17  ;;  %v305_v27 = vadd.f32 %v589_v6, %v293_v19  ;;  %v469_v28 = vunpack.c.l.bf16 %v492_v15  ;;  %v485_v29 = vunpack.c.l.bf16 %v495_v16 }
  0x14   : > { %v306_v30 = vadd.f32 %v589_v6, %v294_v21  ;;  %v307_v31 = vadd.f32 %v589_v6, %v295_v23  ;;  %v470_v32 = vunpack.c.h.bf16 %v492_v15  ;;  %v486_v33 = vunpack.c.h.bf16 %v495_v16 }
  0x15   : > { %v340_v35 = vadd.f32 %v332_v18, %v304_v25  ;;  %v341_v36 = vadd.f32 %v333_v20, %v305_v27  ;;  %v296_v37 = vmul.f32 %v576_v0, %v469_v28  ;;  %v336_v38 = vmul.f32 %v581_v1, %v485_v29 }
  0x16   : > { %v342_v40 = vadd.f32 %v334_v22, %v306_v30  ;;  %v343_v41 = vadd.f32 %v335_v24, %v307_v31  ;;  %v297_v42 = vmul.f32 %v576_v0, %v470_v32  ;;  %v337_v43 = vmul.f32 %v581_v1, %v486_v33 }
  0x17   : > { %v352_v44 = vadd.f32 %v508_v26, %v340_v35  ;;  %v353_v45 = vadd.f32 %v508_v26, %v341_v36  ;;  %v308_v46 = vadd.f32 %v589_v6, %v296_v37  ;;  %v473_v47 = vunpack.c.l.bf16 %v493_v34 }
  0x18   : > { %v354_v48 = vadd.f32 %v508_v26, %v342_v40  ;;  %v355_v49 = vadd.f32 %v508_v26, %v343_v41  ;;  %v309_v50 = vadd.f32 %v589_v6, %v297_v42  ;;  %v489_v51 = vunpack.c.l.bf16 %v496_v39 }
  0x19   : > { %v360_v52 = vmax.f32 %v352_v44, 0.0  ;;  %v361_v53 = vmax.f32 %v353_v45, 0.0  ;;  %v344_v54 = vadd.f32 %v336_v38, %v308_v46  ;;  %v298_v55 = vmul.f32 %v576_v0, %v473_v47 }
  0x1a   : > { %v362_v56 = vmax.f32 %v354_v48, 0.0  ;;  %v363_v57 = vmax.f32 %v355_v49, 0.0  ;;  %v345_v58 = vadd.f32 %v337_v43, %v309_v50  ;;  %v338_v59 = vmul.f32 %v581_v1, %v489_v51 }
  0x1b   : > { %368 = vst [vmem:[%s620_s17] sm:$0xff] %v360_v52  ;;  %v356_v60 = vadd.f32 %v508_v26, %v344_v54  ;;  %v310_v61 = vadd.f32 %v589_v6, %v298_v55  ;;  %v474_v62 = vunpack.c.h.bf16 %v493_v34  ;;  %v490_v63 = vunpack.c.h.bf16 %v496_v39 }
  0x1c   : > { %369 = vst [vmem:[%s620_s17 + $0x8] sm:$0xff] %v361_v53  ;;  %v357_v2 = vadd.f32 %v508_v26, %v345_v58 }
  0x1d   : > { %370 = vst [vmem:[%s620_s17 + $0x10] sm:$0xff] %v362_v56  ;;  %v364_v3 = vmax.f32 %v356_v60, 0.0  ;;  %v346_v4 = vadd.f32 %v338_v59, %v310_v61  ;;  %v299_v5 = vmul.f32 %v576_v0, %v474_v62  ;;  %v339_v7 = vmul.f32 %v581_v1, %v490_v63 }
  0x1e   : > { %371 = vst [vmem:[%s620_s17 + $0x18] sm:$0xff] %v363_v57  ;;  %v365_v8 = vmax.f32 %v357_v2, 0.0 }
  0x1f   : > { %372 = vst [vmem:[%s620_s17 + $0x20] sm:$0xff] %v364_v3  ;;  %v358_v9 = vadd.f32 %v508_v26, %v346_v4  ;;  %v311_v10 = vadd.f32 %v589_v6, %v299_v5 }
  0x20   : > { %373 = vst [vmem:[%s620_s17 + $0x28] sm:$0xff] %v365_v8 }
  0x21   : > { %v366_v11 = vmax.f32 %v358_v9, 0.0  ;;  %v347_v12 = vadd.f32 %v339_v7, %v311_v10 }
  0x23   : > { %374 = vst [vmem:[%s620_s17 + $0x30] sm:$0xff] %v366_v11  ;;  %v359_v13 = vadd.f32 %v508_v26, %v347_v12 }
  0x25   : > { %v367_v14 = vmax.f32 %v359_v13, 0.0 }
  0x27   : > { %375 = vst [vmem:[%s620_s17 + $0x38] sm:$0xff] %v367_v14 }
  0x28 PF: > { %s16_s21 = sadd.s32 1, %s515_s21  }
  0x29   : > { %p13_p4 = scmp.ge.s32.totalorder %s16_s21, 4  }
  0x2b   :  { %15 = sbr.rel (!%p13_p4) target bundleno = 1 (0x1), region = 77 }

// kernel: basic_block_forward.3
= control target key start
LH: loop header
LB: loop body
LE: loop exit
PB: predicated region body
PF: predicated region fallthrough
CT: control target
= control target key end

     0   :  { %s1738_s21 = smov 0   ;;  %s2135_s0 = inlined_call_operand.vmem [shape: bf16[2,36,9,8], index: 0, kind: input, shape index: {}]   ;;  %s2136_s1 = inlined_call_operand.vmem [shape: bf16[72,128], index: 1, kind: input, shape index: {}]   ;;  %s2137_s2 = inlined_call_operand.vmem [shape: bf16[8,128], index: 2, kind: input, shape index: {}]   ;;  %s2138_s3 = inlined_call_operand.vmem [shape: bf16[2,64,128], index: 3, kind: output, shape index: {0}]   ;;  %s2139_s4 = inlined_call_operand.vmem [shape: f32[2,2,128], index: 4, kind: output, shape index: {1}]   ;;  %s2140_s5 = inlined_call_operand.vmem [shape: bf16[2,64,128], index: 5, kind: output, shape index: {2}]   ;;  %s2141_s6 = inlined_call_operand.vmem [shape: f32[2,2,128], index: 6, kind: output, shape index: {3}]  }
   0x1 LB: > { %s1462_s22 = sadd.s32 4294967295, %s1693_s21   ;;  %p1466_p0 = scmp.ge.s32.totalorder %s1693_s21, 1  ;;  %s1693_s21 = sphi %s1738_s21, %s17_s21  }
   0x2   : > { %p219_p1 = scmp.lt.s32.totalorder %s1693_s21, 3 }
   0x4   : > { %p220_p2 = pnand %p1466_p0, %p219_p1 }
   0x5   : > { %p262_p3 = scmp.lt.s32.totalorder (!%p220_p2), %s1462_s22, 1  ;;  %s1695_s27 = smov (!%p220_p2), 8  }
   0x6   : > { %223 = sbr.rel (%p220_p2) target bundleno = 465 (0x1d1), region = 32  ;;  %s1696_s28 = smov (!%p220_p2), 24  }
   0x7   : > { %s1697_s29 = smov (!%p220_p2), 16   ;;  %s1698_s30 = smov (!%p220_p2), 32  }
   0x8   : > { %s1699_s7 = smov (!%p220_p2), 40   ;;  %s1700_s8 = smov (!%p220_p2), 48  }
   0x9   : > { %s1701_s9 = smov (!%p220_p2), 56   ;;  %s1702_s10 = smov (!%p220_p2), 64  }
   0xb   : > { %s2145_s22 = smov (!%p262_p3, %s1462_s22), 1  ;;  %vm369_vm0 = vsmask.f32 3328  ;;  %vm370_vm1 = vsmask.f32 7440  ;;  %vm294_vm3 = vcmask 60416  }
   0xc   : > { %s1670_s23 = smul.u32 288, %s2145_s22  ;;  %vm1767_vm2 = vmor %vm369_vm0, %vm370_vm1  ;;  %vm344_vm4 = vcmask 126016   ;;  %vm508_vm5 = vcmask 191616   ;;  %vm558_vm6 = vcmask 257216   ;;  %vm608_vm7 = vcmask 322816   ;;  %s1604_s25 = sshll.u32 %s2145_s22, 5 }
   0xd   : > { %vm769_vm8 = vcmask 388416   ;;  %vm1116_vm9 = vcmask 1043456   ;;  %vm819_vm10 = vcmask 454016   ;;  %vm869_vm11 = vcmask 519616  }
   0xe   : > { %s1752_s26 = scalar_lea.vmem %s2135_s0, %s1670_s23  ;;  %vm1030_vm12 = vcmask 585216   ;;  %vm1215_vm13 = vcmask 64512   ;;  %vm1103_vm14 = vcmask 588800   ;;  %vm1199_vm15 = vcmask 1040384  }
   0xf   : > { %v1474_v0 = vld [vmem:[%s1752_s26 + $0x48] sm:$0xf]  ;;  %v1483_v1 = vld [vmem:[%s1752_s26 + $0x98] sm:$0xf]  ;;  %v353_v2 = vld [vmem:[%s1752_s26] sm:$0xf] }
  0x10   : > { %320 = vrot.lane.b32.xlu0 %v1474_v0, %s1695_s27  ;;  %536 = vrot.lane.b32.xlu1 %v1483_v1, %s1696_s28  ;;  %v354_v3 = vld [vmem:[%s1752_s26 + $0x4] sm:$0x1]  ;;  %v373_v4 = vshrl.u32 %v353_v2, 16  ;;  %v376_v5 = vshll.u32 %v353_v2, 16  ;;  %v355_v7 = vld [vmem:[%s1752_s26 + $0x8] sm:$0xf] }
  0x11   : > { %v382_v6 = vshll.u32 %v354_v3, 16  ;;  %v363_v8 = vld [vmem:[%s1752_s26 + $0x28] sm:$0xf]  ;;  %v356_v11 = vld [vmem:[%s1752_s26 + $0xc] sm:$0x1]  ;;  %v387_v12 = vshrl.u32 %v355_v7, 16 }
  0x12   : > { %v375_v9 = vrot.slane %v373_v4, 4  ;;  %v378_v10 = vrot.slane %v376_v5, 5  ;;  %v1475_v13 = vld [vmem:[%s1752_s26 + $0x50] sm:$0xf]  ;;  %v390_v15 = vshll.u32 %v355_v7, 16  ;;  %v443_v18 = vshrl.u32 %v363_v8, 16 }
  0x13   : > { %v384_v14 = vrot.slane %v382_v6, 5  ;;  %v389_v17 = vrot.slane %v387_v12, 4  ;;  %v446_v19 = vshll.u32 %v363_v8, 16  ;;  %v1478_v20 = vld [vmem:[%s1752_s26 + $0x68] sm:$0xf]  ;;  %v396_v23 = vshll.u32 %v356_v11, 16 }
  0x14   : > { %v379_v16 = vor.u32 %v378_v10, %v375_v9  ;;  %v392_v22 = vrot.slane %v390_v15, 5  ;;  %328 = vrot.lane.b32.xlu2 %v1478_v20, %s1695_s27  ;;  %v445_v27 = vrot.slane %v443_v18, 4  ;;  %v361_v29 = vld [vmem:[%s1752_s26 + $0x20] sm:$0xf]  ;;  %v362_v30 = vld [vmem:[%s1752_s26 + $0x24] sm:$0x1] }
  0x15   : > { %v448_v28 = vrot.slane %v446_v19, 5  ;;  %v398_v31 = vrot.slane %v396_v23, 5  ;;  %v364_v32 = vld [vmem:[%s1752_s26 + $0x2c] sm:$0x1]  ;;  %v1479_v34 = vld [vmem:[%s1752_s26 + $0x70] sm:$0xf] }
  0x16   : > { %v380_v24 = vrot.slane %v379_v16, 4  ;;  %v393_v25 = vor.u32 %v392_v22, %v389_v17  ;;  %v429_v35 = vshrl.u32 %v361_v29, 16  ;;  %v432_v36 = vshll.u32 %v361_v29, 16  ;;  %v1482_v38 = vld [vmem:[%s1752_s26 + $0x90] sm:$0xf] }
  0x17   : > { %v438_v37 = vshll.u32 %v362_v30, 16  ;;  %v449_v39 = vor.u32 %v448_v28, %v445_v27  ;;  %v452_v40 = vshll.u32 %v364_v32, 16  ;;  %v1498_v46 = vld [vmem:[%s1752_s26 + $0x90] sm:$0xf]  ;;  %v1500_v50 = vld [vmem:[%s1752_s26 + $0x98] sm:$0xf] }
  0x18   : > { %322 = vrot.lane.b32.xlu0 %v1475_v13, %s1695_s27  ;;  %v385_v26 = vsel %vm1767_vm2, %v380_v24, %v384_v14  ;;  %v394_v33 = vrot.slane %v393_v25, 4  ;;  %v431_v41 = vrot.slane %v429_v35, 4  ;;  %v434_v42 = vrot.slane %v432_v36, 5  ;;  %v1490_v57 = vld [vmem:[%s1752_s26 + $0xd8] sm:$0xf] }
  0x19   : > { %484 = vrot.lane.b32.xlu1 %v385_v26, %s1697_s29  ;;  %v440_v45 = vrot.slane %v438_v37, 5  ;;  %v450_v47 = vrot.slane %v449_v39, 4  ;;  %v454_v48 = vrot.slane %v452_v40, 5  ;;  %v634_v52 = vshrl.u32 %v1498_v46, 16  ;;  %v1499_v60 = vld [vmem:[%s1752_s26 + $0x94] sm:$0x1] }
  0x1a   : > { %v399_v43 = vsel %vm1767_vm2, %v394_v33, %v398_v31  ;;  %v435_v44 = vor.u32 %v434_v42, %v431_v41  ;;  %v637_v53 = vshll.u32 %v1498_v46, 16  ;;  %v648_v55 = vshrl.u32 %v1500_v50, 16  ;;  %v1501_v63 = vld [vmem:[%s1752_s26 + $0x9c] sm:$0x1]  ;;  %v1491_v0 = vld [vmem:[%s1752_s26 + $0xe0] sm:$0xf] }
  0x1b   : > { %v455_v54 = vsel %vm1767_vm2, %v450_v47, %v454_v48  ;;  %v651_v56 = vshll.u32 %v1500_v50, 16  ;;  %v636_v58 = vrot.slane %v634_v52, 4  ;;  %v643_v2 = vshll.u32 %v1499_v60, 16  ;;  %v1486_v3 = vld [vmem:[%s1752_s26 + $0xb0] sm:$0xf] }
  0x1c   : > { %330 = vrot.lane.b32.xlu2 %v1479_v34, %s1695_s27  ;;  %v436_v49 = vrot.slane %v435_v44, 4  ;;  %v639_v59 = vrot.slane %v637_v53, 5  ;;  %v650_v61 = vrot.slane %v648_v55, 4  ;;  %v657_v5 = vshll.u32 %v1501_v63, 16  ;;  %v1487_v6 = vld [vmem:[%s1752_s26 + $0xb8] sm:$0xf] }
  0x1d   : > { %v653_v62 = vrot.slane %v651_v56, 5  ;;  %v645_v8 = vrot.slane %v643_v2, 5  ;;  %v1506_v9 = vld [vmem:[%s1752_s26 + $0xb0] sm:$0xf]  ;;  %v1508_v12 = vld [vmem:[%s1752_s26 + $0xb8] sm:$0xf] }
  0x1e   : > { %v441_v51 = vsel %vm1767_vm2, %v436_v49, %v440_v45  ;;  %v640_v1 = vor.u32 %v639_v59, %v636_v58  ;;  %v659_v11 = vrot.slane %v657_v5, 5  ;;  %v690_v14 = vshrl.u32 %v1506_v9, 16  ;;  %v1494_v19 = vld [vmem:[%s1752_s26 + $0xf8] sm:$0xf]  ;;  %v1507_v23 = vld [vmem:[%s1752_s26 + $0xb4] sm:$0x1] }
  0x1f   : > { %v654_v4 = vor.u32 %v653_v62, %v650_v61  ;;  %v693_v15 = vshll.u32 %v1506_v9, 16  ;;  %v704_v17 = vshrl.u32 %v1508_v12, 16  ;;  %v707_v18 = vshll.u32 %v1508_v12, 16  ;;  %v1509_v26 = vld [vmem:[%s1752_s26 + $0xbc] sm:$0x1] }
  0x20   : > { %534 = vrot.lane.b32.xlu0 %v1482_v38, %s1696_s28  ;;  %v641_v7 = vrot.slane %v640_v1, 4  ;;  %v692_v20 = vrot.slane %v690_v14, 4  ;;  %v1495_v27 = vld [vmem:[%s1752_s26 + $0x100] sm:$0xf]  ;;  %v699_v29 = vshll.u32 %v1507_v23, 16  ;;  %v713_v32 = vshll.u32 %v1509_v26, 16 }
  0x21   : > { %486 = vrot.lane.b32.xlu1 %v399_v43, %s1697_s29  ;;  %v655_v10 = vrot.slane %v654_v4, 4  ;;  %v695_v22 = vrot.slane %v693_v15, 5  ;;  %v706_v24 = vrot.slane %v704_v17, 4  ;;  %v709_v25 = vrot.slane %v707_v18, 5  ;;  %v1514_v30 = vld [vmem:[%s1752_s26 + $0x8] sm:$0xf] }
  0x22   : > { %v646_v13 = vsel %vm1767_vm2, %v641_v7, %v645_v8  ;;  %v1515_v33 = vld [vmem:[%s1752_s26 + $0x10] sm:$0xf]  ;;  %v701_v35 = vrot.slane %v699_v29, 5  ;;  %v1530_v36 = vld [vmem:[%s1752_s26 + $0x8] sm:$0xf]  ;;  %v715_v38 = vrot.slane %v713_v32, 5 }
  0x23   : > { %v660_v16 = vsel %vm1767_vm2, %v655_v10, %v659_v11  ;;  %v696_v28 = vor.u32 %v695_v22, %v692_v20  ;;  %v710_v31 = vor.u32 %v709_v25, %v706_v24  ;;  %v1532_v39 = vld [vmem:[%s1752_s26 + $0x10] sm:$0xf]  ;;  %v895_v41 = vshrl.u32 %v1530_v36, 16  ;;  %v1531_v49 = vld [vmem:[%s1752_s26 + $0xc] sm:$0x1] }
  0x24   : > { %492 = vrot.lane.b32.xlu2 %v441_v51, %s1697_s29  ;;  %v898_v42 = vshll.u32 %v1530_v36, 16  ;;  %v909_v44 = vshrl.u32 %v1532_v39, 16  ;;  %v912_v45 = vshll.u32 %v1532_v39, 16  ;;  %v1522_v46 = vld [vmem:[%s1752_s26 + $0x50] sm:$0xf]  ;;  %v904_v56 = vshll.u32 %v1531_v49, 16 }
  0x25   : > { %v697_v34 = vrot.slane %v696_v28, 4  ;;  %v711_v37 = vrot.slane %v710_v31, 4  ;;  %v897_v47 = vrot.slane %v895_v41, 4  ;;  %v1533_v52 = vld [vmem:[%s1752_s26 + $0x14] sm:$0x1] }
  0x26   : > { %v900_v48 = vrot.slane %v898_v42, 5  ;;  %v911_v50 = vrot.slane %v909_v44, 4  ;;  %v914_v51 = vrot.slane %v912_v45, 5  ;;  %v1538_v53 = vld [vmem:[%s1752_s26 + $0x28] sm:$0xf]  ;;  %v918_v60 = vshll.u32 %v1533_v52, 16 }
  0x27   : > { %v702_v40 = vsel %vm1767_vm2, %v697_v34, %v701_v35  ;;  %v716_v43 = vsel %vm1767_vm2, %v711_v37, %v715_v38  ;;  %v1518_v58 = vld [vmem:[%s1752_s26 + $0x28] sm:$0xf]  ;;  %v951_v61 = vshrl.u32 %v1538_v53, 16  ;;  %v954_v62 = vshll.u32 %v1538_v53, 16  ;;  %v1519_v63 = vld [vmem:[%s1752_s26 + $0x30] sm:$0xf] }
  0x28   : > { %494 = vrot.lane.b32.xlu0 %v455_v54, %s1697_s29  ;;  %v1523_v54 = vld [vmem:[%s1752_s26 + $0x58] sm:$0xf]  ;;  %v901_v55 = vor.u32 %v900_v48, %v897_v47  ;;  %v915_v59 = vor.u32 %v914_v51, %v911_v50  ;;  %v920_v5 = vrot.slane %v918_v60, 5  ;;  %v1539_v8 = vld [vmem:[%s1752_s26 + $0x2c] sm:$0x1] }
  0x29   : > { %584 = vrot.lane.b32.xlu1 %v1490_v57, %s1698_s30  ;;  %v1540_v57 = vld [vmem:[%s1752_s26 + $0x30] sm:$0xf]  ;;  %v956_v7 = vrot.slane %v954_v62, 5  ;;  %v359_v23 = vld [vmem:[%s1752_s26 + $0x18] sm:$0xf] }
  0x2a   : > { %v968_v1 = vshll.u32 %v1540_v57, 16  ;;  %v902_v2 = vrot.slane %v901_v55, 4  ;;  %v916_v4 = vrot.slane %v915_v59, 4  ;;  %v357_v11 = vld [vmem:[%s1752_s26 + $0x10] sm:$0xf]  ;;  %v415_v31 = vshrl.u32 %v359_v23, 16 }
  0x2b   : > { %v401_v17 = vshrl.u32 %v357_v11, 16  ;;  %v404_v18 = vshll.u32 %v357_v11, 16  ;;  %v418_v32 = vshll.u32 %v359_v23, 16  ;;  %v365_v41 = vld [vmem:[%s1752_s26 + $0x30] sm:$0xf] }
  0x2c   : > { %586 = vrot.lane.b32.xlu2 %v1491_v0, %s1698_s30  ;;  %v965_v0 = vshrl.u32 %v1540_v57, 16  ;;  %v970_v10 = vrot.slane %v968_v1, 5  ;;  %v921_v14 = vsel %vm1767_vm2, %v916_v4, %v920_v5  ;;  %v417_v38 = vrot.slane %v415_v31, 4  ;;  %v286_v44 = vld [vmem:[%s1752_s26] sm:$0xf] }
  0x2d   : > { %v403_v26 = vrot.slane %v401_v17, 4  ;;  %v420_v39 = vrot.slane %v418_v32, 5  ;;  %295 = vst.msk [vmem:[#allocation2] sm:$0xf] %vm294_vm3, %v286_v44  ;;  %v290_v48 = vld [vmem:[%s1752_s26 + $0x20] sm:$0xf] }
  0x2e   : > { %v967_v9 = vrot.slane %v965_v0, 4  ;;  %299 = vst.msk [vmem:[#allocation2 + $0x10] sm:$0xf] %vm294_vm3, %v290_v48  ;;  %v1477_v49 = vld [vmem:[%s1752_s26 + $0x60] sm:$0xf]  ;;  %v457_v50 = vshrl.u32 %v365_v41, 16 }
  0x2f   : > { %v460_v51 = vshll.u32 %v365_v41, 16  ;;  %v367_v55 = vld [vmem:[%s1752_s26 + $0x38] sm:$0xf]  ;;  %v366_v62 = vld [vmem:[%s1752_s26 + $0x34] sm:$0x1] }
  0x30   : > { %542 = vrot.lane.b32.xlu0 %v1486_v3, %s1696_s28  ;;  %v906_v3 = vrot.slane %v904_v56, 5  ;;  %v971_v20 = vor.u32 %v970_v10, %v967_v9  ;;  %v459_v56 = vrot.slane %v457_v50, 4  ;;  %v471_v60 = vshrl.u32 %v367_v55, 16  ;;  %v291_v0 = vld [vmem:[%s1752_s26 + $0x28] sm:$0xf] }
  0x31   : > { %544 = vrot.lane.b32.xlu1 %v1487_v6, %s1696_s28  ;;  %v953_v6 = vrot.slane %v951_v61, 4  ;;  %v462_v57 = vrot.slane %v460_v51, 5  ;;  %v474_v61 = vshll.u32 %v367_v55, 16  ;;  %300 = vst.msk [vmem:[#allocation2 + $0x14] sm:$0xf] %vm294_vm3, %v291_v0 }
  0x32   : > { %v907_v12 = vsel %vm1767_vm2, %v902_v2, %v906_v3  ;;  %v972_v28 = vrot.slane %v971_v20, 4  ;;  %v1481_v2 = vld [vmem:[%s1752_s26 + $0x80] sm:$0xf]  ;;  %v466_v3 = vshll.u32 %v366_v62, 16  ;;  %v473_v4 = vrot.slane %v471_v60, 4 }
  0x33   : > { %v957_v15 = vor.u32 %v956_v7, %v953_v6  ;;  %v463_v1 = vor.u32 %v462_v57, %v459_v56  ;;  %v476_v5 = vrot.slane %v474_v61, 5  ;;  %v368_v7 = vld [vmem:[%s1752_s26 + $0x3c] sm:$0x1]  ;;  %v1502_v10 = vld [vmem:[%s1752_s26 + $0xa0] sm:$0xf] }
  0x34   : > { %745 = vrot.lane.b32.xlu2 %v646_v13, %s1699_s7  ;;  %v1541_v13 = vld [vmem:[%s1752_s26 + $0x34] sm:$0x1]  ;;  %v468_v9 = vrot.slane %v466_v3, 5  ;;  %v1484_v11 = vld [vmem:[%s1752_s26 + $0xa0] sm:$0xf]  ;;  %v665_v17 = vshll.u32 %v1502_v10, 16 }
  0x35   : > { %v974_v22 = vshll.u32 %v1541_v13, 16  ;;  %v958_v24 = vrot.slane %v957_v15, 4  ;;  %v480_v13 = vshll.u32 %v368_v7, 16  ;;  %v662_v15 = vshrl.u32 %v1502_v10, 16  ;;  %v1493_v31 = vld [vmem:[%s1752_s26 + $0xf0] sm:$0xf] }
  0x36   : > { %v1511_v60 = vld [vmem:[%s1752_s26 + $0xc4] sm:$0x1]  ;;  %v1496_v61 = vld [vmem:[%s1752_s26 + $0x108] sm:$0xf]  ;;  %v1534_v7 = vld [vmem:[%s1752_s26 + $0x18] sm:$0xf] }
  0x37   : > { %v976_v29 = vrot.slane %v974_v22, 5  ;;  %v1504_v22 = vld [vmem:[%s1752_s26 + $0xa8] sm:$0xf]  ;;  %v664_v23 = vrot.slane %v662_v15, 4  ;;  %v727_v0 = vshll.u32 %v1511_v60, 16  ;;  %v926_v15 = vshll.u32 %v1534_v7, 16 }
  0x38   : > { %747 = vrot.lane.b32.xlu0 %v660_v16, %s1699_s7  ;;  %v960_v16 = vshll.u32 %v1539_v8, 16  ;;  %v464_v8 = vrot.slane %v463_v1, 4 }
  0x39   : > { %592 = vrot.lane.b32.xlu1 %v1494_v19, %s1698_s30  ;;  %v1526_v19 = vld [vmem:[%s1752_s26 + $0x70] sm:$0xf]  ;;  %v977_v36 = vsel %vm1767_vm2, %v972_v28, %v976_v29  ;;  %v679_v28 = vshll.u32 %v1504_v22, 16  ;;  %v1492_v29 = vld [vmem:[%s1752_s26 + $0xe8] sm:$0xf] }
  0x3a   : > { %v962_v25 = vrot.slane %v960_v16, 5  ;;  %v469_v16 = vsel %vm1767_vm2, %v464_v8, %v468_v9  ;;  %v729_v8 = vrot.slane %v727_v0, 5  ;;  %v1516_v9 = vld [vmem:[%s1752_s26 + $0x18] sm:$0xf] }
  0x3c   : > { %594 = vrot.lane.b32.xlu2 %v1495_v27, %s1698_s30  ;;  %v406_v27 = vrot.slane %v404_v18, 5  ;;  %v963_v34 = vsel %vm1767_vm2, %v958_v24, %v962_v25  ;;  %v1503_v24 = vld [vmem:[%s1752_s26 + $0xa4] sm:$0x1]  ;;  %v667_v25 = vrot.slane %v665_v17, 5 }
  0x3e   : > { %v407_v35 = vor.u32 %v406_v27, %v403_v26  ;;  %v676_v27 = vshrl.u32 %v1504_v22, 16  ;;  %v668_v32 = vor.u32 %v667_v25, %v664_v23 }
  0x40   : > { %795 = vrot.lane.b32.xlu0 %v1514_v30, %s1700_s8  ;;  %v1527_v30 = vld [vmem:[%s1752_s26 + $0x78] sm:$0xf]  ;;  %v408_v42 = vrot.slane %v407_v35, 4  ;;  %v669_v41 = vrot.slane %v668_v32, 4 }
  0x41   : > { %797 = vrot.lane.b32.xlu1 %v1515_v33, %s1700_s8  ;;  %v358_v33 = vld [vmem:[%s1752_s26 + $0x14] sm:$0x1] }
  0x42   : > { %v410_v37 = vshll.u32 %v358_v33, 16  ;;  %v678_v33 = vrot.slane %v676_v27, 4 }
  0x44   : > { %753 = vrot.lane.b32.xlu2 %v702_v40, %s1699_s7  ;;  %v360_v40 = vld [vmem:[%s1752_s26 + $0x1c] sm:$0x1]  ;;  %v412_v45 = vrot.slane %v410_v37, 5 }
  0x45   : > { %v424_v47 = vshll.u32 %v360_v40, 16  ;;  %v1510_v40 = vld [vmem:[%s1752_s26 + $0xc0] sm:$0xf] }
  0x46   : > { %v413_v52 = vsel %vm1767_vm2, %v408_v42, %v412_v45  ;;  %v1488_v42 = vld [vmem:[%s1752_s26 + $0xc0] sm:$0xf]  ;;  %v1489_v45 = vld [vmem:[%s1752_s26 + $0xc8] sm:$0xf] }
  0x48   : > { %755 = vrot.lane.b32.xlu0 %v716_v43, %s1699_s7  ;;  %v1476_v43 = vld [vmem:[%s1752_s26 + $0x58] sm:$0xf] }
  0x49   : > { %845 = vrot.lane.b32.xlu1 %v1522_v46, %s1701_s9  ;;  %v421_v46 = vor.u32 %v420_v39, %v417_v38 }
  0x4b   : > { %v422_v53 = vrot.slane %v421_v46, 4  ;;  %v718_v46 = vshrl.u32 %v1510_v40, 16 }
  0x4c   : > { %847 = vrot.lane.b32.xlu2 %v1523_v54, %s1701_s9  ;;  %v426_v54 = vrot.slane %v424_v47, 5  ;;  %v721_v47 = vshll.u32 %v1510_v40, 16  ;;  %v1537_v40 = vld [vmem:[%s1752_s26 + $0x24] sm:$0x1] }
  0x4e   : > { %v427_v59 = vsel %vm1767_vm2, %v422_v53, %v426_v54  ;;  %v720_v54 = vrot.slane %v718_v46, 4  ;;  %v723_v55 = vrot.slane %v721_v47, 5  ;;  %v1520_v46 = vld [vmem:[%s1752_s26 + $0x38] sm:$0xf] }
  0x50   : > { %803 = vrot.lane.b32.xlu0 %v1518_v58, %s1700_s8  ;;  %v287_v58 = vld [vmem:[%s1752_s26 + $0x8] sm:$0xf]  ;;  %v724_v62 = vor.u32 %v723_v55, %v720_v54  ;;  %v1616_v54 = vld [vmem:[%s2136_s1 + $0x10] sm:$0xff] }
  0x51   : > { %805 = vrot.lane.b32.xlu1 %v1519_v63, %s1700_s8  ;;  %296 = vst.msk [vmem:[#allocation2 + $0x4] sm:$0xf] %vm294_vm3, %v287_v58  ;;  %v1480_v63 = vld [vmem:[%s1752_s26 + $0x78] sm:$0xf] }
  0x54   : > { %1006 = vrot.lane.b32.xlu2 %v907_v12, %s1702_s10  ;;  %v477_v12 = vor.u32 %v476_v5, %v473_v4  ;;  %v1513_v4 = vld [vmem:[%s1752_s26 + $0xcc] sm:$0x1] }
  0x56   : > { %v478_v18 = vrot.slane %v477_v12, 4 }
  0x58   : > { %1008 = vrot.lane.b32.xlu0 %v921_v14, %s1702_s10  ;;  %v1485_v14 = vld [vmem:[%s1752_s26 + $0xa8] sm:$0xf] }
  0x59   : > { %853 = vrot.lane.b32.xlu1 %v1526_v19, %s1701_s9  ;;  %v482_v19 = vrot.slane %v480_v13, 5  ;;  %v1517_v13 = vld [vmem:[%s1752_s26 + $0x20] sm:$0xf] }
  0x5b   : > { %v483_v26 = vsel %vm1767_vm2, %v478_v18, %v482_v19 }
  0x5c   : > { %855 = vrot.lane.b32.xlu2 %v1527_v30, %s1701_s9  ;;  %v671_v30 = vshll.u32 %v1503_v24, 16  ;;  %v928_v24 = vrot.slane %v926_v15, 5 }
  0x5e   : > { %v673_v39 = vrot.slane %v671_v30, 5  ;;  %v1055_v30 = vld [vmem:[%s2136_s1 + $0x20] sm:$0xf] }
  0x5f   : > { %v1093_v32 = vunpack.c.l.b16 %v1055_v30 }
  0x60   : > { %1014 = vrot.lane.b32.xlu0 %v963_v34, %s1702_s10  ;;  %v681_v34 = vrot.slane %v679_v28, 5  ;;  %v674_v48 = vsel %vm1767_vm2, %v669_v41, %v673_v39 }
  0x61   : > { %1016 = vrot.lane.b32.xlu1 %v977_v36, %s1702_s10  ;;  %v1505_v36 = vld [vmem:[%s1752_s26 + $0xac] sm:$0x1] }
  0x62   : > { %v685_v44 = vshll.u32 %v1505_v36, 16 }
  0x64   : > { %324 = vrot.lane.b32.xlu2 %v1476_v43, %s1695_s27  ;;  %v682_v43 = vor.u32 %v681_v34, %v678_v33  ;;  %v687_v50 = vrot.slane %v685_v44, 5  ;;  %v1525_v34 = vld [vmem:[%s1752_s26 + $0x68] sm:$0xf]  ;;  %v1544_v44 = vld [vmem:[%s1752_s26 + $0x40] sm:$0xf] }
  0x68   : > { %326 = vrot.lane.b32.xlu0 %v1477_v49, %s1695_s27  ;;  %v683_v49 = vrot.slane %v682_v43, 4 }
  0x69   : > { %488 = vrot.lane.b32.xlu1 %v413_v52, %s1697_s29  ;;  %v1512_v52 = vld [vmem:[%s1752_s26 + $0xc8] sm:$0xf] }
  0x6a   : > { %v688_v56 = vsel %vm1767_vm2, %v683_v49, %v687_v50  ;;  %v732_v57 = vshrl.u32 %v1512_v52, 16  ;;  %v735_v58 = vshll.u32 %v1512_v52, 16  ;;  %v1617_v50 = vld [vmem:[%s2136_s1 + $0x18] sm:$0xff]  ;;  %v993_v52 = vshrl.u32 %v1544_v44, 16 }
  0x6c   : > { %490 = vrot.lane.b32.xlu2 %v427_v59, %s1697_s29  ;;  %v734_v1 = vrot.slane %v732_v57, 4 }
  0x6e   : > { %v329_v6 = vpop.permute.xlu2 %328 }
  0x6f   : > { %349 = vst.msk [vmem:[#allocation2 + $0x10] sm:$0xf] %vm344_vm4, %v329_v6  ;;  %v725_v6 = vrot.slane %v724_v62, 4  ;;  %v995_v62 = vrot.slane %v993_v52, 4 }
  0x70   : > { %332 = vrot.lane.b32.xlu0 %v1480_v63, %s1695_s27  ;;  %v1497_v63 = vld [vmem:[%s1752_s26 + $0x110] sm:$0xf] }
  0x71   : > { %334 = vrot.lane.b32.xlu1 %v1481_v2, %s1695_s27  ;;  %v737_v2 = vrot.slane %v735_v58, 5  ;;  %v1542_v58 = vld [vmem:[%s1752_s26 + $0x38] sm:$0xf] }
  0x72   : > { %v979_v60 = vshrl.u32 %v1542_v58, 16 }
  0x73   : > { %v738_v10 = vor.u32 %v737_v2, %v734_v1  ;;  %v1545_v1 = vld [vmem:[%s1752_s26 + $0x44] sm:$0x1] }
  0x74   : > { %538 = vrot.lane.b32.xlu2 %v1484_v11, %s1696_s28  ;;  %v741_v11 = vshll.u32 %v1513_v4, 16  ;;  %v981_v2 = vrot.slane %v979_v60, 4  ;;  %v1596_v60 = vld [vmem:[%s1752_s26 + $0x108] sm:$0xf] }
  0x75   : > { %v739_v17 = vrot.slane %v738_v10, 4  ;;  %v1528_v10 = vld [vmem:[%s1752_s26 + $0x80] sm:$0xf] }
  0x76   : > { %v331_v20 = vpop.permute.xlu2 %330  ;;  %v743_v18 = vrot.slane %v741_v11, 5 }
  0x77   : > { %350 = vst.msk [vmem:[#allocation2 + $0x14] sm:$0xf] %vm344_vm4, %v331_v20  ;;  %v1536_v20 = vld [vmem:[%s1752_s26 + $0x20] sm:$0xf] }
  0x78   : > { %540 = vrot.lane.b32.xlu0 %v1485_v14, %s1696_s28  ;;  %v923_v14 = vshrl.u32 %v1534_v7, 16  ;;  %v744_v25 = vsel %vm1767_vm2, %v739_v17, %v743_v18  ;;  %v940_v27 = vshll.u32 %v1536_v20, 16  ;;  %v1615_v7 = vld [vmem:[%s2136_s1 + $0x8] sm:$0xff] }
  0x79   : > { %496 = vrot.lane.b32.xlu1 %v469_v16, %s1697_s29  ;;  %v730_v16 = vsel %vm1767_vm2, %v725_v6, %v729_v8 }
  0x7a   : > { %v925_v23 = vrot.slane %v923_v14, 4  ;;  %v1529_v14 = vld [vmem:[%s1752_s26 + $0x88] sm:$0xf] }
  0x7c   : > { %498 = vrot.lane.b32.xlu2 %v483_v26, %s1697_s29  ;;  %v937_v26 = vshrl.u32 %v1536_v20, 16  ;;  %v929_v33 = vor.u32 %v928_v24, %v925_v23 }
  0x7e   : > { %v493_v35 = vpop.permute.xlu2 %492  ;;  %v939_v36 = vrot.slane %v937_v26, 4  ;;  %v930_v43 = vrot.slane %v929_v33, 4  ;;  %v293_v33 = vld [vmem:[%s1752_s26 + $0x38] sm:$0xf] }
  0x7f   : > { %513 = vst.msk [vmem:[#allocation2 + $0x10] sm:$0xf] %vm508_vm5, %v493_v35 }
  0x80   : > { %588 = vrot.lane.b32.xlu0 %v1492_v29, %s1698_s30  ;;  %v1535_v29 = vld [vmem:[%s1752_s26 + $0x1c] sm:$0x1]  ;;  %302 = vst.msk [vmem:[#allocation2 + $0x1c] sm:$0xf] %vm294_vm3, %v293_v33 }
  0x81   : > { %590 = vrot.lane.b32.xlu1 %v1493_v31, %s1698_s30  ;;  %v1524_v31 = vld [vmem:[%s1752_s26 + $0x60] sm:$0xf]  ;;  %v932_v35 = vshll.u32 %v1535_v29, 16 }
  0x82   : > { %v321_v37 = vpop.permute.xlu0 %320  ;;  %v537_v38 = vpop.permute.xlu1 %536 }
  0x83   : > { %345 = vst.msk [vmem:[#allocation2] sm:$0xf] %vm344_vm4, %v321_v37  ;;  %v942_v37 = vrot.slane %v940_v27, 5 }
  0x84   : > { %546 = vrot.lane.b32.xlu2 %v1488_v42, %s1696_s28 }
  0x85   : > { %v943_v47 = vor.u32 %v942_v37, %v939_v36 }
  0x86   : > { %v587_v51 = vpop.permute.xlu2 %586 }
  0x88   : > { %548 = vrot.lane.b32.xlu0 %v1489_v45, %s1696_s28  ;;  %v934_v45 = vrot.slane %v932_v35, 5  ;;  %s2082_s28 = scalar_lea.vmem %s2140_s5, %s1604_s25 }
  0x89   : > { %749 = vrot.lane.b32.xlu1 %v674_v48, %s1699_s7  ;;  %v946_v48 = vshll.u32 %v1537_v40, 16 }
  0x8a   : > { %v323_v53 = vpop.permute.xlu0 %322  ;;  %v935_v55 = vsel %vm1767_vm2, %v930_v43, %v934_v45 }
  0x8b   : > { %346 = vst.msk [vmem:[#allocation2 + $0x4] sm:$0xf] %vm344_vm4, %v323_v53  ;;  %v485_v59 = vpop.permute.xlu1 %484  ;;  %v996_v53 = vshll.u32 %v1544_v44, 16  ;;  %v948_v57 = vrot.slane %v946_v48, 5  ;;  %v1592_v48 = vld [vmem:[%s1752_s26 + $0xf8] sm:$0xf] }
  0x8c   : > { %509 = vst.msk [vmem:[#allocation2] sm:$0xf] %vm508_vm5, %v485_v59  ;;  %751 = vrot.lane.b32.xlu2 %v688_v56, %s1699_s7  ;;  %v944_v56 = vrot.slane %v943_v47, 4 }
  0x8e   : > { %v746_v3 = vpop.permute.xlu2 %745  ;;  %v949_v4 = vsel %vm1767_vm2, %v944_v56, %v948_v57  ;;  %v1584_v56 = vld [vmem:[%s1752_s26 + $0xd8] sm:$0xf]  ;;  %v1606_v57 = vld [vmem:[%s1752_s26 + $0xdc] sm:$0xf0] }
  0x90   : > { %596 = vrot.lane.b32.xlu0 %v1496_v61, %s1698_s30  ;;  %v982_v61 = vshll.u32 %v1542_v58, 16  ;;  %v1585_v58 = vor.u32 %v1606_v57, %v1584_v56 }
  0x91   : > { %598 = vrot.lane.b32.xlu1 %v1497_v63, %s1698_s30  ;;  %v998_v63 = vrot.slane %v996_v53, 5 }
  0x92   : > { %v535_v5 = vpop.permute.xlu0 %534 }
  0x93   : > { %559 = vst.msk [vmem:[#allocation2] sm:$0xf] %vm558_vm6, %v535_v5  ;;  %v487_v12 = vpop.permute.xlu1 %486  ;;  %v1543_v5 = vld [vmem:[%s1752_s26 + $0x3c] sm:$0x1]  ;;  %v999_v11 = vor.u32 %v998_v63, %v995_v62 }
  0x94   : > { %510 = vst.msk [vmem:[#allocation2 + $0x4] sm:$0xf] %vm508_vm5, %v487_v12  ;;  %799 = vrot.lane.b32.xlu2 %v1516_v9, %s1700_s8  ;;  %v988_v9 = vshll.u32 %v1543_v5, 16  ;;  %v1002_v12 = vshll.u32 %v1545_v1, 16 }
  0x95   : > { %560 = vst.msk [vmem:[#allocation2 + $0x4] sm:$0xf] %vm558_vm6, %v537_v38  ;;  %v1098_v38 = vpack.c.b16 %v1093_v32, %v1093_v32  ;;  %v1000_v18 = vrot.slane %v999_v11, 4 }
  0x96   : > { %610 = vst.msk [vmem:[#allocation2 + $0x4] sm:$0xf] %vm608_vm7, %v587_v51  ;;  %v595_v19 = vpop.permute.xlu2 %594  ;;  %v1521_v51 = vld [vmem:[%s1752_s26 + $0x40] sm:$0xf] }
  0x97   : > { %v1118_v41 = vsel %vm1116_vm9, %v1098_v38, 0  ;;  %v1588_v38 = vld [vmem:[%s1752_s26 + $0xe8] sm:$0xf] }
  0x98   : > { %801 = vrot.lane.b32.xlu0 %v1517_v13, %s1700_s8  ;;  %1123 = vmatpush.bf16.msra.mxu0 %v1118_v41  ;;  %v1614_v13 = vld [vmem:[%s2136_s1] sm:$0xff] }
  0x99   : > { %757 = vrot.lane.b32.xlu1 %v730_v16, %s1699_s7  ;;  %1664 = vmatpush.bf16.msra.mxu2 %v1118_v41  ;;  %v990_v16 = vrot.slane %v988_v9, 5 }
  0x9a   : > { %v495_v22 = vpop.permute.xlu0 %494 }
  0x9b   : > { %514 = vst.msk [vmem:[#allocation2 + $0x14] sm:$0xf] %vm508_vm5, %v495_v22  ;;  %v585_v28 = vpop.permute.xlu1 %584 }
  0x9c   : > { %609 = vst.msk [vmem:[#allocation2] sm:$0xf] %vm608_vm7, %v585_v28  ;;  %759 = vrot.lane.b32.xlu2 %v744_v25, %s1699_s7  ;;  %1124 = vmatpush.bf16.msra.mxu0 %v1617_v50  ;;  %v288_v25 = vld [vmem:[%s1752_s26 + $0x10] sm:$0xf]  ;;  %v289_v28 = vld [vmem:[%s1752_s26 + $0x18] sm:$0xf]  ;;  %s2087_s7 = scalar_lea.vmem %s2138_s3, %s1604_s25 }
  0x9d   : > { %770 = vst.msk [vmem:[#allocation2] sm:$0xf] %vm769_vm8, %v746_v3  ;;  %1665 = vmatpush.bf16.msra.mxu2 %v1617_v50  ;;  %v984_v3 = vrot.slane %v982_v61, 5  ;;  %v1609_v61 = vld [vmem:[%s1752_s26 + $0x10c] sm:$0xf0] }
  0x9e   : > { %v754_v39 = vpop.permute.xlu2 %753  ;;  %297 = vst.msk [vmem:[#allocation2 + $0x8] sm:$0xf] %vm294_vm3, %v288_v25  ;;  %v1597_v63 = vor.u32 %v1609_v61, %v1596_v60 }
  0x9f   : > { %v985_v8 = vor.u32 %v984_v3, %v981_v2  ;;  %298 = vst.msk [vmem:[#allocation2 + $0xc] sm:$0xf] %vm294_vm3, %v289_v28 }
  0xa0   : > { %849 = vrot.lane.b32.xlu0 %v1524_v31, %s1701_s9  ;;  %1125 = vmatpush.bf16.msra.mxu0 %v1616_v54  ;;  %v292_v31 = vld [vmem:[%s1752_s26 + $0x30] sm:$0xf] }
  0xa1   : > { %851 = vrot.lane.b32.xlu1 %v1525_v34, %s1701_s9  ;;  %1666 = vmatpush.bf16.msra.mxu2 %v1616_v54  ;;  %v986_v15 = vrot.slane %v985_v8, 4  ;;  %301 = vst.msk [vmem:[#allocation2 + $0x18] sm:$0xf] %vm294_vm3, %v292_v31  ;;  %v1202_v34 = vld [vmem:[%s2137_s2] sm:$0xf] }
  0xa2   : > { %v543_v42 = vpop.permute.xlu0 %542  ;;  %v1229_v35 = vsel %vm1116_vm9, %v1202_v34, 0 }
  0xa3   : > { %563 = vst.msk [vmem:[#allocation2 + $0x10] sm:$0xf] %vm558_vm6, %v543_v42  ;;  %v545_v49 = vpop.permute.xlu1 %544  ;;  %v991_v22 = vsel %vm1767_vm2, %v986_v15, %v990_v16  ;;  %1669 = vmatpush.bf16.msra.mxu3 %v1229_v35  ;;  %1238 = vmatpush.bf16.msra.mxu1 %v1229_v35 }
  0xa4   : > { %564 = vst.msk [vmem:[#allocation2 + $0x14] sm:$0xf] %vm558_vm6, %v545_v49  ;;  %807 = vrot.lane.b32.xlu2 %v1520_v46, %s1700_s8  ;;  %1126 = vmatpush.bf16.msra.mxu0 %v1615_v7  ;;  %v1608_v49 = vld [vmem:[%s1752_s26 + $0xfc] sm:$0xf0] }
  0xa5   : > { %614 = vst.msk [vmem:[#allocation2 + $0x14] sm:$0xf] %vm608_vm7, %v595_v19  ;;  %1667 = vmatpush.bf16.msra.mxu2 %v1615_v7  ;;  %v1004_v19 = vrot.slane %v1002_v12, 5  ;;  %v1593_v50 = vor.u32 %v1608_v49, %v1592_v48 }
  0xa6   : > { %v848_v59 = vpop.permute.xlu2 %847  ;;  %1598 = vmatmul.msk.bf16.vlgmr.msra.gmra.mxu1 %vm1215_vm13, %v1585_v58 }
  0xa7   : > { %v1005_v24 = vsel %vm1767_vm2, %v1000_v18, %v1004_v19 }
  0xa8   : > { %809 = vrot.lane.b32.xlu0 %v1521_v51, %s1700_s8  ;;  %1127 = vmatpush.bf16.msra.mxu0 %v1614_v13  ;;  %s1470_s8 = sshll.u32 %s2145_s22, 1 }
  0xa9   : > { %1010 = vrot.lane.b32.xlu1 %v935_v55, %s1702_s10  ;;  %1668 = vmatpush.bf16.msra.mxu2 %v1614_v13  ;;  %s284_s11 = scalar_lea.vmem %s2141_s6, %s1470_s8  ;;  %s275_s14 = scalar_lea.vmem %s2139_s4, %s1470_s8 }
  0xaa   : > { %v748_v0 = vpop.permute.xlu0 %747 }
  0xab   : > { %771 = vst.msk [vmem:[#allocation2 + $0x4] sm:$0xf] %vm769_vm8, %v748_v0  ;;  %v593_v6 = vpop.permute.xlu1 %592 }
  0xac   : > { %613 = vst.msk [vmem:[#allocation2 + $0x10] sm:$0xf] %vm608_vm7, %v593_v6  ;;  %1012 = vrot.lane.b32.xlu2 %v949_v4, %s1702_s10 }
  0xad   : > { %774 = vst.msk [vmem:[#allocation2 + $0x10] sm:$0xf] %vm769_vm8, %v754_v39  ;;  %v1607_v39 = vld [vmem:[%s1752_s26 + $0xec] sm:$0xf0] }
  0xae   : > { %v1007_v17 = vpop.permute.xlu2 %1006  ;;  %v1589_v40 = vor.u32 %v1607_v39, %v1588_v38 }
  0xb0   : > { %857 = vrot.lane.b32.xlu0 %v1528_v10, %s1701_s9  ;;  %1599 = vmatmul.msk.bf16.vlgmr.msra.gmra.mxu3 %vm1215_vm13, %v1589_v40 }
  0xb1   : > { %859 = vrot.lane.b32.xlu1 %v1529_v14, %s1701_s9 }
  0xb2   : > { %v796_v20 = vpop.permute.xlu0 %795 }
  0xb3   : > { %820 = vst.msk [vmem:[#allocation2] sm:$0xf] %vm819_vm10, %v796_v20  ;;  %v798_v23 = vpop.permute.xlu1 %797 }
  0xb4   : > { %821 = vst.msk [vmem:[#allocation2 + $0x4] sm:$0xf] %vm819_vm10, %v798_v23  ;;  %1018 = vrot.lane.b32.xlu2 %v991_v22, %s1702_s10 }
  0xb5   : > { %871 = vst.msk [vmem:[#allocation2 + $0x4] sm:$0xf] %vm869_vm11, %v848_v59 }
  0xb6   : > { %v856_v26 = vpop.permute.xlu2 %855 }
  0xb8   : > { %1020 = vrot.lane.b32.xlu0 %v1005_v24, %s1702_s10 }
  0xba   : > { %v756_v27 = vpop.permute.xlu0 %755 }
  0xbb   : > { %775 = vst.msk [vmem:[#allocation2 + $0x14] sm:$0xf] %vm769_vm8, %v756_v27  ;;  %v846_v29 = vpop.permute.xlu1 %845 }
  0xbc   : > { %870 = vst.msk [vmem:[#allocation2] sm:$0xf] %vm869_vm11, %v846_v29 }
  0xbd   : > { %1031 = vst.msk [vmem:[#allocation2] sm:$0xf] %vm1030_vm12, %v1007_v17 }
  0xbe   : > { %v325_v21 = vpop.permute.xlu2 %324 }
  0xbf   : > { %347 = vst.msk [vmem:[#allocation2 + $0x8] sm:$0xf] %vm344_vm4, %v325_v21 }
  0xc0   : > { %1600 = vmatmul.msk.bf16.gmra.mxu3 %vm1215_vm13, %v1593_v50 }
  0xc2   : > { %v804_v30 = vpop.permute.xlu0 %803 }
  0xc3   : > { %824 = vst.msk [vmem:[#allocation2 + $0x10] sm:$0xf] %vm819_vm10, %v804_v30  ;;  %v806_v32 = vpop.permute.xlu1 %805 }
  0xc4   : > { %825 = vst.msk [vmem:[#allocation2 + $0x14] sm:$0xf] %vm819_vm10, %v806_v32 }
  0xc5   : > { %875 = vst.msk [vmem:[#allocation2 + $0x14] sm:$0xf] %vm869_vm11, %v856_v26 }
  0xc6   : > { %v491_v36 = vpop.permute.xlu2 %490 }
  0xca   : > { %v1009_v37 = vpop.permute.xlu0 %1008 }
  0xcb   : > { %1032 = vst.msk [vmem:[#allocation2 + $0x4] sm:$0xf] %vm1030_vm12, %v1009_v37  ;;  %v854_v41 = vpop.permute.xlu1 %853 }
  0xcc   : > { %874 = vst.msk [vmem:[#allocation2 + $0x10] sm:$0xf] %vm869_vm11, %v854_v41 }
  0xce   : > { %v539_v42 = vpop.permute.xlu2 %538 }
  0xd0   : > { %1601 = vmatmul.msk.bf16.gmra.mxu3 %vm1215_vm13, %v1597_v63 }
  0xd2   : > { %v1015_v43 = vpop.permute.xlu0 %1014  ;;  %v1610_v44 = vld [vmem:[#allocation2] sm:$0xff] }
  0xd3   : > { %1035 = vst.msk [vmem:[#allocation2 + $0x10] sm:$0xf] %vm1030_vm12, %v1015_v43  ;;  %v1017_v45 = vpop.permute.xlu1 %1016  ;;  %1578 = vmatmul.msk.bf16.vlgmr.msra.gmra.mxu0 %vm1103_vm14, %v1610_v44 }
  0xd4   : > { %1036 = vst.msk [vmem:[#allocation2 + $0x14] sm:$0xf] %vm1030_vm12, %v1017_v45 }
  0xd6   : > { %v499_v46 = vpop.permute.xlu2 %498 }
  0xda   : > { %v327_v47 = vpop.permute.xlu0 %326 }
  0xdb   : > { %348 = vst.msk [vmem:[#allocation2 + $0xc] sm:$0xf] %vm344_vm4, %v327_v47  ;;  %v489_v51 = vpop.permute.xlu1 %488  ;;  %v1612_v52 = vld [vmem:[#allocation2 + $0x10] sm:$0xff] }
  0xdc   : > { %512 = vst.msk [vmem:[#allocation2 + $0xc] sm:$0xf] %vm508_vm5, %v491_v36  ;;  %1580 = vmatmul.msk.bf16.vlgmr.msra.gmra.mxu2 %vm1103_vm14, %v1612_v52 }
  0xdd   : > { %511 = vst.msk [vmem:[#allocation2 + $0x8] sm:$0xf] %vm508_vm5, %v489_v51 }
  0xde   : > { %561 = vst.msk [vmem:[#allocation2 + $0x8] sm:$0xf] %vm558_vm6, %v539_v42  ;;  %v547_v53 = vpop.permute.xlu2 %546 }
  0xe2   : > { %v333_v54 = vpop.permute.xlu0 %332 }
  0xe3   : > { %351 = vst.msk [vmem:[#allocation2 + $0x18] sm:$0xf] %vm344_vm4, %v333_v54  ;;  %v335_v55 = vpop.permute.xlu1 %334 }
  0xe4   : > { %352 = vst.msk [vmem:[#allocation2 + $0x1c] sm:$0xf] %vm344_vm4, %v335_v55 }
  0xe5   : > { %516 = vst.msk [vmem:[#allocation2 + $0x1c] sm:$0xf] %vm508_vm5, %v499_v46 }
  0xe6   : > { %v752_v62 = vpop.permute.xlu2 %751 }
  0xea   : > { %v541_v59 = vpop.permute.xlu0 %540 }
  0xeb   : > { %562 = vst.msk [vmem:[#allocation2 + $0xc] sm:$0xf] %vm558_vm6, %v541_v59  ;;  %v497_v0 = vpop.permute.xlu1 %496 }
  0xec   : > { %515 = vst.msk [vmem:[#allocation2 + $0x18] sm:$0xf] %vm508_vm5, %v497_v0 }
  0xed   : > { %565 = vst.msk [vmem:[#allocation2 + $0x18] sm:$0xf] %vm558_vm6, %v547_v53 }
  0xee   : > { %v800_v3 = vpop.permute.xlu2 %799 }
  0xf2   : > { %v589_v1 = vpop.permute.xlu0 %588 }
  0xf3   : > { %611 = vst.msk [vmem:[#allocation2 + $0x8] sm:$0xf] %vm608_vm7, %v589_v1  ;;  %v591_v2 = vpop.permute.xlu1 %590 }
  0xf4   : > { %612 = vst.msk [vmem:[#allocation2 + $0xc] sm:$0xf] %vm608_vm7, %v591_v2 }
  0xf5   : > { %773 = vst.msk [vmem:[#allocation2 + $0xc] sm:$0xf] %vm769_vm8, %v752_v62 }
  0xf6   : > { %v760_v6 = vpop.permute.xlu2 %759 }
  0xfa   : > { %v549_v4 = vpop.permute.xlu0 %548 }
  0xfb   : > { %566 = vst.msk [vmem:[#allocation2 + $0x1c] sm:$0xf] %vm558_vm6, %v549_v4  ;;  %v750_v5 = vpop.permute.xlu1 %749 }
  0xfc   : > { %772 = vst.msk [vmem:[#allocation2 + $0x8] sm:$0xf] %vm769_vm8, %v750_v5 }
  0xfd   : > { %822 = vst.msk [vmem:[#allocation2 + $0x8] sm:$0xf] %vm819_vm10, %v800_v3 }
  0xfe   : > { %v808_v9 = vpop.permute.xlu2 %807 }
 0x102   : > { %v597_v7 = vpop.permute.xlu0 %596 }
 0x103   : > { %615 = vst.msk [vmem:[#allocation2 + $0x18] sm:$0xf] %vm608_vm7, %v597_v7  ;;  %v599_v8 = vpop.permute.xlu1 %598 }
 0x104   : > { %616 = vst.msk [vmem:[#allocation2 + $0x1c] sm:$0xf] %vm608_vm7, %v599_v8 }
 0x105   : > { %777 = vst.msk [vmem:[#allocation2 + $0x1c] sm:$0xf] %vm769_vm8, %v760_v6 }
 0x106   : > { %v1013_v13 = vpop.permute.xlu2 %1012 }
 0x10a   : > { %v802_v10 = vpop.permute.xlu0 %801 }
 0x10b   : > { %823 = vst.msk [vmem:[#allocation2 + $0xc] sm:$0xf] %vm819_vm10, %v802_v10  ;;  %v758_v11 = vpop.permute.xlu1 %757 }
 0x10c   : > { %776 = vst.msk [vmem:[#allocation2 + $0x18] sm:$0xf] %vm769_vm8, %v758_v11 }
 0x10d   : > { %826 = vst.msk [vmem:[#allocation2 + $0x18] sm:$0xf] %vm819_vm10, %v808_v9 }
 0x10e   : > { %v1019_v17 = vpop.permute.xlu2 %1018 }
 0x112   : > { %v850_v12 = vpop.permute.xlu0 %849 }
 0x113   : > { %872 = vst.msk [vmem:[#allocation2 + $0x8] sm:$0xf] %vm869_vm11, %v850_v12  ;;  %v852_v14 = vpop.permute.xlu1 %851 }
 0x114   : > { %873 = vst.msk [vmem:[#allocation2 + $0xc] sm:$0xf] %vm869_vm11, %v852_v14 }
 0x115   : > { %1034 = vst.msk [vmem:[#allocation2 + $0xc] sm:$0xf] %vm1030_vm12, %v1013_v13 }
 0x11a   : > { %v810_v15 = vpop.permute.xlu0 %809 }
 0x11b   : > { %827 = vst.msk [vmem:[#allocation2 + $0x1c] sm:$0xf] %vm819_vm10, %v810_v15  ;;  %v1011_v16 = vpop.permute.xlu1 %1010 }
 0x11c   : > { %1033 = vst.msk [vmem:[#allocation2 + $0x8] sm:$0xf] %vm1030_vm12, %v1011_v16 }
 0x122   : > { %v858_v18 = vpop.permute.xlu0 %857 }
 0x123   : > { %876 = vst.msk [vmem:[#allocation2 + $0x18] sm:$0xf] %vm869_vm11, %v858_v18  ;;  %v1611_v19 = vld [vmem:[#allocation2 + $0x8] sm:$0xff]  ;;  %v860_v20 = vpop.permute.xlu1 %859  ;;  %v1240_v31 = vpop.f32.mrf.mxu1 }
 0x124   : > { %1037 = vst.msk [vmem:[#allocation2 + $0x18] sm:$0xf] %vm1030_vm12, %v1019_v17  ;;  %1579 = vmatmul.msk.bf16.gmra.mxu0 %vm1103_vm14, %v1611_v19  ;;  %v1289_v36 = vmul.f32 %v1240_v31, %v1240_v31 }
 0x125   : > { %877 = vst.msk [vmem:[#allocation2 + $0x1c] sm:$0xf] %vm869_vm11, %v860_v20 }
 0x12a   : > { %v1021_v22 = vpop.permute.xlu0 %1020 }
 0x12b   : > { %1038 = vst.msk [vmem:[#allocation2 + $0x1c] sm:$0xf] %vm1030_vm12, %v1021_v22  ;;  %v1242_v37 = vpop.f32.mrf.mxu1 }
 0x12c   : > { %v1641_v39 = vpack.c.bf16 %v1242_v37, %v1240_v31  ;;  %v1276_v40 = vadd.f32 %v1242_v37, %v1240_v31  ;;  %v1290_v41 = vmul.f32 %v1242_v37, %v1242_v37 }
 0x12e   : > { %1642 = vst [vmem:[%s2082_s28] sm:$0xff] %v1641_v39   ;;  %v1297_v44 = vadd.f32 %v1290_v41, %v1289_v36 }
 0x132   : > { %v1613_v23 = vld [vmem:[#allocation2 + $0x18] sm:$0xff] }
 0x133   : > { %1581 = vmatmul.msk.bf16.gmra.mxu2 %vm1103_vm14, %v1613_v23  ;;  %v1245_v24 = vpop.f32.mrf.mxu3 }
 0x134   : > { %v1291_v38 = vmul.f32 %v1245_v24, %v1245_v24  ;;  %v1277_v43 = vadd.f32 %v1276_v40, %v1245_v24 }
 0x136   : > { %v1298_v48 = vadd.f32 %v1297_v44, %v1291_v38 }
 0x13b   : > { %v1247_v26 = vpop.f32.mrf.mxu3 }
 0x13c   : > { %v1646_v28 = vpack.c.bf16 %v1247_v26, %v1245_v24  ;;  %v1292_v42 = vmul.f32 %v1247_v26, %v1247_v26  ;;  %v1278_v47 = vadd.f32 %v1277_v43, %v1247_v26 }
 0x13e   : > { %1661 = vst [vmem:[%s2082_s28 + $0x8] sm:$0xff] %v1646_v28   ;;  %v1299_v50 = vadd.f32 %v1298_v48, %v1292_v42 }
 0x143   : > { %v1250_v21 = vpop.f32.mrf.mxu3 }
 0x144   : > { %v1293_v46 = vmul.f32 %v1250_v21, %v1250_v21  ;;  %v1279_v51 = vadd.f32 %v1278_v47, %v1250_v21 }
 0x146   : > { %v1300_v54 = vadd.f32 %v1299_v50, %v1293_v46 }
 0x14b   : > { %v1252_v32 = vpop.f32.mrf.mxu3 }
 0x14c   : > { %v1651_v34 = vpack.c.bf16 %v1252_v32, %v1250_v21  ;;  %v1294_v49 = vmul.f32 %v1252_v32, %v1252_v32  ;;  %v1280_v52 = vadd.f32 %v1279_v51, %v1252_v32 }
 0x14e   : > { %1662 = vst [vmem:[%s2082_s28 + $0x10] sm:$0xff] %v1651_v34   ;;  %v1301_v56 = vadd.f32 %v1300_v54, %v1294_v49 }
 0x150   : > { %v2076_v25 = vpop.f32.mrf.mxu0 }
 0x151   : > { %v1178_v16 = vmul.f32 %v2076_v25, %v2076_v25 }
 0x153   : > { %v1255_v45 = vpop.f32.mrf.mxu3 }
 0x154   : > { %v1295_v53 = vmul.f32 %v1255_v45, %v1255_v45  ;;  %v1281_v55 = vadd.f32 %v1280_v52, %v1255_v45 }
 0x156   : > { %v1302_v58 = vadd.f32 %v1301_v56, %v1295_v53 }
 0x158   : > { %v2089_v27 = vpop.f32.mrf.mxu0 }
 0x159   : > { %v1621_v29 = vpack.c.bf16 %v2089_v27, %v2076_v25  ;;  %v1179_v15 = vmul.f32 %v2089_v27, %v2089_v27  ;;  %v1165_v17 = vadd.f32 %v2089_v27, %v2076_v25 }
 0x15b   : > { %1622 = vst [vmem:[%s2087_s7] sm:$0xff] %v1621_v29   ;;  %v1257_v57 = vpop.f32.mrf.mxu3  ;;  %v1186_v19 = vadd.f32 %v1179_v15, %v1178_v16 }
 0x15c   : > { %v1656_v59 = vpack.c.bf16 %v1257_v57, %v1255_v45  ;;  %v1282_v60 = vadd.f32 %v1281_v55, %v1257_v57  ;;  %v1296_v61 = vmul.f32 %v1257_v57, %v1257_v57 }
 0x15e   : > { %1663 = vst [vmem:[%s2082_s28 + $0x18] sm:$0xff] %v1656_v59   ;;  %v1283_v62 = vrot.slane %v1282_v60, 4  ;;  %v1303_v63 = vadd.f32 %v1302_v58, %v1296_v61 }
 0x15f   : > { %v2095_v30 = vpop.f32.mrf.mxu2 }
 0x160   : > { %v1284_v0 = vadd.f32 %v1283_v62, %v1282_v60  ;;  %v1304_v1 = vrot.slane %v1303_v63, 4  ;;  %v1182_v29 = vmul.f32 %v2095_v30, %v2095_v30 }
 0x162   : > { %v1285_v2 = vrot.slane %v1284_v0, 2  ;;  %v1305_v3 = vadd.f32 %v1304_v1, %v1303_v63 }
 0x164   : > { %v1286_v4 = vadd.f32 %v1285_v2, %v1284_v0  ;;  %v1306_v5 = vrot.slane %v1305_v3, 2 }
 0x166   : > { %v1287_v6 = vrot.slane %v1286_v4, 1  ;;  %v1307_v7 = vadd.f32 %v1306_v5, %v1305_v3 }
 0x167   : > { %v2097_v33 = vpop.f32.mrf.mxu2 }
 0x168   : > { %v1631_v35 = vpack.c.bf16 %v2097_v33, %v2095_v30  ;;  %v1288_v8 = vadd.f32 %v1287_v6, %v1286_v4  ;;  %v1308_v9 = vrot.slane %v1307_v7, 1  ;;  %v1183_v32 = vmul.f32 %v2097_v33, %v2097_v33 }
 0x16a   : > { %1659 = vst [vmem:[%s2087_s7 + $0x10] sm:$0xff] %v1631_v35   ;;  %v1309_v10 = vadd.f32 %v1308_v9, %v1307_v7 }
 0x16c   : > { %v1310_v11 = vsel %vm1199_vm15, %v1288_v8, %v1309_v10 }
 0x16d   : > { %1311 = vst [vmem:[%s284_s11] sm:$0x3] %v1310_v11 }
 0x1a1   : > { %v1134_v12 = vpop.f32.mrf.mxu0 }
 0x1a2   : > { %v1180_v18 = vmul.f32 %v1134_v12, %v1134_v12  ;;  %v1166_v20 = vadd.f32 %v1165_v17, %v1134_v12 }
 0x1a4   : > { %v1187_v23 = vadd.f32 %v1186_v19, %v1180_v18 }
 0x1a9   : > { %v1136_v13 = vpop.f32.mrf.mxu0 }
 0x1aa   : > { %v1626_v14 = vpack.c.bf16 %v1136_v13, %v1134_v12  ;;  %v1181_v22 = vmul.f32 %v1136_v13, %v1136_v13  ;;  %v1167_v24 = vadd.f32 %v1166_v20, %v1136_v13 }
 0x1ac   : > { %1658 = vst [vmem:[%s2087_s7 + $0x8] sm:$0xff] %v1626_v14   ;;  %v1188_v26 = vadd.f32 %v1187_v23, %v1181_v22  ;;  %v1168_v21 = vadd.f32 %v1167_v24, %v2095_v30 }
 0x1ae   : > { %v1189_v31 = vadd.f32 %v1188_v26, %v1182_v29  ;;  %v1169_v25 = vadd.f32 %v1168_v21, %v2097_v33 }
 0x1b0   : > { %v1190_v35 = vadd.f32 %v1189_v31, %v1183_v32 }
 0x1b6   : > { %v1144_v28 = vpop.f32.mrf.mxu2 }
 0x1b7   : > { %v1184_v27 = vmul.f32 %v1144_v28, %v1144_v28  ;;  %v1170_v34 = vadd.f32 %v1169_v25, %v1144_v28 }
 0x1b9   : > { %v1191_v37 = vadd.f32 %v1190_v35, %v1184_v27 }
 0x1be   : > { %v1146_v36 = vpop.f32.mrf.mxu2 }
 0x1bf   : > { %v1636_v38 = vpack.c.bf16 %v1146_v36, %v1144_v28  ;;  %v1171_v39 = vadd.f32 %v1170_v34, %v1146_v36  ;;  %v1185_v40 = vmul.f32 %v1146_v36, %v1146_v36 }
 0x1c1   : > { %1660 = vst [vmem:[%s2087_s7 + $0x18] sm:$0xff] %v1636_v38   ;;  %v1172_v41 = vrot.slane %v1171_v39, 4  ;;  %v1192_v42 = vadd.f32 %v1191_v37, %v1185_v40 }
 0x1c3   : > { %v1173_v43 = vadd.f32 %v1172_v41, %v1171_v39  ;;  %v1193_v30 = vrot.slane %v1192_v42, 4 }
 0x1c5   : > { %v1174_v44 = vrot.slane %v1173_v43, 2  ;;  %v1194_v45 = vadd.f32 %v1193_v30, %v1192_v42 }
 0x1c7   : > { %v1175_v46 = vadd.f32 %v1174_v44, %v1173_v43  ;;  %v1195_v47 = vrot.slane %v1194_v45, 2 }
 0x1c9   : > { %v1176_v48 = vrot.slane %v1175_v46, 1  ;;  %v1196_v33 = vadd.f32 %v1195_v47, %v1194_v45 }
 0x1cb   : > { %v1197_v49 = vrot.slane %v1196_v33, 1  ;;  %v1177_v50 = vadd.f32 %v1176_v48, %v1175_v46 }
 0x1cd   : > { %v1198_v51 = vadd.f32 %v1197_v49, %v1196_v33 }
 0x1cf   : > { %v1200_v52 = vsel %vm1199_vm15, %v1177_v50, %v1198_v51 }
 0x1d0   : > { %1201 = vst [vmem:[%s275_s14] sm:$0x3] %v1200_v52 }
 0x1d1 PF: > { %s17_s21 = sadd.s32 1, %s1693_s21  }
 0x1d2   : > { %p14_p4 = scmp.ge.s32.totalorder %s17_s21, 4  }
 0x1d4   :  { %16 = sbr.rel (!%p14_p4) target bundleno = 1 (0x1), region = 103 }

// kernel: basic_block_forward.4
= control target key start
LH: loop header
LB: loop body
LE: loop exit
PB: predicated region body
PF: predicated region fallthrough
CT: control target
= control target key end

     0   :  { %s3107_s18 = smov 0   ;;  %s3697_s0 = inlined_call_operand.vmem [shape: bf16[2,64,128], index: 0, kind: input, shape index: {}]   ;;  %s3698_s1 = inlined_call_operand.vmem [shape: f32[1,128], index: 1, kind: input, shape index: {}]   ;;  %s3699_s2 = inlined_call_operand.vmem [shape: f32[1,128], index: 2, kind: input, shape index: {}]   ;;  %s3700_s3 = inlined_call_operand.vmem [shape: bf16[1152,128], index: 3, kind: input, shape index: {}]   ;;  %s3701_s4 = inlined_call_operand.vmem [shape: bf16[2,64,128], index: 4, kind: output, shape index: {0}]   ;;  %s3702_s5 = inlined_call_operand.vmem [shape: f32[2,2,128], index: 5, kind: output, shape index: {1}]  }
   0x1 LB: > { %s2421_s19 = sadd.s32 4294967295, %s3074_s18   ;;  %p2425_p0 = scmp.ge.s32.totalorder %s3074_s18, 1  ;;  %s3074_s18 = sphi %s3107_s18, %s16_s18  }
   0x2   : > { %p190_p1 = scmp.lt.s32.totalorder %s3074_s18, 3 }
   0x4   : > { %p191_p2 = pnand %p2425_p0, %p190_p1 }
   0x5   : > { %p222_p3 = scmp.lt.s32.totalorder (!%p191_p2), %s2421_s19, 1 }
   0x6   : > { %194 = sbr.rel (%p191_p2) target bundleno = 365 (0x16d), region = 36 }
   0xb   : > { %v2934_v0 = vld [vmem:[%s3700_s3 + $0x38] sm:$0xff]  ;;  %v2933_v2 = vld [vmem:[%s3700_s3 + $0x30] sm:$0xff]  ;;  %s3714_s19 = smov (!%p222_p3, %s2421_s19), 1  ;;  %v3076_v5 = vmov 0   ;;  %v2932_v6 = vld [vmem:[%s3700_s3 + $0x28] sm:$0xff]  ;;  %vm290_vm0 = vcmask 1040384  }
   0xc   : > { %v2950_v1 = vld [vmem:[%s3700_s3 + $0xb8] sm:$0xff]  ;;  %3041 = vmatpush.bf16.msra.mxu1 %v2934_v0  ;;  %2021 = vmatpush.bf16.msra.mxu0 %v2934_v0  ;;  %v2949_v3 = vld [vmem:[%s3700_s3 + $0xb0] sm:$0xff]  ;;  %285 = vst [vmem:[#allocation2] sm:$0xf] %v3076_v5  ;;  %s2889_s7 = sshll.u32 %s3714_s19, 5  ;;  %v2948_v7 = vld [vmem:[%s3700_s3 + $0xa8] sm:$0xff] }
   0xd   : > { %2079 = vmatpush.bf16.msra.mxu2 %v2950_v1  ;;  %v2958_v4 = vld [vmem:[%s3700_s3 + $0xf8] sm:$0xff]  ;;  %vm291_vm1 = vsmask.f32 256  ;;  %286 = vst [vmem:[#allocation2 + $0x4] sm:$0x1] %v3076_v5  ;;  %v2957_v8 = vld [vmem:[%s3700_s3 + $0xf0] sm:$0xff]  ;;  %s3147_s14 = scalar_lea.vmem %s3697_s0, %s2889_s7  ;;  %s3674_s17 = scalar_lea.vmem %s3701_s4, %s2889_s7 }
   0xe   : > { %2108 = vmatpush.bf16.msra.mxu3 %v2958_v4  ;;  %288 = vst [vmem:[#allocation2 + $0x48] sm:$0xf] %v3076_v5  ;;  %v3035_v9 = vld [vmem:[%s3147_s14 + $0x8] sm:$0xff]   ;;  %v3036_v10 = vld [vmem:[%s3147_s14 + $0x10] sm:$0xff]   ;;  %v3154_v11 = vld [vmem:[%s3698_s1] ss:$0 sm:$0xff] }
   0xf   : > { %289 = vst [vmem:[#allocation2 + $0x4c] sm:$0x1] %v3076_v5  ;;  %v3006_v12 = vunpack.c.h.bf16 %v3035_v9  ;;  %v3009_v13 = vunpack.c.l.bf16 %v3036_v10  ;;  %v3159_v14 = vld [vmem:[%s3699_s2] ss:$0 sm:$0xff]  ;;  %vm3163_vm2 = vmand %vm290_vm0, %vm291_vm1  ;;  %v308_v17 = vld [vmem:[#allocation2 + $0x28] sm:$0x1]  ;;  %v3010_v18 = vunpack.c.h.bf16 %v3036_v10  ;;  %v3005_v30 = vunpack.c.l.bf16 %v3035_v9 }
  0x10   : > { %3042 = vmatpush.bf16.msra.mxu1 %v2933_v2  ;;  %2022 = vmatpush.bf16.msra.mxu0 %v2933_v2  ;;  %v305_v16 = vld [vmem:[#allocation2 + $0x20] sm:$0x1]  ;;  %vm323_vm3 = vsmask.f32 7938  ;;  %v2956_v19 = vld [vmem:[%s3700_s3 + $0xe8] sm:$0xff]  ;;  %v309_v23 = vsel %vm3163_vm2, 0, %v308_v17 }
  0x11   : > { %2080 = vmatpush.bf16.msra.mxu2 %v2949_v3  ;;  %v260_v20 = vmul.f32 %v3154_v11, %v3006_v12  ;;  %v261_v21 = vmul.f32 %v3154_v11, %v3009_v13  ;;  %v306_v22 = vsel %vm3163_vm2, 0, %v305_v16  ;;  %v3000_v24 = vld [vmem:[%s3147_s14] sm:$0xff]   ;;  %v296_v25 = vld [vmem:[#allocation2 + $0x8] sm:$0x1]  ;;  %v262_v29 = vmul.f32 %v3154_v11, %v3010_v18  ;;  %310 = vst [vmem:[#allocation2 + $0x28] sm:$0x1] %v309_v23  ;;  %vm3190_vm4 = vmand %vm290_vm0, %vm323_vm3 }
  0x12   : > { %2109 = vmatpush.bf16.msra.mxu3 %v2957_v8  ;;  %v2931_v26 = vld [vmem:[%s3700_s3 + $0x20] sm:$0xff]  ;;  %307 = vst [vmem:[#allocation2 + $0x20] sm:$0x1] %v306_v22  ;;  %v3001_v27 = vunpack.c.l.bf16 %v3000_v24  ;;  %v3002_v35 = vunpack.c.h.bf16 %v3000_v24  ;;  %v297_v38 = vsel %vm3163_vm2, 0, %v296_v25  ;;  %v3198_v40 = vld [vmem:[%s3147_s14 + $0x18] sm:$0xff]   ;;  %vm444_vm5 = vcmask 1043456  }
  0x13   : > { %v293_v28 = vld [vmem:[#allocation2] sm:$0x1]  ;;  %v272_v32 = vadd.f32 %v3159_v14, %v260_v20  ;;  %v273_v33 = vadd.f32 %v3159_v14, %v261_v21  ;;  %v274_v41 = vadd.f32 %v3159_v14, %v262_v29  ;;  %298 = vst [vmem:[#allocation2 + $0x8] sm:$0x1] %v297_v38  ;;  %v3013_v45 = vunpack.c.l.bf16 %v3198_v40  ;;  %v2930_v46 = vld [vmem:[%s3700_s3 + $0x18] sm:$0xff]  ;;  %v2929_v61 = vld [vmem:[%s3700_s3 + $0x10] sm:$0xff] }
  0x14   : > { %3043 = vmatpush.bf16.msra.mxu1 %v2932_v6  ;;  %2023 = vmatpush.bf16.msra.mxu0 %v2932_v6  ;;  %v2947_v31 = vld [vmem:[%s3700_s3 + $0xa0] sm:$0xff]  ;;  %v294_v34 = vsel %vm3163_vm2, 0, %v293_v28  ;;  %v257_v37 = vmul.f32 %v3154_v11, %v3001_v27  ;;  %v328_v49 = vld [vmem:[#allocation2 + $0xc] sm:$0x1]  ;;  %vm689_vm6 = vcmask 1042432   ;;  %v259_v50 = vmul.f32 %v3154_v11, %v3005_v30  ;;  %v2946_v51 = vld [vmem:[%s3700_s3 + $0x98] sm:$0xff] }
  0x15   : > { %2081 = vmatpush.bf16.msra.mxu2 %v2948_v7  ;;  %295 = vst [vmem:[#allocation2] sm:$0x1] %v294_v34  ;;  %v325_v39 = vld [vmem:[#allocation2 + $0x4] sm:$0x1]  ;;  %v280_v42 = vmax.f32 %v272_v32, 0.0  ;;  %v281_v43 = vmax.f32 %v273_v33, 0.0  ;;  %v258_v56 = vmul.f32 %v3154_v11, %v3002_v35  ;;  %v263_v58 = vmul.f32 %v3154_v11, %v3013_v45  ;;  %vm3240_vm8 = vmand %vm444_vm5, %vm323_vm3 }
  0x16   : > { %2110 = vmatpush.bf16.msra.mxu3 %v2956_v19  ;;  %v2955_v44 = vld [vmem:[%s3700_s3 + $0xe0] sm:$0xff]  ;;  %v269_v47 = vadd.f32 %v3159_v14, %v257_v37  ;;  %v326_v48 = vsel %vm3190_vm4, 0, %v325_v39  ;;  %v329_v54 = vsel %vm3190_vm4, 0, %v328_v49  ;;  %v311_v55 = vld [vmem:[#allocation2 + $0x30] sm:$0x1]  ;;  %v282_v59 = vmax.f32 %v274_v41, 0.0 }
  0x17   : > { %v358_v52 = vpack.c.bf16 %v280_v42, %v280_v42  ;;  %v359_v53 = vpack.c.bf16 %v281_v43, %v281_v43  ;;  %327 = vst [vmem:[#allocation2 + $0x4] sm:$0x1] %v326_v48  ;;  %v312_v60 = vsel %vm3163_vm2, 0, %v311_v55  ;;  %v2954_v2 = vld [vmem:[%s3700_s3 + $0xd8] sm:$0xff]  ;;  %v2945_v3 = vld [vmem:[%s3700_s3 + $0x90] sm:$0xff]  ;;  %vm690_vm7 = vcmask 1046532  }
  0x18   : > { %3044 = vmatpush.bf16.msra.mxu1 %v2931_v26  ;;  %2024 = vmatpush.bf16.msra.mxu0 %v2931_v26  ;;  %v277_v57 = vmax.f32 %v269_v47, 0.0  ;;  %330 = vst [vmem:[#allocation2 + $0xc] sm:$0x1] %v329_v54  ;;  %v657_v5 = vld [vmem:[#allocation2] sm:$0xe]  ;;  %v275_v6 = vadd.f32 %v3159_v14, %v263_v58  ;;  %v360_v7 = vpack.c.bf16 %v282_v59, %v282_v59  ;;  %v2928_v13 = vld [vmem:[%s3700_s3 + $0x8] sm:$0xff]  ;;  %vm3256_vm9 = vmor %vm689_vm6, %vm690_vm7 }
  0x19   : > { %2082 = vmatpush.bf16.msra.mxu2 %v2947_v31  ;;  %v388_v62 = vshrl.u32 %v358_v52, 16  ;;  %v391_v63 = vshll.u32 %v358_v52, 16  ;;  %v396_v0 = vshrl.u32 %v359_v53, 16  ;;  %v399_v1 = vshll.u32 %v359_v53, 16  ;;  %313 = vst [vmem:[#allocation2 + $0x30] sm:$0x1] %v312_v60 }
  0x1a   : > { %2111 = vmatpush.bf16.msra.mxu3 %v2955_v44  ;;  %v355_v4 = vpack.c.bf16 %v277_v57, %v277_v57  ;;  %v464_v10 = vld [vmem:[#allocation2 + $0x20] sm:$0xf]  ;;  %v470_v17 = vld [vmem:[#allocation2 + $0x28] sm:$0xf]  ;;  %v271_v20 = vadd.f32 %v3159_v14, %v259_v50  ;;  %v2431_v25 = vrot.slane %v657_v5, 9  ;;  %v2953_v26 = vld [vmem:[%s3700_s3 + $0xd0] sm:$0xff]  ;;  %v270_v28 = vadd.f32 %v3159_v14, %v258_v56 }
  0x1b   : > { %v3231_v8 = vrot.slane %v388_v62, 7  ;;  %v3233_v9 = vrot.slane %v396_v0, 7  ;;  %v2944_v23 = vld [vmem:[%s3700_s3 + $0x88] sm:$0xff]  ;;  %v314_v27 = vld [vmem:[#allocation2 + $0x38] sm:$0x1]  ;;  %v283_v32 = vmax.f32 %v275_v6, 0.0 }
  0x1c   : > { %3045 = vmatpush.bf16.msra.mxu1 %v2930_v46  ;;  %2025 = vmatpush.bf16.msra.mxu0 %v2930_v46  ;;  %v494_v12 = vld [vmem:[#allocation2] sm:$0xf]  ;;  %v364_v18 = vshrl.u32 %v355_v4, 16  ;;  %v367_v19 = vshll.u32 %v355_v4, 16  ;;  %v446_v24 = vld [vmem:[#allocation2 + $0x8] sm:$0xf] }
  0x1d   : > { %2083 = vmatpush.bf16.msra.mxu2 %v2946_v51  ;;  %502 = vst [vmem:[#allocation3] sm:$0xf] %v494_v12  ;;  %v393_v21 = vor.u32 %v391_v63, %v3231_v8  ;;  %v401_v22 = vor.u32 %v399_v1, %v3233_v9  ;;  %v315_v33 = vsel %vm3163_vm2, 0, %v314_v27  ;;  %v404_v34 = vshrl.u32 %v360_v7, 16  ;;  %v2927_v42 = vld [vmem:[%s3700_s3] sm:$0xff]  ;;  %v2952_v45 = vld [vmem:[%s3700_s3 + $0xc8] sm:$0xff] }
  0x1e   : > { %2112 = vmatpush.bf16.msra.mxu3 %v2954_v2  ;;  %v366_v29 = vrot.slane %v364_v18, 7  ;;  %v658_v30 = vld [vmem:[#allocation2 + $0x4] sm:$0x1]  ;;  %316 = vst [vmem:[#allocation2 + $0x38] sm:$0x1] %v315_v33  ;;  %v407_v41 = vshll.u32 %v360_v7, 16  ;;  %v361_v46 = vpack.c.bf16 %v283_v32, %v283_v32 }
  0x1f   : > { %v465_v35 = vsel %vm3240_vm8, %v393_v21, %v464_v10  ;;  %v471_v37 = vsel %vm3240_vm8, %v401_v22, %v470_v17  ;;  %v449_v38 = vld [vmem:[#allocation2 + $0xc] sm:$0x1]  ;;  %v694_v39 = vrot.slane %v658_v30, 5  ;;  %v3272_v47 = vrot.slane %v404_v34, 7  ;;  %v299_v55 = vld [vmem:[#allocation2 + $0x10] sm:$0x1] }
  0x20   : > { %3046 = vmatpush.bf16.msra.mxu1 %v2929_v61  ;;  %2026 = vmatpush.bf16.msra.mxu0 %v2929_v61  ;;  %466 = vst [vmem:[#allocation2 + $0x20] sm:$0xf] %v465_v35  ;;  %v369_v43 = vor.u32 %v367_v19, %v366_v29  ;;  %v370_v44 = vrot.slane %v366_v29, 4  ;;  %v476_v49 = vld [vmem:[#allocation2 + $0x30] sm:$0xf]  ;;  %v278_v50 = vmax.f32 %v270_v28, 0.0 }
  0x21   : > { %2084 = vmatpush.bf16.msra.mxu2 %v2945_v3  ;;  %472 = vst [vmem:[#allocation2 + $0x28] sm:$0xf] %v471_v37  ;;  %v695_v48 = vsel %vm3256_vm9, %v2431_v25, %v694_v39  ;;  %v279_v51 = vmax.f32 %v271_v20, 0.0  ;;  %v409_v54 = vor.u32 %v407_v41, %v3272_v47  ;;  %v302_v56 = vld [vmem:[#allocation2 + $0x18] sm:$0x1]  ;;  %v2943_v58 = vld [vmem:[%s3700_s3 + $0x80] sm:$0xff] }
  0x22   : > { %2113 = vmatpush.bf16.msra.mxu3 %v2953_v26  ;;  %v447_v52 = vsel %vm3240_vm8, %v369_v43, %v446_v24  ;;  %v450_v53 = vsel %vm3163_vm2, %v370_v44, %v449_v38  ;;  %732 = vst [vmem:[#allocation3 + $0x8] sm:$0xf] %v695_v48  ;;  %v2942_v57 = vld [vmem:[%s3700_s3 + $0x78] sm:$0xff]  ;;  %v412_v59 = vshrl.u32 %v361_v46, 16  ;;  %v356_v60 = vpack.c.bf16 %v278_v50, %v278_v50  ;;  %v2941_v2 = vld [vmem:[%s3700_s3 + $0x70] sm:$0xff]  ;;  %v2951_v4 = vld [vmem:[%s3700_s3 + $0xc0] sm:$0xff] }
  0x23   : > { %448 = vst [vmem:[#allocation2 + $0x8] sm:$0xf] %v447_v52  ;;  %v357_v61 = vpack.c.bf16 %v279_v51, %v279_v51  ;;  %v2966_v62 = vld [vmem:[%s3700_s3 + $0x138] sm:$0xff]  ;;  %v415_v63 = vshll.u32 %v361_v46, 16  ;;  %v477_v0 = vsel %vm3240_vm8, %v409_v54, %v476_v49  ;;  %v300_v5 = vsel %vm3163_vm2, 0, %v299_v55  ;;  %v2965_v17 = vld [vmem:[%s3700_s3 + $0x130] sm:$0xff] }
  0x24   : > { %3047 = vmatpush.bf16.msra.mxu1 %v2928_v13  ;;  %2027 = vmatpush.bf16.msra.mxu0 %v2928_v13  ;;  %451 = vst [vmem:[#allocation2 + $0xc] sm:$0x1] %v450_v53  ;;  %v2982_v1 = vld [vmem:[%s3700_s3 + $0x1b8] sm:$0xff]  ;;  %v3298_v3 = vrot.slane %v412_v59, 7  ;;  %v303_v6 = vsel %vm3163_vm2, 0, %v302_v56  ;;  %v372_v10 = vshrl.u32 %v356_v60, 16 }
  0x25   : > { %2085 = vmatpush.bf16.msra.mxu2 %v2944_v23  ;;  %478 = vst [vmem:[#allocation2 + $0x30] sm:$0xf] %v477_v0  ;;  %v482_v7 = vld [vmem:[#allocation2 + $0x38] sm:$0xf]  ;;  %v375_v12 = vshll.u32 %v356_v60, 16  ;;  %v380_v19 = vshrl.u32 %v357_v61, 16 }
  0x26   : > { %2114 = vmatpush.bf16.msra.mxu3 %v2952_v45  ;;  %301 = vst [vmem:[#allocation2 + $0x10] sm:$0x1] %v300_v5  ;;  %v417_v18 = vor.u32 %v415_v63, %v3298_v3  ;;  %v3311_v21 = vrot.slane %v372_v10, 7  ;;  %v383_v22 = vshll.u32 %v357_v61, 16  ;;  %v2940_v28 = vld [vmem:[%s3700_s3 + $0x68] sm:$0xff]  ;;  %v2963_v48 = vld [vmem:[%s3700_s3 + $0x120] sm:$0xff] }
  0x27   : > { %v498_v13 = vld [vmem:[#allocation2 + $0x20] sm:$0xf]  ;;  %304 = vst [vmem:[#allocation2 + $0x18] sm:$0x1] %v303_v6  ;;  %v3315_v24 = vrot.slane %v380_v19, 7  ;;  %v2964_v34 = vld [vmem:[%s3700_s3 + $0x128] sm:$0xff] }
  0x28   : > { %3048 = vmatpush.bf16.msra.mxu1 %v2927_v42  ;;  %2028 = vmatpush.bf16.msra.mxu0 %v2927_v42  ;;  %v499_v20 = vld [vmem:[#allocation2 + $0x28] sm:$0xf]  ;;  %506 = vst [vmem:[#allocation3 + $0x90] sm:$0xf] %v498_v13  ;;  %v483_v23 = vsel %vm3240_vm8, %v417_v18, %v482_v7  ;;  %v377_v27 = vor.u32 %v375_v12, %v3311_v21  ;;  %v2457_v39 = vld [vmem:[#allocation3] sm:$0xf] }
  0x29   : > { %2086 = vmatpush.bf16.msra.mxu2 %v2943_v58  ;;  %507 = vst [vmem:[#allocation3 + $0xb4] sm:$0xf] %v499_v20  ;;  %v385_v32 = vor.u32 %v383_v22, %v3315_v24  ;;  %v2939_v42 = vld [vmem:[%s3700_s3 + $0x60] sm:$0xff]  ;;  %v331_v45 = vld [vmem:[#allocation2 + $0x14] sm:$0x1]  ;;  %v2990_v59 = vld [vmem:[%s3700_s3 + $0x1f8] sm:$0xff] }
  0x2a   : > { %2115 = vmatpush.bf16.msra.mxu3 %v2951_v4  ;;  %v495_v25 = vld [vmem:[#allocation2 + $0x8] sm:$0xf]  ;;  %484 = vst [vmem:[#allocation2 + $0x38] sm:$0xf] %v483_v23  ;;  %v332_v50 = vsel %vm3190_vm4, 0, %v331_v45  ;;  %v2938_v61 = vld [vmem:[%s3700_s3 + $0x58] sm:$0xff] }
  0x2b   : > { %v659_v26 = vld [vmem:[#allocation2 + $0x8] sm:$0xe]  ;;  %503 = vst [vmem:[#allocation3 + $0x24] sm:$0xf] %v495_v25  ;;  %v660_v29 = vld [vmem:[#allocation2 + $0xc] sm:$0x1] }
  0x2c   : > { %2050 = vmatpush.bf16.msrb.mxu1 %v2942_v57  ;;  %2137 = vmatpush.bf16.msrb.mxu0 %v2966_v62  ;;  %v2432_v30 = vrot.slane %v659_v26, 9  ;;  %v698_v33 = vrot.slane %v660_v29, 5  ;;  %v500_v35 = vld [vmem:[#allocation2 + $0x30] sm:$0xf]  ;;  %v740_v37 = vld [vmem:[#allocation2 + $0x8] sm:$0xf] }
  0x2d   : > { %2195 = vmatpush.bf16.msrb.mxu2 %v2982_v1  ;;  %508 = vst [vmem:[#allocation3 + $0xd8] sm:$0xf] %v500_v35  ;;  %v452_v38 = vld [vmem:[#allocation2 + $0x10] sm:$0xf]  ;;  %v334_v52 = vld [vmem:[#allocation2 + $0x1c] sm:$0x1] }
  0x2e   : > { %v699_v41 = vsel %vm3256_vm9, %v2432_v30, %v698_v33  ;;  %v453_v43 = vsel %vm3240_vm8, %v377_v27, %v452_v38  ;;  %v458_v44 = vld [vmem:[#allocation2 + $0x18] sm:$0xf]  ;;  %748 = vst [vmem:[#allocation3 + $0xc] sm:$0xf] %v740_v37  ;;  %v335_v55 = vsel %vm3190_vm4, 0, %v334_v52  ;;  %v2981_v57 = vld [vmem:[%s3700_s3 + $0x1b0] sm:$0xff]  ;;  %2224 = vmatpush.bf16.msrb.mxu3 %v2990_v59 }
  0x2f   : > { %v2529_v46 = vld [vmem:[#allocation3 + $0x90] sm:$0xf]  ;;  %733 = vst [vmem:[#allocation3 + $0x2c] sm:$0xf] %v699_v41  ;;  %v459_v49 = vsel %vm3240_vm8, %v385_v32, %v458_v44  ;;  %v2465_v60 = vld [vmem:[#allocation3 + $0x8] sm:$0xf] }
  0x30   : > { %2051 = vmatpush.bf16.msrb.mxu1 %v2941_v2  ;;  %2138 = vmatpush.bf16.msrb.mxu0 %v2965_v17  ;;  %v2913_v51 = vld [vmem:[#allocation3 + $0xb0] sm:$0xf0]  ;;  %454 = vst [vmem:[#allocation2 + $0x10] sm:$0xf] %v453_v43  ;;  %v2962_v62 = vld [vmem:[%s3700_s3 + $0x118] sm:$0xff]  ;;  %v378_v63 = vrot.slane %v3311_v21, 4 }
  0x31   : > { %v2530_v53 = vor.u32 %v2913_v51, %v2529_v46  ;;  %v501_v54 = vld [vmem:[#allocation2 + $0x38] sm:$0xf]  ;;  %460 = vst [vmem:[#allocation2 + $0x18] sm:$0xf] %v459_v49  ;;  %v386_v0 = vrot.slane %v3315_v24, 4  ;;  %2196 = vmatpush.bf16.msrb.mxu2 %v2981_v57  ;;  %v2937_v2 = vld [vmem:[%s3700_s3 + $0x50] sm:$0xff] }
  0x32   : > { %v2895_v56 = vld [vmem:[#allocation3 + $0x20] sm:$0xf0]  ;;  %509 = vst [vmem:[#allocation3 + $0xfc] sm:$0xf] %v501_v54  ;;  %v510_v5 = vld [vmem:[#allocation2] sm:$0xf] }
  0x33   : > { %2039 = vmatmul.bf16.vlgmr.msra.gmra.mxu1 %v2530_v53  ;;  %v2458_v58 = vor.u32 %v2895_v56, %v2457_v39  ;;  %333 = vst [vmem:[#allocation2 + $0x14] sm:$0x1] %v332_v50  ;;  %v2961_v4 = vld [vmem:[%s3700_s3 + $0x110] sm:$0xff]  ;;  %v511_v6 = vld [vmem:[#allocation2 + $0x4] sm:$0x1]  ;;  %v2936_v24 = vld [vmem:[%s3700_s3 + $0x48] sm:$0xff] }
  0x34   : > { %2052 = vmatpush.bf16.msrb.mxu1 %v2940_v28  ;;  %2139 = vmatpush.bf16.msrb.mxu0 %v2964_v34  ;;  %336 = vst [vmem:[#allocation2 + $0x1c] sm:$0x1] %v335_v55  ;;  %v512_v17 = vld [vmem:[#allocation2 + $0x8] sm:$0xf]  ;;  %v513_v18 = vld [vmem:[#allocation2 + $0xc] sm:$0x1] }
  0x35   : > { %2029 = vmatmul.bf16.vlgmr.msra.gmra.mxu0 %v2458_v58  ;;  %vm526_vm10 = vsmask.f32 3328  ;;  %v2565_v22 = vld [vmem:[#allocation3 + $0xd8] sm:$0xf]  ;;  %vm527_vm11 = vsmask.f32 7440 }
  0x36   : > { %v2896_v1 = vld [vmem:[#allocation3 + $0x28] sm:$0xf0]  ;;  %v2960_v28 = vld [vmem:[%s3700_s3 + $0x108] sm:$0xff]  ;;  %v530_v29 = vshrl.u32 %v510_v5, 16  ;;  %v533_v30 = vshll.u32 %v510_v5, 16  ;;  %v539_v32 = vshll.u32 %v511_v6, 16  ;;  %vm3391_vm12 = vmor %vm526_vm10, %vm527_vm11 }
  0x37   : > { %v2466_v7 = vor.u32 %v2896_v1, %v2465_v60  ;;  %v496_v10 = vld [vmem:[#allocation2 + $0x10] sm:$0xf]  ;;  %v544_v34 = vshrl.u32 %v512_v17, 16  ;;  %v547_v35 = vshll.u32 %v512_v17, 16  ;;  %v553_v37 = vshll.u32 %v513_v18, 16  ;;  %v2980_v38 = vld [vmem:[%s3700_s3 + $0x1a8] sm:$0xff] }
  0x38   : > { %2053 = vmatpush.bf16.msrb.mxu1 %v2939_v42  ;;  %2140 = vmatpush.bf16.msrb.mxu0 %v2963_v48  ;;  %v741_v12 = vld [vmem:[#allocation2 + $0x10] sm:$0xf]  ;;  %v497_v19 = vld [vmem:[#allocation2 + $0x18] sm:$0xf]  ;;  %504 = vst [vmem:[#allocation3 + $0x48] sm:$0xf] %v496_v10 }
  0x39   : > { %v3361_v13 = vld [vmem:[#allocation2 + $0x10] sm:$0xe]  ;;  %2087 = vmatmul.bf16.vlgmr.msra.gmra.mxu2 %v2466_v7  ;;  %505 = vst [vmem:[#allocation3 + $0x6c] sm:$0xf] %v497_v19  ;;  %v3363_v20 = vld [vmem:[#allocation2 + $0x18] sm:$0xe] }
  0x3a   : > { %v2433_v21 = vrot.slane %v3361_v13, 9  ;;  %v2922_v23 = vld [vmem:[#allocation3 + $0xf8] sm:$0xf0]  ;;  %749 = vst [vmem:[#allocation3 + $0x30] sm:$0xf] %v741_v12  ;;  %v2434_v41 = vrot.slane %v3363_v20, 9  ;;  %2197 = vmatpush.bf16.msrb.mxu2 %v2980_v38 }
  0x3b   : > { %v455_v25 = vld [vmem:[#allocation2 + $0x14] sm:$0x1]  ;;  %v461_v27 = vld [vmem:[#allocation2 + $0x1c] sm:$0x1]  ;;  %v532_v42 = vrot.slane %v530_v29, 4  ;;  %v535_v43 = vrot.slane %v533_v30, 5  ;;  %v2566_v52 = vor.u32 %v2922_v23, %v2565_v22 }
  0x3c   : > { %2054 = vmatpush.bf16.msrb.mxu1 %v2938_v61  ;;  %2141 = vmatpush.bf16.msrb.mxu0 %v2962_v62  ;;  %v456_v26 = vsel %vm3163_vm2, %v378_v63, %v455_v25  ;;  %v462_v33 = vsel %vm3163_vm2, %v386_v0, %v461_v27  ;;  %v2892_v39 = vld [vmem:[#allocation3 + $0xc] sm:$0xf]  ;;  %v541_v44 = vrot.slane %v539_v32, 5  ;;  %v2935_v45 = vld [vmem:[%s3700_s3 + $0x40] sm:$0xff]  ;;  %v546_v46 = vrot.slane %v544_v34, 4  ;;  %v2989_v51 = vld [vmem:[%s3700_s3 + $0x1f0] sm:$0xff] }
  0x3d   : > { %457 = vst [vmem:[#allocation2 + $0x14] sm:$0x1] %v456_v26  ;;  %v549_v48 = vrot.slane %v547_v35, 5  ;;  %v555_v49 = vrot.slane %v553_v37, 5  ;;  %v742_v50 = vld [vmem:[#allocation2 + $0x18] sm:$0xf]  ;;  %v536_v54 = vor.u32 %v535_v43, %v532_v42  ;;  %2225 = vmatpush.bf16.msrb.mxu3 %v2989_v51 }
  0x3e   : > { %463 = vst [vmem:[#allocation2 + $0x1c] sm:$0x1] %v462_v33  ;;  %v2974_v55 = vld [vmem:[%s3700_s3 + $0x178] sm:$0xff]  ;;  %v743_v56 = vld [vmem:[#allocation2 + $0x20] sm:$0xf]  ;;  %s2430_s7 = sshll.u32 %s3714_s19, 1 }
  0x3f   : > { %v2493_v53 = vld [vmem:[#allocation3 + $0x48] sm:$0xf]  ;;  %750 = vst [vmem:[#allocation3 + $0x54] sm:$0xf] %v742_v50  ;;  %v550_v59 = vor.u32 %v549_v48, %v546_v46  ;;  %v756_v60 = vld [vmem:[#allocation2 + $0x8] sm:$0xf]  ;;  %s235_s22 = scalar_lea.vmem %s3702_s5, %s2430_s7 }
  0x40   : > { %2055 = vmatpush.bf16.msrb.mxu1 %v2937_v2  ;;  %2142 = vmatpush.bf16.msrb.mxu0 %v2961_v4  ;;  %v2904_v57 = vld [vmem:[#allocation3 + $0x68] sm:$0xf0]  ;;  %751 = vst [vmem:[#allocation3 + $0x78] sm:$0xf] %v743_v56  ;;  %v537_v63 = vrot.slane %v536_v54, 4  ;;  %v773_v1 = vshrl.u32 %v756_v60, 16 }
  0x41   : > { %v2494_v61 = vor.u32 %v2904_v57, %v2493_v53  ;;  %v2467_v62 = vld [vmem:[#allocation3 + $0x2c] sm:$0xf0]  ;;  %v757_v0 = vld [vmem:[#allocation2 + $0xc] sm:$0x1]  ;;  %v551_v4 = vrot.slane %v550_v59, 4  ;;  %v776_v7 = vshll.u32 %v756_v60, 16 }
  0x42   : > { %v2470_v2 = vor.u32 %v2892_v39, %v2467_v62  ;;  %v2959_v5 = vld [vmem:[%s3700_s3 + $0x100] sm:$0xff]  ;;  %v758_v6 = vld [vmem:[#allocation2 + $0x10] sm:$0xf]  ;;  %v782_v10 = vshll.u32 %v757_v0, 16  ;;  %v542_v17 = vsel %vm3391_vm12, %v537_v63, %v541_v44  ;;  %v775_v19 = vrot.slane %v773_v1, 4  ;;  %v2988_v56 = vld [vmem:[%s3700_s3 + $0x1e8] sm:$0xff] }
  0x43   : > { %2044 = vmatmul.bf16.gmra.mxu1 %v2566_v52  ;;  %v787_v20 = vshrl.u32 %v758_v6, 16  ;;  %649 = vst [vmem:[#allocation3 + $0x4] sm:$0xf] %v542_v17  ;;  %v778_v25 = vrot.slane %v776_v7, 5  ;;  %v337_v34 = vld [vmem:[#allocation2 + $0x24] sm:$0x1]  ;;  %2226 = vmatpush.bf16.msrb.mxu3 %v2988_v56 }
  0x44   : > { %2056 = vmatpush.bf16.msrb.mxu1 %v2936_v24  ;;  %2143 = vmatpush.bf16.msrb.mxu0 %v2960_v28  ;;  %v662_v12 = vld [vmem:[#allocation2 + $0x14] sm:$0x1]  ;;  %v556_v24 = vsel %vm3391_vm12, %v551_v4, %v555_v49  ;;  %v790_v28 = vshll.u32 %v758_v6, 16  ;;  %v784_v32 = vrot.slane %v782_v10, 5  ;;  %v338_v38 = vsel %vm3190_vm4, 0, %v337_v34  ;;  %v2979_v49 = vld [vmem:[%s3700_s3 + $0x1a0] sm:$0xff] }
  0x45   : > { %v759_v18 = vld [vmem:[#allocation2 + $0x14] sm:$0x1]  ;;  %2116 = vmatmul.bf16.vlgmr.msra.gmra.mxu3 %v2470_v2  ;;  %v664_v22 = vld [vmem:[#allocation2 + $0x1c] sm:$0x1]  ;;  %v702_v23 = vrot.slane %v662_v12, 5  ;;  %2034 = vmatmul.bf16.gmra.mxu0 %v2494_v61  ;;  %v789_v27 = vrot.slane %v787_v20, 4  ;;  %v779_v30 = vor.u32 %v778_v25, %v775_v19 }
  0x46   : > { %v706_v26 = vrot.slane %v664_v22, 5  ;;  %650 = vst [vmem:[#allocation3 + $0x28] sm:$0xf] %v556_v24  ;;  %v796_v33 = vshll.u32 %v759_v18, 16  ;;  %v792_v37 = vrot.slane %v790_v28, 5  ;;  %v394_v46 = vrot.slane %v3231_v8, 4  ;;  %2198 = vmatpush.bf16.msrb.mxu2 %v2979_v49 }
  0x47   : > { %v703_v29 = vsel %vm3256_vm9, %v2433_v21, %v702_v23  ;;  %v780_v39 = vrot.slane %v779_v30, 4  ;;  %v340_v13 = vld [vmem:[#allocation2 + $0x2c] sm:$0x1]  ;;  %339 = vst [vmem:[#allocation2 + $0x24] sm:$0x1] %v338_v38  ;;  %v402_v50 = vrot.slane %v3233_v9, 4 }
  0x48   : > { %2057 = vmatpush.bf16.msrb.mxu1 %v2935_v45  ;;  %2144 = vmatpush.bf16.msrb.mxu0 %v2959_v5  ;;  %v707_v35 = vsel %vm3256_vm9, %v2434_v41, %v706_v26  ;;  %734 = vst [vmem:[#allocation3 + $0x50] sm:$0xf] %v703_v29  ;;  %v798_v42 = vrot.slane %v796_v33, 5  ;;  %v793_v43 = vor.u32 %v792_v37, %v789_v27  ;;  %v341_v21 = vsel %vm3190_vm4, 0, %v340_v13  ;;  %v3412_v44 = vld [vmem:[#allocation2 + $0x20] sm:$0xe] }
  0x49   : > { %735 = vst [vmem:[#allocation3 + $0x74] sm:$0xf] %v707_v35  ;;  %v2973_v41 = vld [vmem:[%s3700_s3 + $0x170] sm:$0xff]  ;;  %v3014_v45 = vunpack.c.h.bf16 %v3198_v40  ;;  %v785_v48 = vsel %vm3391_vm12, %v780_v39, %v784_v32  ;;  %v2901_v52 = vld [vmem:[#allocation3 + $0x54] sm:$0xf]  ;;  %v2435_v8 = vrot.slane %v3412_v44, 9 }
  0x4a   : > { %342 = vst [vmem:[#allocation2 + $0x2c] sm:$0x1] %v341_v21  ;;  %v2891_v51 = vld [vmem:[#allocation3 + $0x4] sm:$0xf]  ;;  %v2503_v53 = vld [vmem:[#allocation3 + $0x74] sm:$0xf0] }
  0x4b   : > { %v794_v54 = vrot.slane %v793_v43, 4  ;;  %892 = vst [vmem:[#allocation3 + $0x10] sm:$0xf] %v785_v48  ;;  %v264_v40 = vmul.f32 %v3154_v11, %v3014_v45  ;;  %v514_v57 = vld [vmem:[#allocation2 + $0x10] sm:$0xf]  ;;  %v2506_v17 = vor.u32 %v2901_v52, %v2503_v53  ;;  %v2978_v22 = vld [vmem:[%s3700_s3 + $0x198] sm:$0xff] }
  0x4c   : > { %2166 = vmatpush.bf16.msra.mxu1 %v2974_v55  ;;  %v515_v59 = vld [vmem:[#allocation2 + $0x14] sm:$0x1]  ;;  %v516_v60 = vld [vmem:[#allocation2 + $0x18] sm:$0xf]  ;;  %v517_v61 = vld [vmem:[#allocation2 + $0x1c] sm:$0x1]  ;;  %2199 = vmatpush.bf16.msrb.mxu2 %v2978_v22 }
  0x4d   : > { %v2459_v55 = vld [vmem:[#allocation3 + $0x24] sm:$0xf0]  ;;  %v799_v9 = vsel %vm3391_vm12, %v794_v54, %v798_v42  ;;  %v3433_v62 = vadd.f32 %v3159_v14, %v264_v40  ;;  %v558_v0 = vshrl.u32 %v514_v57, 16  ;;  %v561_v1 = vshll.u32 %v514_v57, 16  ;;  %v3435_v4 = vld [vmem:[#allocation2 + $0x28] sm:$0xe] }
  0x4e   : > { %v2462_v11 = vor.u32 %v2891_v51, %v2459_v55  ;;  %893 = vst [vmem:[#allocation3 + $0x34] sm:$0xf] %v799_v9  ;;  %v567_v5 = vshll.u32 %v515_v59, 16  ;;  %v572_v6 = vshrl.u32 %v516_v60, 16  ;;  %v575_v7 = vshll.u32 %v516_v60, 16  ;;  %v2972_v14 = vld [vmem:[%s3700_s3 + $0x168] sm:$0xff] }
  0x4f   : > { %v2501_v63 = vld [vmem:[#allocation3 + $0x50] sm:$0xf]  ;;  %v581_v10 = vshll.u32 %v517_v61, 16  ;;  %v467_v18 = vld [vmem:[#allocation2 + $0x24] sm:$0x1]  ;;  %v560_v19 = vrot.slane %v558_v0, 4 }
  0x50   : > { %2167 = vmatpush.bf16.msra.mxu1 %v2973_v41  ;;  %v2905_v2 = vld [vmem:[#allocation3 + $0x70] sm:$0xf0]  ;;  %v563_v20 = vrot.slane %v561_v1, 5  ;;  %v468_v23 = vsel %vm3163_vm2, %v394_v46, %v467_v18  ;;  %v569_v25 = vrot.slane %v567_v5, 5  ;;  %v574_v26 = vrot.slane %v572_v6, 4  ;;  %v3448_v28 = vld [vmem:[%s3700_s3 + $0x238] sm:$0xff] }
  0x51   : > { %v2502_v12 = vor.u32 %v2905_v2, %v2501_v63  ;;  %v473_v24 = vld [vmem:[#allocation2 + $0x2c] sm:$0x1]  ;;  %v577_v27 = vrot.slane %v575_v7, 5  ;;  %469 = vst [vmem:[#allocation2 + $0x24] sm:$0x1] %v468_v23  ;;  %v583_v33 = vrot.slane %v581_v10, 5  ;;  %2253 = vmatpush.bf16.msra.mxu0 %v3448_v28 }
  0x52   : > { %v2473_v29 = vld [vmem:[#allocation3 + $0x10] sm:$0xf]  ;;  %v474_v30 = vsel %vm3163_vm2, %v402_v50, %v473_v24  ;;  %v564_v32 = vor.u32 %v563_v20, %v560_v19  ;;  %v744_v37 = vld [vmem:[#allocation2 + $0x28] sm:$0xf]  ;;  %v745_v38 = vld [vmem:[#allocation2 + $0x30] sm:$0xf] }
  0x53   : > { %2092 = vmatmul.bf16.gmra.mxu2 %v2502_v12  ;;  %v2987_v34 = vld [vmem:[%s3700_s3 + $0x1e0] sm:$0xff]  ;;  %2058 = vmatmul.bf16.vlgmr.msrb.gmra.mxu1 %v2462_v11  ;;  %475 = vst [vmem:[#allocation2 + $0x2c] sm:$0x1] %v474_v30  ;;  %v578_v35 = vor.u32 %v577_v27, %v574_v26  ;;  %v2436_v39 = vrot.slane %v3435_v4, 9  ;;  %v760_v13 = vld [vmem:[#allocation2 + $0x18] sm:$0xf] }
  0x54   : > { %2168 = vmatpush.bf16.msra.mxu1 %v2972_v14  ;;  %v565_v42 = vrot.slane %v564_v32, 4  ;;  %752 = vst [vmem:[#allocation3 + $0x9c] sm:$0xf] %v744_v37  ;;  %v801_v41 = vshrl.u32 %v760_v13, 16  ;;  %2227 = vmatpush.bf16.msrb.mxu3 %v2987_v34  ;;  %v761_v48 = vld [vmem:[#allocation2 + $0x1c] sm:$0x1] }
  0x55   : > { %2121 = vmatmul.bf16.gmra.mxu3 %v2506_v17  ;;  %v2897_v43 = vld [vmem:[#allocation3 + $0x30] sm:$0xf0]  ;;  %v579_v21 = vrot.slane %v578_v35, 4  ;;  %753 = vst [vmem:[#allocation3 + $0xc0] sm:$0xf] %v745_v38  ;;  %v804_v50 = vshll.u32 %v760_v13, 16 }
  0x56   : > { %v2474_v45 = vor.u32 %v2897_v43, %v2473_v29  ;;  %v570_v46 = vsel %vm3391_vm12, %v565_v42, %v569_v25  ;;  %v762_v49 = vld [vmem:[#allocation2 + $0x20] sm:$0xf]  ;;  %v284_v51 = vmax.f32 %v3433_v62, 0.0  ;;  %v803_v53 = vrot.slane %v801_v41, 4  ;;  %v343_v57 = vld [vmem:[#allocation2 + $0x34] sm:$0x1] }
  0x57   : > { %v584_v52 = vsel %vm3391_vm12, %v579_v21, %v583_v33  ;;  %651 = vst [vmem:[#allocation3 + $0x4c] sm:$0xf] %v570_v46  ;;  %v810_v54 = vshll.u32 %v761_v48, 16  ;;  %v815_v40 = vshrl.u32 %v762_v49, 16  ;;  %v806_v55 = vrot.slane %v804_v50, 5  ;;  %v2971_v30 = vld [vmem:[%s3700_s3 + $0x160] sm:$0xff] }
  0x58   : > { %2145 = vmatmul.bf16.vlgmr.msrb.gmra.mxu0 %v2474_v45  ;;  %652 = vst [vmem:[#allocation3 + $0x70] sm:$0xf] %v584_v52  ;;  %v818_v56 = vshll.u32 %v762_v49, 16  ;;  %v666_v9 = vld [vmem:[#allocation2 + $0x24] sm:$0x1]  ;;  %v344_v4 = vsel %vm3190_vm4, 0, %v343_v57  ;;  %v3464_v6 = vpack.c.bf16 %v284_v51, %v284_v51  ;;  %2169 = vmatpush.bf16.msra.mxu1 %v2971_v30 }
  0x59   : > { %v763_v59 = vld [vmem:[#allocation2 + $0x24] sm:$0x1]  ;;  %v812_v60 = vrot.slane %v810_v54, 5  ;;  %v817_v61 = vrot.slane %v815_v40, 4  ;;  %v710_v11 = vrot.slane %v666_v9, 5  ;;  %v807_v0 = vor.u32 %v806_v55, %v803_v53  ;;  %v2977_v32 = vld [vmem:[%s3700_s3 + $0x190] sm:$0xff] }
  0x5a   : > { %v668_v63 = vld [vmem:[#allocation2 + $0x2c] sm:$0x1]  ;;  %v820_v62 = vrot.slane %v818_v56, 5  ;;  %v824_v1 = vshll.u32 %v763_v59, 16  ;;  %v346_v5 = vld [vmem:[#allocation2 + $0x3c] sm:$0x1]  ;;  %2200 = vmatpush.bf16.msrb.mxu2 %v2977_v32 }
  0x5b   : > { %v714_v2 = vrot.slane %v668_v63, 5  ;;  %v711_v7 = vsel %vm3256_vm9, %v2435_v8, %v710_v11  ;;  %v2910_v10 = vld [vmem:[#allocation3 + $0x9c] sm:$0xf]  ;;  %v808_v12 = vrot.slane %v807_v0, 4  ;;  %345 = vst [vmem:[#allocation2 + $0x34] sm:$0x1] %v344_v4 }
  0x5c   : > { %v821_v17 = vor.u32 %v820_v62, %v817_v61  ;;  %v826_v18 = vrot.slane %v824_v1, 5  ;;  %736 = vst [vmem:[#allocation3 + $0x98] sm:$0xf] %v711_v7  ;;  %v2539_v20 = vld [vmem:[#allocation3 + $0xbc] sm:$0xf0]  ;;  %v347_v14 = vsel %vm3190_vm4, 0, %v346_v5 }
  0x5d   : > { %v715_v19 = vsel %vm3256_vm9, %v2436_v39, %v714_v2  ;;  %v813_v44 = vsel %vm3391_vm12, %v808_v12, %v812_v60  ;;  %v410_v8 = vrot.slane %v3272_v47, 4  ;;  %v418_v24 = vrot.slane %v3298_v3, 4  ;;  %348 = vst [vmem:[#allocation2 + $0x3c] sm:$0x1] %v347_v14  ;;  %v3489_v47 = vld [vmem:[%s3700_s3 + $0x230] sm:$0xff]  ;;  %v2986_v34 = vld [vmem:[%s3700_s3 + $0x1d8] sm:$0xff] }
  0x5e   : > { %737 = vst [vmem:[#allocation3 + $0xbc] sm:$0xf] %v715_v19  ;;  %v2900_v22 = vld [vmem:[#allocation3 + $0x4c] sm:$0xf]  ;;  %v822_v23 = vrot.slane %v821_v17, 4  ;;  %v2542_v27 = vor.u32 %v2910_v10, %v2539_v20  ;;  %v420_v3 = vshrl.u32 %v3464_v6, 16  ;;  %2254 = vmatpush.bf16.msra.mxu0 %v3489_v47  ;;  %2228 = vmatpush.bf16.msrb.mxu3 %v2986_v34 }
  0x5f   : > { %v2495_v25 = vld [vmem:[#allocation3 + $0x6c] sm:$0xf0]  ;;  %894 = vst [vmem:[#allocation3 + $0x58] sm:$0xf] %v813_v44  ;;  %v3492_v33 = vld [vmem:[#allocation2 + $0x30] sm:$0xe] }
  0x60   : > { %v2498_v26 = vor.u32 %v2900_v22, %v2495_v25  ;;  %v827_v29 = vsel %vm3391_vm12, %v822_v23, %v826_v18  ;;  %v518_v35 = vld [vmem:[#allocation2 + $0x20] sm:$0xf]  ;;  %v2970_v37 = vld [vmem:[%s3700_s3 + $0x158] sm:$0xff]  ;;  %v519_v38 = vld [vmem:[#allocation2 + $0x24] sm:$0x1]  ;;  %v2437_v57 = vrot.slane %v3492_v33, 9 }
  0x61   : > { %895 = vst [vmem:[#allocation3 + $0x7c] sm:$0xf] %v827_v29  ;;  %v520_v39 = vld [vmem:[#allocation2 + $0x28] sm:$0xf]  ;;  %v521_v42 = vld [vmem:[#allocation2 + $0x2c] sm:$0x1]  ;;  %2170 = vmatpush.bf16.msra.mxu1 %v2970_v37 }
  0x62   : > { %v479_v13 = vld [vmem:[#allocation2 + $0x34] sm:$0x1]  ;;  %v586_v43 = vshrl.u32 %v518_v35, 16  ;;  %v589_v21 = vshll.u32 %v518_v35, 16  ;;  %v595_v41 = vshll.u32 %v519_v38, 16  ;;  %v600_v45 = vshrl.u32 %v520_v39, 16 }
  0x63   : > { %2063 = vmatmul.bf16.gmra.mxu1 %v2498_v26  ;;  %v2537_v46 = vld [vmem:[#allocation3 + $0x98] sm:$0xf]  ;;  %v480_v48 = vsel %vm3163_vm2, %v410_v8, %v479_v13  ;;  %v603_v49 = vshll.u32 %v520_v39, 16  ;;  %v609_v50 = vshll.u32 %v521_v42, 16  ;;  %v2975_v60 = vld [vmem:[%s3700_s3 + $0x180] sm:$0xff]  ;;  %v3520_v7 = vrot.slane %v420_v3, 7 }
  0x64   : > { %v2976_v51 = vld [vmem:[%s3700_s3 + $0x188] sm:$0xff]  ;;  %481 = vst [vmem:[#allocation2 + $0x34] sm:$0x1] %v480_v48  ;;  %v588_v54 = vrot.slane %v586_v43, 4  ;;  %v591_v40 = vrot.slane %v589_v21, 5  ;;  %v602_v9 = vrot.slane %v600_v45, 4 }
  0x65   : > { %2126 = vmatmul.bf16.gmra.mxu3 %v2542_v27  ;;  %v3509_v52 = vld [vmem:[%s3700_s3 + $0x228] sm:$0xff]  ;;  %v605_v59 = vrot.slane %v603_v49, 5  ;;  %2201 = vmatpush.bf16.msrb.mxu2 %v2976_v51  ;;  %v485_v61 = vld [vmem:[#allocation2 + $0x3c] sm:$0x1]  ;;  %v597_v11 = vrot.slane %v595_v41, 5  ;;  %v611_v0 = vrot.slane %v609_v50, 5 }
  0x66   : > { %v2914_v53 = vld [vmem:[#allocation3 + $0xb8] sm:$0xf0]  ;;  %v2509_v56 = vld [vmem:[#allocation3 + $0x58] sm:$0xf]  ;;  %v592_v63 = vor.u32 %v591_v40, %v588_v54  ;;  %2255 = vmatpush.bf16.msra.mxu0 %v3509_v52  ;;  %v317_v62 = vld [vmem:[#allocation2 + $0x40] sm:$0x1]  ;;  %v486_v2 = vsel %vm3163_vm2, %v418_v24, %v485_v61 }
  0x67   : > { %v2538_v55 = vor.u32 %v2914_v53, %v2537_v46  ;;  %v606_v4 = vor.u32 %v605_v59, %v602_v9  ;;  %v318_v5 = vsel %vm3163_vm2, 0, %v317_v62  ;;  %v746_v10 = vld [vmem:[#allocation2 + $0x38] sm:$0xf]  ;;  %487 = vst [vmem:[#allocation2 + $0x3c] sm:$0x1] %v486_v2  ;;  %v423_v18 = vshll.u32 %v3464_v6, 16 }
  0x68   : > { %v2906_v1 = vld [vmem:[#allocation3 + $0x78] sm:$0xf0]  ;;  %v593_v17 = vrot.slane %v592_v63, 4  ;;  %v764_v19 = vld [vmem:[#allocation2 + $0x28] sm:$0xf]  ;;  %v2985_v37 = vld [vmem:[%s3700_s3 + $0x1d0] sm:$0xff] }
  0x69   : > { %2097 = vmatmul.bf16.gmra.mxu2 %v2538_v55  ;;  %v2510_v12 = vor.u32 %v2906_v1, %v2509_v56  ;;  %v671_v20 = vld [vmem:[#allocation2 + $0x38] sm:$0xe]  ;;  %v607_v14 = vrot.slane %v606_v4, 4  ;;  %319 = vst [vmem:[#allocation2 + $0x40] sm:$0x1] %v318_v5  ;;  %v829_v44 = vshrl.u32 %v764_v19, 16  ;;  %v425_v3 = vor.u32 %v423_v18, %v3520_v7  ;;  %2229 = vmatpush.bf16.msrb.mxu3 %v2985_v37 }
  0x6a   : > { %2202 = vmatpush.bf16.msrb.mxu2 %v2975_v60  ;;  %v765_v22 = vld [vmem:[#allocation2 + $0x2c] sm:$0x1]  ;;  %v598_v23 = vsel %vm3391_vm12, %v593_v17, %v597_v11  ;;  %754 = vst [vmem:[#allocation3 + $0xe4] sm:$0xf] %v746_v10  ;;  %v766_v8 = vld [vmem:[#allocation2 + $0x30] sm:$0xf] }
  0x6b   : > { %2150 = vmatmul.bf16.gmra.mxu0 %v2510_v12  ;;  %v832_v24 = vshll.u32 %v764_v19, 16  ;;  %v838_v25 = vshll.u32 %v765_v22, 16  ;;  %v670_v26 = vld [vmem:[#allocation2 + $0x34] sm:$0x1]  ;;  %v612_v6 = vsel %vm3391_vm12, %v607_v14, %v611_v0  ;;  %653 = vst [vmem:[#allocation3 + $0x94] sm:$0xf] %v598_v23 }
  0x6c   : > { %v767_v27 = vld [vmem:[#allocation2 + $0x34] sm:$0x1]  ;;  %v718_v29 = vrot.slane %v670_v26, 5  ;;  %654 = vst [vmem:[#allocation3 + $0xb8] sm:$0xf] %v612_v6  ;;  %v831_v30 = vrot.slane %v829_v44, 4 }
  0x6d   : > { %v834_v32 = vrot.slane %v832_v24, 5  ;;  %v843_v33 = vshrl.u32 %v766_v8, 16  ;;  %v846_v34 = vshll.u32 %v766_v8, 16  ;;  %v852_v35 = vshll.u32 %v767_v27, 16  ;;  %v2995_v38 = vld [vmem:[%s3700_s3 + $0x220] sm:$0xff]  ;;  %v2984_v41 = vld [vmem:[%s3700_s3 + $0x1c8] sm:$0xff] }
  0x6e   : > { %3049 = vmatpush.bf16.msra.mxu2 %v3448_v28  ;;  %v2969_v28 = vld [vmem:[%s3700_s3 + $0x150] sm:$0xff]  ;;  %v719_v39 = vsel %vm3256_vm9, %v2437_v57, %v718_v29  ;;  %v2438_v42 = vrot.slane %v671_v20, 9  ;;  %v840_v43 = vrot.slane %v838_v25, 5  ;;  %v672_v45 = vld [vmem:[#allocation2 + $0x3c] sm:$0x1]  ;;  %2256 = vmatpush.bf16.msra.mxu0 %v2995_v38  ;;  %v2968_v54 = vld [vmem:[%s3700_s3 + $0x148] sm:$0xff] }
  0x6f   : > { %v835_v13 = vor.u32 %v834_v32, %v831_v30  ;;  %v981_v21 = vld [vmem:[#allocation2 + $0x10] sm:$0xf]  ;;  %738 = vst [vmem:[#allocation3 + $0xe0] sm:$0xf] %v719_v39  ;;  %v845_v46 = vrot.slane %v843_v33, 4  ;;  %v848_v48 = vrot.slane %v846_v34, 5  ;;  %2171 = vmatpush.bf16.msra.mxu1 %v2969_v28  ;;  %2230 = vmatpush.bf16.msrb.mxu3 %v2984_v41 }
  0x70   : > { %v722_v49 = vrot.slane %v672_v45, 5  ;;  %v488_v50 = vld [vmem:[#allocation2 + $0x40] sm:$0xf]  ;;  %v982_v53 = vld [vmem:[#allocation2 + $0x18] sm:$0xf]  ;;  %v426_v37 = vrot.slane %v3520_v7, 4 }
  0x71   : > { %v836_v51 = vrot.slane %v835_v13, 4  ;;  %v489_v40 = vsel %vm3240_vm8, %v425_v3, %v488_v50  ;;  %v849_v55 = vor.u32 %v848_v48, %v845_v46  ;;  %989 = vst [vmem:[#allocation3 + $0x18] sm:$0xf] %v981_v21  ;;  %v522_v56 = vld [vmem:[#allocation2 + $0x30] sm:$0xf]  ;;  %v2983_v19 = vld [vmem:[%s3700_s3 + $0x1c0] sm:$0xff] }
  0x72   : > { %3050 = vmatpush.bf16.msra.mxu2 %v3489_v47  ;;  %v854_v47 = vrot.slane %v852_v35, 5  ;;  %v723_v57 = vsel %vm3256_vm9, %v2438_v42, %v722_v49  ;;  %v2909_v9 = vld [vmem:[#allocation3 + $0x94] sm:$0xf]  ;;  %490 = vst [vmem:[#allocation2 + $0x40] sm:$0xf] %v489_v40  ;;  %v614_v16 = vshrl.u32 %v522_v56, 16 }
  0x73   : > { %v841_v59 = vsel %vm3391_vm12, %v836_v51, %v840_v43  ;;  %v523_v60 = vld [vmem:[#allocation2 + $0x34] sm:$0x1]  ;;  %739 = vst [vmem:[#allocation3 + $0x104] sm:$0xf] %v723_v57  ;;  %v2531_v61 = vld [vmem:[#allocation3 + $0xb4] sm:$0xf0]  ;;  %2172 = vmatpush.bf16.msra.mxu1 %v2968_v54  ;;  %2231 = vmatpush.bf16.msrb.mxu3 %v2983_v19 }
  0x74   : > { %v850_v63 = vrot.slane %v849_v55, 4  ;;  %v2534_v11 = vor.u32 %v2909_v9, %v2531_v61  ;;  %896 = vst [vmem:[#allocation3 + $0xa0] sm:$0xf] %v841_v59  ;;  %v524_v0 = vld [vmem:[#allocation2 + $0x38] sm:$0xf]  ;;  %v616_v2 = vrot.slane %v614_v16, 4 }
  0x75   : > { %v525_v62 = vld [vmem:[#allocation2 + $0x3c] sm:$0x1]  ;;  %990 = vst [vmem:[#allocation3 + $0x3c] sm:$0xf] %v982_v53  ;;  %v617_v4 = vshll.u32 %v522_v56, 16  ;;  %v623_v5 = vshll.u32 %v523_v60, 16 }
  0x76   : > { %3051 = vmatpush.bf16.msra.mxu2 %v3509_v52  ;;  %v855_v1 = vsel %vm3391_vm12, %v850_v63, %v854_v47  ;;  %v2994_v52 = vld [vmem:[%s3700_s3 + $0x218] sm:$0xff]  ;;  %2068 = vmatmul.bf16.gmra.mxu1 %v2534_v11  ;;  %v628_v10 = vshrl.u32 %v524_v0, 16  ;;  %v631_v12 = vshll.u32 %v524_v0, 16  ;;  %v637_v18 = vshll.u32 %v525_v62, 16  ;;  %v349_v20 = vld [vmem:[#allocation2 + $0x44] sm:$0x1] }
  0x77   : > { %897 = vst [vmem:[#allocation3 + $0xc4] sm:$0xf] %v855_v1  ;;  %v619_v17 = vrot.slane %v617_v4, 5  ;;  %2257 = vmatpush.bf16.msra.mxu0 %v2994_v52  ;;  %v2573_v14 = vld [vmem:[#allocation3 + $0xe0] sm:$0xf]  ;;  %v625_v22 = vrot.slane %v623_v5, 5 }
  0x78   : > { %v630_v44 = vrot.slane %v628_v10, 4  ;;  %v633_v23 = vrot.slane %v631_v12, 5  ;;  %v350_v8 = vsel %vm3190_vm4, 0, %v349_v20  ;;  %v639_v26 = vrot.slane %v637_v18, 5  ;;  %v2967_v6 = vld [vmem:[%s3700_s3 + $0x140] sm:$0xff]  ;;  %v2993_v16 = vld [vmem:[%s3700_s3 + $0x210] sm:$0xff] }
  0x79   : > { %v747_v24 = vld [vmem:[#allocation2 + $0x40] sm:$0xf]  ;;  %v620_v25 = vor.u32 %v619_v17, %v616_v2  ;;  %351 = vst [vmem:[#allocation2 + $0x44] sm:$0x1] %v350_v8  ;;  %v768_v30 = vld [vmem:[#allocation2 + $0x38] sm:$0xf]  ;;  %2173 = vmatpush.bf16.msra.mxu1 %v2967_v6 }
  0x7a   : > { %3052 = vmatpush.bf16.msra.mxu2 %v2995_v38  ;;  %v2923_v27 = vld [vmem:[#allocation3 + $0x100] sm:$0xf0]  ;;  %755 = vst [vmem:[#allocation3 + $0x108] sm:$0xf] %v747_v24  ;;  %v634_v29 = vor.u32 %v633_v23, %v630_v44  ;;  %v769_v34 = vld [vmem:[#allocation2 + $0x3c] sm:$0x1] }
  0x7b   : > { %v2574_v32 = vor.u32 %v2923_v27, %v2573_v14  ;;  %v2545_v3 = vld [vmem:[#allocation3 + $0xa0] sm:$0xf]  ;;  %v621_v33 = vrot.slane %v620_v25, 4  ;;  %v857_v35 = vshrl.u32 %v768_v30, 16  ;;  %v770_v38 = vld [vmem:[#allocation2 + $0x40] sm:$0xf]  ;;  %2258 = vmatpush.bf16.msra.mxu0 %v2993_v16 }
  0x7c   : > { %v635_v28 = vrot.slane %v634_v29, 4  ;;  %v860_v39 = vshll.u32 %v768_v30, 16  ;;  %v2919_v42 = vld [vmem:[#allocation3 + $0xe4] sm:$0xf]  ;;  %v866_v41 = vshll.u32 %v769_v34, 16  ;;  %v871_v50 = vshrl.u32 %v770_v38, 16 }
  0x7d   : > { %2102 = vmatmul.bf16.gmra.mxu2 %v2574_v32  ;;  %v626_v43 = vsel %vm3391_vm12, %v621_v33, %v625_v22  ;;  %v859_v21 = vrot.slane %v857_v35, 4  ;;  %v997_v45 = vld [vmem:[#allocation2 + $0x10] sm:$0xf]  ;;  %v998_v7 = vld [vmem:[#allocation2 + $0x14] sm:$0x1]  ;;  %v874_v53 = vshll.u32 %v770_v38, 16 }
  0x7e   : > { %3053 = vmatpush.bf16.msra.mxu2 %v2994_v52  ;;  %v2915_v13 = vld [vmem:[#allocation3 + $0xc0] sm:$0xf0]  ;;  %v640_v48 = vsel %vm3391_vm12, %v635_v28, %v639_v26  ;;  %655 = vst [vmem:[#allocation3 + $0xdc] sm:$0xf] %v626_v43  ;;  %v862_v49 = vrot.slane %v860_v39, 5  ;;  %v868_v51 = vrot.slane %v866_v41, 5 }
  0x7f   : > { %v2546_v46 = vor.u32 %v2915_v13, %v2545_v3  ;;  %656 = vst [vmem:[#allocation3 + $0x100] sm:$0xf] %v640_v48  ;;  %v999_v54 = vld [vmem:[#allocation2 + $0x18] sm:$0xf]  ;;  %v873_v47 = vrot.slane %v871_v50, 4  ;;  %v1014_v57 = vshrl.u32 %v997_v45, 16 }
  0x80   : > { %v491_v40 = vld [vmem:[#allocation2 + $0x44] sm:$0x1]  ;;  %v863_v55 = vor.u32 %v862_v49, %v859_v21  ;;  %v1000_v56 = vld [vmem:[#allocation2 + $0x1c] sm:$0x1]  ;;  %v876_v60 = vrot.slane %v874_v53, 5  ;;  %v1017_v61 = vshll.u32 %v997_v45, 16 }
  0x81   : > { %2155 = vmatmul.bf16.gmra.mxu0 %v2546_v46  ;;  %v2575_v9 = vld [vmem:[#allocation3 + $0x104] sm:$0xf0]  ;;  %v492_v59 = vsel %vm3163_vm2, %v426_v37, %v491_v40  ;;  %v1023_v63 = vshll.u32 %v998_v7, 16  ;;  %v1016_v62 = vrot.slane %v1014_v57, 4  ;;  %v1028_v1 = vshrl.u32 %v999_v54, 16  ;;  %v2992_v12 = vld [vmem:[%s3700_s3 + $0x208] sm:$0xff] }
  0x82   : > { %v2578_v11 = vor.u32 %v2919_v42, %v2575_v9  ;;  %493 = vst [vmem:[#allocation2 + $0x44] sm:$0x1] %v492_v59  ;;  %v864_v0 = vrot.slane %v863_v55, 4  ;;  %v2481_v2 = vld [vmem:[#allocation3 + $0x18] sm:$0xf]  ;;  %v1019_v5 = vrot.slane %v1017_v61, 5  ;;  %3054 = vmatpush.bf16.msra.mxu2 %v2993_v16  ;;  %v877_v24 = vor.u32 %v876_v60, %v873_v47  ;;  %2259 = vmatpush.bf16.msra.mxu0 %v2992_v12 }
  0x83   : > { %v2898_v4 = vld [vmem:[#allocation3 + $0x38] sm:$0xf0]  ;;  %v1031_v52 = vshll.u32 %v999_v54, 16  ;;  %v983_v10 = vld [vmem:[#allocation2 + $0x20] sm:$0xf]  ;;  %v1030_v18 = vrot.slane %v1028_v1, 4 }
  0x84   : > { %2131 = vmatmul.bf16.gmra.mxu3 %v2578_v11  ;;  %v869_v17 = vsel %vm3391_vm12, %v864_v0, %v868_v51  ;;  %v1037_v19 = vshll.u32 %v1000_v56, 16  ;;  %v984_v20 = vld [vmem:[#allocation2 + $0x28] sm:$0xf]  ;;  %991 = vst [vmem:[#allocation3 + $0x60] sm:$0xf] %v983_v10  ;;  %v1020_v22 = vor.u32 %v1019_v5, %v1016_v62  ;;  %v1025_v44 = vrot.slane %v1023_v63, 5 }
  0x85   : > { %v2918_v14 = vld [vmem:[#allocation3 + $0xdc] sm:$0xf]  ;;  %898 = vst [vmem:[#allocation3 + $0xe8] sm:$0xf] %v869_v17  ;;  %v1033_v23 = vrot.slane %v1031_v52, 5  ;;  %v2991_v25 = vld [vmem:[%s3700_s3 + $0x200] sm:$0xff]  ;;  %v2482_v3 = vor.u32 %v2898_v4, %v2481_v2 }
  0x86   : > { %v2567_v8 = vld [vmem:[#allocation3 + $0xfc] sm:$0xf0]  ;;  %992 = vst [vmem:[#allocation3 + $0x84] sm:$0xf] %v984_v20  ;;  %v1021_v6 = vrot.slane %v1020_v22, 4  ;;  %v1039_v29 = vrot.slane %v1037_v19, 5  ;;  %3055 = vmatpush.bf16.msra.mxu2 %v2992_v12  ;;  %2260 = vmatpush.bf16.msra.mxu0 %v2991_v25 }
  0x87   : > { %v2570_v26 = vor.u32 %v2918_v14, %v2567_v8  ;;  %v1034_v27 = vor.u32 %v1033_v23, %v1030_v18  ;;  %v900_v30 = vld [vmem:[#allocation2 + $0x8] sm:$0xe]  ;;  %v901_v32 = vld [vmem:[#allocation2 + $0xc] sm:$0x1]  ;;  %v902_v33 = vld [vmem:[#allocation2 + $0x10] sm:$0xe] }
  0x88   : > { %v903_v34 = vld [vmem:[#allocation2 + $0x14] sm:$0x1]  ;;  %v2439_v35 = vrot.slane %v900_v30, 9  ;;  %v934_v37 = vrot.slane %v901_v32, 5  ;;  %v1026_v38 = vsel %vm3391_vm12, %v1021_v6, %v1025_v44  ;;  %v2440_v42 = vrot.slane %v902_v33, 9 }
  0x89   : > { %2073 = vmatmul.bf16.gmra.mxu1 %v2570_v26  ;;  %v771_v28 = vld [vmem:[#allocation2 + $0x44] sm:$0x1]  ;;  %v1035_v39 = vrot.slane %v1034_v27, 4  ;;  %v938_v13 = vrot.slane %v903_v34, 5  ;;  %v878_v43 = vrot.slane %v877_v24, 4 }
  0x8a   : > { %v880_v21 = vshll.u32 %v771_v28, 16  ;;  %1133 = vst [vmem:[#allocation3 + $0x1c] sm:$0xf] %v1026_v38  ;;  %v935_v41 = vsel %vm3256_vm9, %v2439_v35, %v934_v37  ;;  %v1001_v45 = vld [vmem:[#allocation2 + $0x20] sm:$0xf]  ;;  %3056 = vmatpush.bf16.msra.mxu2 %v2991_v25 }
  0x8b   : > { %v1040_v46 = vsel %vm3391_vm12, %v1035_v39, %v1039_v29  ;;  %v939_v48 = vsel %vm3256_vm9, %v2440_v42, %v938_v13  ;;  %972 = vst [vmem:[#allocation3 + $0x14] sm:$0xf] %v935_v41  ;;  %v1002_v50 = vld [vmem:[#allocation2 + $0x24] sm:$0x1]  ;;  %v1042_v7 = vshrl.u32 %v1001_v45, 16  ;;  %v1045_v55 = vshll.u32 %v1001_v45, 16 }
  0x8c   : > { %v882_v49 = vrot.slane %v880_v21, 5  ;;  %1134 = vst [vmem:[#allocation3 + $0x40] sm:$0xf] %v1040_v46  ;;  %v1003_v51 = vld [vmem:[#allocation2 + $0x28] sm:$0xf]  ;;  %v1051_v56 = vshll.u32 %v1002_v50, 16 }
  0x8d   : > { %2203 = vmatmul.bf16.vlgmr.msrb.gmra.mxu2 %v2482_v3  ;;  %973 = vst [vmem:[#allocation3 + $0x38] sm:$0xf] %v939_v48  ;;  %v1004_v54 = vld [vmem:[#allocation2 + $0x2c] sm:$0x1]  ;;  %v1044_v40 = vrot.slane %v1042_v7, 4  ;;  %v1056_v57 = vshrl.u32 %v1003_v51, 16 }
  0x8e   : > { %v883_v53 = vsel %vm3391_vm12, %v878_v43, %v882_v49  ;;  %v1141_v47 = vld [vmem:[#allocation2 + $0x10] sm:$0xe]  ;;  %v1059_v9 = vshll.u32 %v1003_v51, 16  ;;  %v1065_v59 = vshll.u32 %v1004_v54, 16  ;;  %v1047_v60 = vrot.slane %v1045_v55, 5 }
  0x8f   : > { %899 = vst [vmem:[#allocation3 + $0x10c] sm:$0xf] %v883_v53  ;;  %v1142_v61 = vld [vmem:[#allocation2 + $0x14] sm:$0x1]  ;;  %v1143_v63 = vld [vmem:[#allocation2 + $0x18] sm:$0xe] }
  0x90   : > { %v2447_v16 = vrot.slane %v1141_v47, 9  ;;  %v1053_v0 = vrot.slane %v1051_v56, 5  ;;  %v1058_v62 = vrot.slane %v1056_v57, 4  ;;  %v1061_v1 = vrot.slane %v1059_v9, 5  ;;  %v1144_v5 = vld [vmem:[#allocation2 + $0x1c] sm:$0x1] }
  0x91   : > { %v2894_v11 = vld [vmem:[#allocation3 + $0x1c] sm:$0xf]  ;;  %v1048_v4 = vor.u32 %v1047_v60, %v1044_v40  ;;  %v1175_v52 = vrot.slane %v1142_v61, 5  ;;  %v2448_v10 = vrot.slane %v1143_v63, 9  ;;  %v2581_v12 = vld [vmem:[#allocation3 + $0xe8] sm:$0xf] }
  0x92   : > { %v2893_v2 = vld [vmem:[#allocation3 + $0x14] sm:$0xf]  ;;  %v1062_v18 = vor.u32 %v1061_v1, %v1058_v62  ;;  %v1067_v19 = vrot.slane %v1065_v59, 5  ;;  %v1179_v20 = vrot.slane %v1144_v5, 5  ;;  %v2517_v22 = vld [vmem:[#allocation3 + $0x60] sm:$0xf] }
  0x93   : > { %v2483_v17 = vld [vmem:[#allocation3 + $0x3c] sm:$0xf0]  ;;  %v2907_v44 = vld [vmem:[#allocation3 + $0x80] sm:$0xf0]  ;;  %v1049_v8 = vrot.slane %v1048_v4, 4  ;;  %v1176_v24 = vsel %vm3256_vm9, %v2447_v16, %v1175_v52 }
  0x94   : > { %v2486_v14 = vor.u32 %v2894_v11, %v2483_v17  ;;  %v2475_v23 = vld [vmem:[#allocation3 + $0x34] sm:$0xf0]  ;;  %v985_v25 = vld [vmem:[#allocation2 + $0x30] sm:$0xf]  ;;  %v1063_v6 = vrot.slane %v1062_v18, 4  ;;  %v1180_v27 = vsel %vm3256_vm9, %v2448_v10, %v1179_v20  ;;  %v2518_v43 = vor.u32 %v2907_v44, %v2517_v22 }
  0x95   : > { %v2478_v26 = vor.u32 %v2893_v2, %v2475_v23  ;;  %1213 = vst [vmem:[#allocation3 + $0x20] sm:$0xf] %v1176_v24  ;;  %v986_v29 = vld [vmem:[#allocation2 + $0x38] sm:$0xf]  ;;  %v1054_v3 = vsel %vm3391_vm12, %v1049_v8, %v1053_v0  ;;  %v905_v33 = vld [vmem:[#allocation2 + $0x1c] sm:$0x1] }
  0x96   : > { %v904_v30 = vld [vmem:[#allocation2 + $0x18] sm:$0xe]  ;;  %v2924_v32 = vld [vmem:[#allocation3 + $0x108] sm:$0xf0]  ;;  %2232 = vmatmul.bf16.vlgmr.msrb.gmra.mxu3 %v2486_v14  ;;  %1214 = vst [vmem:[#allocation3 + $0x44] sm:$0xf] %v1180_v27  ;;  %v1068_v35 = vsel %vm3391_vm12, %v1063_v6, %v1067_v19 }
  0x97   : > { %v2582_v34 = vor.u32 %v2924_v32, %v2581_v12  ;;  %1135 = vst [vmem:[#allocation3 + $0x64] sm:$0xf] %v1054_v3  ;;  %v906_v37 = vld [vmem:[#allocation2 + $0x20] sm:$0xe]  ;;  %v907_v28 = vld [vmem:[#allocation2 + $0x24] sm:$0x1] }
  0x98   : > { %1136 = vst [vmem:[#allocation3 + $0x88] sm:$0xf] %v1068_v35  ;;  %v2441_v38 = vrot.slane %v904_v30, 9  ;;  %v942_v39 = vrot.slane %v905_v33, 5  ;;  %v2442_v42 = vrot.slane %v906_v37, 9  ;;  %v946_v13 = vrot.slane %v907_v28, 5 }
  0x99   : > { %2160 = vmatmul.bf16.gmra.mxu0 %v2582_v34  ;;  %2174 = vmatmul.bf16.vlgmr.msra.gmra.mxu1 %v2478_v26  ;;  %993 = vst [vmem:[#allocation3 + $0xa8] sm:$0xf] %v985_v25  ;;  %v1005_v21 = vld [vmem:[#allocation2 + $0x30] sm:$0xf]  ;;  %v1006_v41 = vld [vmem:[#allocation2 + $0x34] sm:$0x1] }
  0x9a   : > { %994 = vst [vmem:[#allocation3 + $0xcc] sm:$0xf] %v986_v29  ;;  %v943_v45 = vsel %vm3256_vm9, %v2441_v38, %v942_v39  ;;  %v947_v46 = vsel %vm3256_vm9, %v2442_v42, %v946_v13  ;;  %v1007_v48 = vld [vmem:[#allocation2 + $0x38] sm:$0xf]  ;;  %v1008_v49 = vld [vmem:[#allocation2 + $0x3c] sm:$0x1] }
  0x9b   : > { %974 = vst [vmem:[#allocation3 + $0x5c] sm:$0xf] %v943_v45  ;;  %v1070_v50 = vshrl.u32 %v1005_v21, 16  ;;  %v1073_v7 = vshll.u32 %v1005_v21, 16  ;;  %v1079_v51 = vshll.u32 %v1006_v41, 16  ;;  %v1084_v53 = vshrl.u32 %v1007_v48, 16 }
  0x9c   : > { %975 = vst [vmem:[#allocation3 + $0x80] sm:$0xf] %v947_v46  ;;  %v1087_v54 = vshll.u32 %v1007_v48, 16  ;;  %v1093_v40 = vshll.u32 %v1008_v49, 16  ;;  %v1145_v60 = vld [vmem:[#allocation2 + $0x20] sm:$0xe] }
  0x9d   : > { %2208 = vmatmul.bf16.gmra.mxu2 %v2518_v43  ;;  %v1072_v55 = vrot.slane %v1070_v50, 4  ;;  %v1075_v47 = vrot.slane %v1073_v7, 5  ;;  %v1086_v56 = vrot.slane %v1084_v53, 4  ;;  %v1081_v9 = vrot.slane %v1079_v51, 5  ;;  %v1146_v16 = vld [vmem:[#allocation2 + $0x24] sm:$0x1] }
  0x9e   : > { %v2903_v57 = vld [vmem:[#allocation3 + $0x64] sm:$0xf]  ;;  %v1089_v59 = vrot.slane %v1087_v54, 5  ;;  %v1147_v11 = vld [vmem:[#allocation2 + $0x28] sm:$0xe]  ;;  %v1095_v1 = vrot.slane %v1093_v40, 5 }
  0x9f   : > { %v2519_v61 = vld [vmem:[#allocation3 + $0x84] sm:$0xf0]  ;;  %v1076_v63 = vor.u32 %v1075_v47, %v1072_v55  ;;  %v2489_v0 = vld [vmem:[#allocation3 + $0x20] sm:$0xf]  ;;  %v1148_v2 = vld [vmem:[#allocation2 + $0x2c] sm:$0x1] }
  0xa0   : > { %v1090_v62 = vor.u32 %v1089_v59, %v1086_v56  ;;  %v2449_v4 = vrot.slane %v1145_v60, 9  ;;  %v1183_v5 = vrot.slane %v1146_v16, 5  ;;  %v2899_v52 = vld [vmem:[#allocation3 + $0x40] sm:$0xf0]  ;;  %v2450_v12 = vrot.slane %v1147_v11, 9 }
  0xa1   : > { %v1077_v10 = vrot.slane %v1076_v63, 4  ;;  %v1187_v17 = vrot.slane %v1148_v2, 5  ;;  %v2522_v18 = vor.u32 %v2903_v57, %v2519_v61  ;;  %v320_v22 = vld [vmem:[#allocation2 + $0x48] sm:$0x1]  ;;  %v2553_v25 = vld [vmem:[#allocation3 + $0xa8] sm:$0xf]  ;;  %v2490_v30 = vor.u32 %v2899_v52, %v2489_v0 }
  0xa2   : > { %v2902_v19 = vld [vmem:[#allocation3 + $0x5c] sm:$0xf]  ;;  %v1091_v20 = vrot.slane %v1090_v62, 4  ;;  %v1184_v14 = vsel %vm3256_vm9, %v2449_v4, %v1183_v5  ;;  %v321_v24 = vsel %vm3163_vm2, 0, %v320_v22  ;;  %v2916_v26 = vld [vmem:[#allocation3 + $0xc8] sm:$0xf0] }
  0xa3   : > { %v2511_v44 = vld [vmem:[#allocation3 + $0x7c] sm:$0xf0]  ;;  %v1082_v23 = vsel %vm3391_vm12, %v1077_v10, %v1081_v9  ;;  %v1188_v8 = vsel %vm3256_vm9, %v2450_v12, %v1187_v17  ;;  %1215 = vst [vmem:[#allocation3 + $0x68] sm:$0xf] %v1184_v14  ;;  %v987_v27 = vld [vmem:[#allocation2 + $0x40] sm:$0xf]  ;;  %v2554_v43 = vor.u32 %v2916_v26, %v2553_v25 }
  0xa4   : > { %v1096_v6 = vsel %vm3391_vm12, %v1091_v20, %v1095_v1  ;;  %1137 = vst [vmem:[#allocation3 + $0xac] sm:$0xf] %v1082_v23  ;;  %v908_v29 = vld [vmem:[#allocation2 + $0x28] sm:$0xe]  ;;  %v2514_v32 = vor.u32 %v2902_v19, %v2511_v44  ;;  %v909_v3 = vld [vmem:[#allocation2 + $0x2c] sm:$0x1] }
  0xa5   : > { %1138 = vst [vmem:[#allocation3 + $0xd0] sm:$0xf] %v1096_v6  ;;  %v910_v33 = vld [vmem:[#allocation2 + $0x30] sm:$0xe]  ;;  %v911_v34 = vld [vmem:[#allocation2 + $0x34] sm:$0x1] }
  0xa6   : > { %2237 = vmatmul.bf16.gmra.mxu3 %v2522_v18  ;;  %1216 = vst [vmem:[#allocation3 + $0x8c] sm:$0xf] %v1188_v8  ;;  %v2443_v35 = vrot.slane %v908_v29, 9  ;;  %v950_v37 = vrot.slane %v909_v3, 5  ;;  %v2444_v15 = vrot.slane %v910_v33, 9  ;;  %v954_v28 = vrot.slane %v911_v34, 5 }
  0xa7   : > { %322 = vst [vmem:[#allocation2 + $0x48] sm:$0x1] %v321_v24  ;;  %v352_v38 = vld [vmem:[#allocation2 + $0x4c] sm:$0x1]  ;;  %v1009_v13 = vld [vmem:[#allocation2 + $0x40] sm:$0xf] }
  0xa8   : > { %995 = vst [vmem:[#allocation3 + $0xf0] sm:$0xf] %v987_v27  ;;  %v951_v39 = vsel %vm3256_vm9, %v2443_v35, %v950_v37  ;;  %v353_v42 = vsel %vm3190_vm4, 0, %v352_v38  ;;  %v955_v21 = vsel %vm3256_vm9, %v2444_v15, %v954_v28  ;;  %v1010_v41 = vld [vmem:[#allocation2 + $0x44] sm:$0x1]  ;;  %v1098_v45 = vshrl.u32 %v1009_v13, 16 }
  0xa9   : > { %2261 = vmatmul.bf16.vlgmr.msra.gmra.mxu0 %v2490_v30  ;;  %2179 = vmatmul.bf16.gmra.mxu1 %v2514_v32  ;;  %976 = vst [vmem:[#allocation3 + $0xa4] sm:$0xf] %v951_v39  ;;  %v1101_v46 = vshll.u32 %v1009_v13, 16  ;;  %v1107_v48 = vshll.u32 %v1010_v41, 16  ;;  %v1149_v54 = vld [vmem:[#allocation2 + $0x30] sm:$0xe] }
  0xaa   : > { %977 = vst [vmem:[#allocation3 + $0xc8] sm:$0xf] %v955_v21  ;;  %v1100_v49 = vrot.slane %v1098_v45, 4  ;;  %v1150_v40 = vld [vmem:[#allocation2 + $0x34] sm:$0x1]  ;;  %v2451_v0 = vrot.slane %v1149_v54, 9 }
  0xab   : > { %354 = vst [vmem:[#allocation2 + $0x4c] sm:$0x1] %v353_v42  ;;  %v1103_v50 = vrot.slane %v1101_v46, 5  ;;  %v1109_v7 = vrot.slane %v1107_v48, 5  ;;  %v2912_v36 = vld [vmem:[#allocation3 + $0xac] sm:$0xf] }
  0xac   : > { %v2555_v51 = vld [vmem:[#allocation3 + $0xcc] sm:$0xf0]  ;;  %v1151_v55 = vld [vmem:[#allocation2 + $0x38] sm:$0xe]  ;;  %v1152_v57 = vld [vmem:[#allocation2 + $0x3c] sm:$0x1] }
  0xad   : > { %2213 = vmatmul.bf16.gmra.mxu2 %v2554_v43  ;;  %v1104_v53 = vor.u32 %v1103_v50, %v1100_v49  ;;  %v2525_v9 = vld [vmem:[#allocation3 + $0x68] sm:$0xf]  ;;  %v2908_v59 = vld [vmem:[#allocation3 + $0x88] sm:$0xf0]  ;;  %v1191_v62 = vrot.slane %v1150_v40, 5  ;;  %v2452_v1 = vrot.slane %v1151_v55, 9  ;;  %v2558_v17 = vor.u32 %v2912_v36, %v2555_v51 }
  0xae   : > { %v988_v47 = vld [vmem:[#allocation2 + $0x48] sm:$0xf]  ;;  %v1195_v10 = vrot.slane %v1152_v57, 5  ;;  %v1153_v12 = vld [vmem:[#allocation2 + $0x40] sm:$0xe]  ;;  %v2526_v8 = vor.u32 %v2908_v59, %v2525_v9 }
  0xaf   : > { %v1011_v56 = vld [vmem:[#allocation2 + $0x48] sm:$0xf]  ;;  %996 = vst [vmem:[#allocation3 + $0x114] sm:$0xf] %v988_v47  ;;  %v1105_v61 = vrot.slane %v1104_v53, 4  ;;  %v1192_v20 = vsel %vm3256_vm9, %v2451_v0, %v1191_v62  ;;  %v2453_v23 = vrot.slane %v1153_v12, 9 }
  0xb0   : > { %v3623_v60 = vpop.f32.mrf.mxu1  ;;  %v1112_v63 = vshrl.u32 %v1011_v56, 16  ;;  %v2911_v16 = vld [vmem:[#allocation3 + $0xa4] sm:$0xf]  ;;  %v1115_v11 = vshll.u32 %v1011_v56, 16  ;;  %v1196_v22 = vsel %vm3256_vm9, %v2452_v1, %v1195_v10  ;;  %1217 = vst [vmem:[#allocation3 + $0xb0] sm:$0xf] %v1192_v20 }
  0xb1   : > { %v2547_v2 = vld [vmem:[#allocation3 + $0xc4] sm:$0xf0]  ;;  %v1110_v5 = vsel %vm3391_vm12, %v1105_v61, %v1109_v7  ;;  %v1154_v44 = vld [vmem:[#allocation2 + $0x44] sm:$0x1]  ;;  %v2589_v24 = vld [vmem:[#allocation3 + $0xf0] sm:$0xf] }
  0xb2   : > { %v3625_v4 = vpop.f32.mrf.mxu0  ;;  %v1114_v52 = vrot.slane %v1112_v63, 4  ;;  %v1012_v18 = vld [vmem:[#allocation2 + $0x4c] sm:$0x1]  ;;  %v1117_v19 = vrot.slane %v1115_v11, 5  ;;  %1139 = vst [vmem:[#allocation3 + $0xf4] sm:$0xf] %v1110_v5  ;;  %v2550_v25 = vor.u32 %v2911_v16, %v2547_v2 }
  0xb3   : > { %v1121_v14 = vshll.u32 %v1012_v18, 16  ;;  %1218 = vst [vmem:[#allocation3 + $0xd4] sm:$0xf] %v1196_v22  ;;  %v1155_v6 = vld [vmem:[#allocation2 + $0x48] sm:$0xe]  ;;  %v1199_v30 = vrot.slane %v1154_v44, 5 }
  0xb4   : > { %v1118_v26 = vor.u32 %v1117_v19, %v1114_v52  ;;  %v1156_v27 = vld [vmem:[#allocation2 + $0x4c] sm:$0x1]  ;;  %v2454_v32 = vrot.slane %v1155_v6, 9  ;;  %v912_v33 = vld [vmem:[#allocation2 + $0x38] sm:$0xe] }
  0xb5   : > { %v1123_v29 = vrot.slane %v1121_v14, 5  ;;  %v1203_v3 = vrot.slane %v1156_v27, 5  ;;  %v913_v37 = vld [vmem:[#allocation2 + $0x3c] sm:$0x1]  ;;  %v2445_v15 = vrot.slane %v912_v33, 9  ;;  %v1200_v38 = vsel %vm3256_vm9, %v2453_v23, %v1199_v30 }
  0xb6   : > { %2242 = vmatmul.bf16.gmra.mxu3 %v2558_v17  ;;  %v2925_v34 = vld [vmem:[#allocation3 + $0x110] sm:$0xf0]  ;;  %v1119_v35 = vrot.slane %v1118_v26, 4  ;;  %v914_v42 = vld [vmem:[#allocation2 + $0x40] sm:$0xe]  ;;  %v958_v43 = vrot.slane %v913_v37, 5 }
  0xb7   : > { %v1204_v39 = vsel %vm3256_vm9, %v2454_v32, %v1203_v3  ;;  %v915_v13 = vld [vmem:[#allocation2 + $0x44] sm:$0x1]  ;;  %1219 = vst [vmem:[#allocation3 + $0xf8] sm:$0xf] %v1200_v38  ;;  %v2446_v41 = vrot.slane %v914_v42, 9  ;;  %v2590_v46 = vor.u32 %v2925_v34, %v2589_v24 }
  0xb8   : > { %v3633_v28 = vpop.f32.mrf.mxu1  ;;  %v1124_v21 = vsel %vm3391_vm12, %v1119_v35, %v1123_v29  ;;  %v962_v45 = vrot.slane %v915_v13, 5  ;;  %v959_v49 = vsel %vm3256_vm9, %v2445_v15, %v958_v43  ;;  %1220 = vst [vmem:[#allocation3 + $0x11c] sm:$0xf] %v1204_v39  ;;  %v2561_v54 = vld [vmem:[#allocation3 + $0xb0] sm:$0xf] }
  0xb9   : > { %2266 = vmatmul.bf16.gmra.mxu0 %v2526_v8  ;;  %2184 = vmatmul.bf16.gmra.mxu1 %v2550_v25  ;;  %1140 = vst [vmem:[#allocation3 + $0x118] sm:$0xf] %v1124_v21  ;;  %v2921_v58 = vld [vmem:[#allocation3 + $0xf4] sm:$0xf] }
  0xba   : > { %v2032_v48 = vpop.f32.mrf.mxu0  ;;  %v963_v50 = vsel %vm3256_vm9, %v2446_v41, %v962_v45  ;;  %978 = vst [vmem:[#allocation3 + $0xec] sm:$0xf] %v959_v49  ;;  %v2917_v40 = vld [vmem:[#allocation3 + $0xd0] sm:$0xf0] }
  0xbb   : > { %979 = vst [vmem:[#allocation3 + $0x110] sm:$0xf] %v963_v50  ;;  %v2562_v57 = vor.u32 %v2917_v40, %v2561_v54 }
  0xbc   : > { %v2088_v56 = vpop.f32.mrf.mxu2 }
  0xbd   : > { %2218 = vmatmul.bf16.gmra.mxu2 %v2590_v46 }
  0xbe   : > { %v2597_v59 = vld [vmem:[#allocation3 + $0xf8] sm:$0xf] }
  0xbf   : > { %v2926_v31 = vld [vmem:[#allocation3 + $0x118] sm:$0xf0] }
  0xc0   : > { %v3645_v7 = vpop.f32.mrf.mxu1  ;;  %v2591_v36 = vld [vmem:[#allocation3 + $0x114] sm:$0xf0]  ;;  %v2598_v63 = vor.u32 %v2926_v31, %v2597_v59 }
  0xc1   : > { %v2594_v53 = vor.u32 %v2921_v58, %v2591_v36  ;;  %v2920_v55 = vld [vmem:[#allocation3 + $0xec] sm:$0xf] }
  0xc2   : > { %v2035_v51 = vpop.f32.mrf.mxu0  ;;  %v2583_v47 = vld [vmem:[#allocation3 + $0x10c] sm:$0xf0] }
  0xc3   : > { %v2586_v9 = vor.u32 %v2920_v55, %v2583_v47 }
  0xc4   : > { %v2090_v0 = vpop.f32.mrf.mxu2 }
  0xc6   : > { %2247 = vmatmul.bf16.gmra.mxu3 %v2594_v53 }
  0xc8   : > { %v2047_v61 = vpop.f32.mrf.mxu1  ;;  %v2117_v16 = vpop.f32.mrf.mxu3 }
  0xc9   : > { %2271 = vmatmul.bf16.gmra.mxu0 %v2562_v57  ;;  %2189 = vmatmul.bf16.gmra.mxu1 %v2586_v9 }
  0xca   : > { %v2037_v11 = vpop.f32.mrf.mxu0 }
  0xcd   : > { %2276 = vmatmul.bf16.vlgmr.msra.gmra.mxu2 %v2598_v63 }
  0xd0   : > { %v2059_v62 = vpop.f32.mrf.mxu1  ;;  %v2119_v5 = vpop.f32.mrf.mxu3 }
  0xd1   : > { %v2060_v1 = vadd.f32 %v2059_v62, %v3625_v4 }
  0xd3   : > { %v2089_v2 = vadd.f32 %v2088_v56, %v2060_v1 }
  0xd5   : > { %v2118_v52 = vadd.f32 %v2117_v16, %v2089_v2  ;;  %v2146_v10 = vpop.f32.mrf.mxu0 }
  0xd6   : > { %v2093_v18 = vpop.f32.mrf.mxu2 }
  0xd7   : > { %v2147_v12 = vadd.f32 %v2146_v10, %v2118_v52 }
  0xd8   : > { %v2061_v17 = vpop.f32.mrf.mxu1  ;;  %v2122_v22 = vpop.f32.mrf.mxu3 }
  0xd9   : > { %v2062_v19 = vadd.f32 %v2061_v17, %v2032_v48 }
  0xdb   : > { %v2091_v20 = vadd.f32 %v2090_v0, %v2062_v19 }
  0xdd   : > { %v2148_v14 = vpop.f32.mrf.mxu0  ;;  %v2120_v57 = vadd.f32 %v2119_v5, %v2091_v20 }
  0xde   : > { %v2095_v8 = vpop.f32.mrf.mxu2 }
  0xdf   : > { %v2149_v31 = vadd.f32 %v2148_v14, %v2120_v57 }
  0xe0   : > { %v2064_v44 = vpop.f32.mrf.mxu1  ;;  %v2124_v27 = vpop.f32.mrf.mxu3 }
  0xe1   : > { %v2065_v23 = vadd.f32 %v2064_v44, %v2035_v51 }
  0xe3   : > { %v2094_v24 = vadd.f32 %v2093_v18, %v2065_v23 }
  0xe5   : > { %v2123_v25 = vadd.f32 %v2122_v22, %v2094_v24 }
  0xe8   : > { %v2151_v26 = vpop.f32.mrf.mxu0  ;;  %v2066_v6 = vpop.f32.mrf.mxu1 }
  0xe9   : > { %v2152_v4 = vadd.f32 %v2151_v26, %v2123_v25  ;;  %v2067_v29 = vadd.f32 %v2066_v6, %v2037_v11  ;;  %v2127_v3 = vpop.f32.mrf.mxu3 }
  0xeb   : > { %v2096_v30 = vadd.f32 %v2095_v8, %v2067_v29 }
  0xec   : > { %v2098_v32 = vpop.f32.mrf.mxu2 }
  0xed   : > { %v2125_v19 = vadd.f32 %v2124_v27, %v2096_v30 }
  0xf0   : > { %v2153_v33 = vpop.f32.mrf.mxu0 }
  0xf1   : > { %v3650_v13 = vpop.f32.mrf.mxu3  ;;  %v2154_v14 = vadd.f32 %v2153_v33, %v2125_v19 }
  0xf3   : > { %v2069_v34 = vpop.f32.mrf.mxu1 }
  0xf4   : > { %v2070_v35 = vadd.f32 %v2069_v34, %v3623_v60  ;;  %v2100_v37 = vpop.f32.mrf.mxu2 }
  0xf6   : > { %v2099_v15 = vadd.f32 %v2098_v32, %v2070_v35 }
  0xf8   : > { %v2128_v38 = vadd.f32 %v2127_v3, %v2099_v15 }
  0xfb   : > { %v2071_v39 = vpop.f32.mrf.mxu1 }
  0xfc   : > { %v2072_v42 = vadd.f32 %v2071_v39, %v3633_v28 }
  0xfe   : > { %v2156_v43 = vpop.f32.mrf.mxu0  ;;  %v3654_v41 = vadd.f32 %v2100_v37, %v2072_v42 }
  0xff   : > { %v3652_v21 = vadd.f32 %v2156_v43, %v2128_v38 }
 0x100   : > { %v2103_v45 = vpop.f32.mrf.mxu2  ;;  %v2130_v43 = vadd.f32 %v3650_v13, %v3654_v41 }
 0x106   : > { %v2074_v46 = vpop.f32.mrf.mxu1  ;;  %v2158_v58 = vpop.f32.mrf.mxu0 }
 0x107   : > { %v3656_v48 = vpop.f32.mrf.mxu3  ;;  %v2075_v49 = vadd.f32 %v2074_v46, %v3645_v7 }
 0x108   : > { %v2105_v60 = vpop.f32.mrf.mxu2 }
 0x109   : > { %v3659_v50 = vadd.f32 %v2103_v45, %v2075_v49 }
 0x10e   : > { %v2076_v36 = vpop.f32.mrf.mxu1 }
 0x10f   : > { %v3661_v51 = vpop.f32.mrf.mxu3  ;;  %v2077_v28 = vadd.f32 %v2076_v36, %v2047_v61  ;;  %v2159_v36 = vadd.f32 %v2158_v58, %v2130_v43 }
 0x110   : > { %v2204_v53 = vpop.f32.mrf.mxu2 }
 0x111   : > { %v3663_v54 = vadd.f32 %v2105_v60, %v2077_v28 }
 0x116   : > { %v3665_v40 = vpop.f32.mrf.mxu0  ;;  %v2175_v55 = vpop.f32.mrf.mxu1 }
 0x117   : > { %v2176_v63 = vadd.f32 %v2175_v55, %v2147_v12 }
 0x118   : > { %v2206_v47 = vpop.f32.mrf.mxu2 }
 0x119   : > { %v2233_v56 = vpop.f32.mrf.mxu3  ;;  %v2205_v0 = vadd.f32 %v2204_v53, %v2176_v63  ;;  %v2133_v53 = vadd.f32 %v3656_v48, %v3659_v50 }
 0x11b   : > { %v2234_v52 = vadd.f32 %v2233_v56, %v2205_v0  ;;  %v2135_v0 = vadd.f32 %v3661_v51, %v3663_v54 }
 0x11e   : > { %v3667_v9 = vpop.f32.mrf.mxu0  ;;  %v2177_v7 = vpop.f32.mrf.mxu1 }
 0x11f   : > { %v2178_v11 = vadd.f32 %v2177_v7, %v2149_v31  ;;  %v2162_v31 = vadd.f32 %v3665_v40, %v2133_v53 }
 0x120   : > { %v2209_v59 = vpop.f32.mrf.mxu2 }
 0x121   : > { %v2235_v16 = vpop.f32.mrf.mxu3  ;;  %v2207_v1 = vadd.f32 %v2206_v47, %v2178_v11 }
 0x123   : > { %v2236_v17 = vadd.f32 %v2235_v16, %v2207_v1 }
 0x126   : > { %v2262_v62 = vpop.f32.mrf.mxu0  ;;  %v2180_v61 = vpop.f32.mrf.mxu1 }
 0x127   : > { %v2181_v18 = vadd.f32 %v2180_v61, %v2152_v4  ;;  %v2263_v5 = vadd.f32 %v2262_v62, %v2234_v52  ;;  %v2164_v52 = vadd.f32 %v3667_v9, %v2135_v0 }
 0x128   : > { %v2211_v2 = vpop.f32.mrf.mxu2 }
 0x129   : > { %v2238_v10 = vpop.f32.mrf.mxu3  ;;  %v2210_v23 = vadd.f32 %v2209_v59, %v2181_v18  ;;  %v2311_v8 = vmul.f32 %v2263_v5, %v2263_v5 }
 0x12b   : > { %v2239_v4 = vadd.f32 %v2238_v10, %v2210_v23 }
 0x12e   : > { %v2264_v20 = vpop.f32.mrf.mxu0  ;;  %v2182_v22 = vpop.f32.mrf.mxu1 }
 0x12f   : > { %v2265_v44 = vadd.f32 %v2264_v20, %v2236_v17  ;;  %v2183_v29 = vadd.f32 %v2182_v22, %v2154_v14 }
 0x130   : > { %v2214_v12 = vpop.f32.mrf.mxu2 }
 0x131   : > { %v3018_v24 = vpack.c.bf16 %v2265_v44, %v2263_v5  ;;  %v2298_v25 = vadd.f32 %v2265_v44, %v2263_v5  ;;  %v2312_v26 = vmul.f32 %v2265_v44, %v2265_v44  ;;  %v2240_v6 = vpop.f32.mrf.mxu3  ;;  %v2212_v33 = vadd.f32 %v2211_v2, %v2183_v29 }
 0x133   : > { %3019 = vst [vmem:[%s3674_s17] sm:$0xff] %v3018_v24   ;;  %v2319_v27 = vadd.f32 %v2312_v26, %v2311_v8  ;;  %v2241_v39 = vadd.f32 %v2240_v6, %v2212_v33 }
 0x136   : > { %v2267_v30 = vpop.f32.mrf.mxu0  ;;  %v2185_v32 = vpop.f32.mrf.mxu1 }
 0x137   : > { %v2268_v3 = vadd.f32 %v2267_v30, %v2239_v4  ;;  %v2186_v42 = vadd.f32 %v2185_v32, %v3652_v21 }
 0x138   : > { %v2216_v34 = vpop.f32.mrf.mxu2 }
 0x139   : > { %v2299_v35 = vadd.f32 %v2298_v25, %v2268_v3  ;;  %v2313_v37 = vmul.f32 %v2268_v3, %v2268_v3  ;;  %v2243_v15 = vpop.f32.mrf.mxu3  ;;  %v2215_v60 = vadd.f32 %v2214_v12, %v2186_v42 }
 0x13b   : > { %v2320_v38 = vadd.f32 %v2319_v27, %v2313_v37  ;;  %v2244_v59 = vadd.f32 %v2243_v15, %v2215_v60 }
 0x13e   : > { %v2269_v45 = vpop.f32.mrf.mxu0  ;;  %v2187_v46 = vpop.f32.mrf.mxu1 }
 0x13f   : > { %v2270_v49 = vadd.f32 %v2269_v45, %v2241_v39  ;;  %v2188_v21 = vadd.f32 %v2187_v46, %v2159_v36 }
 0x140   : > { %v2219_v28 = vpop.f32.mrf.mxu2 }
 0x141   : > { %v3023_v55 = vpack.c.bf16 %v2270_v49, %v2268_v3  ;;  %v2300_v47 = vadd.f32 %v2299_v35, %v2270_v49  ;;  %v2314_v56 = vmul.f32 %v2270_v49, %v2270_v49  ;;  %v2245_v57 = vpop.f32.mrf.mxu3  ;;  %v2217_v16 = vadd.f32 %v2216_v34, %v2188_v21 }
 0x143   : > { %3038 = vst [vmem:[%s3674_s17 + $0x8] sm:$0xff] %v3023_v55   ;;  %v2321_v7 = vadd.f32 %v2320_v38, %v2314_v56  ;;  %v2246_v2 = vadd.f32 %v2245_v57, %v2217_v16 }
 0x146   : > { %v2272_v13 = vpop.f32.mrf.mxu0  ;;  %v2190_v41 = vpop.f32.mrf.mxu1 }
 0x147   : > { %v2273_v63 = vadd.f32 %v2272_v13, %v2244_v59  ;;  %v2191_v11 = vadd.f32 %v2190_v41, %v2162_v31 }
 0x148   : > { %v2221_v58 = vpop.f32.mrf.mxu2 }
 0x149   : > { %v2301_v48 = vadd.f32 %v2300_v47, %v2273_v63  ;;  %v2315_v50 = vmul.f32 %v2273_v63, %v2273_v63  ;;  %v2220_v62 = vadd.f32 %v2219_v28, %v2191_v11  ;;  %v2248_v61 = vpop.f32.mrf.mxu3 }
 0x14b   : > { %v2322_v1 = vadd.f32 %v2321_v7, %v2315_v50  ;;  %v2249_v10 = vadd.f32 %v2248_v61, %v2220_v62 }
 0x14e   : > { %v2274_v40 = vpop.f32.mrf.mxu0  ;;  %v2192_v17 = vpop.f32.mrf.mxu1 }
 0x14f   : > { %v2275_v18 = vadd.f32 %v2274_v40, %v2246_v2  ;;  %v2193_v19 = vadd.f32 %v2192_v17, %v2164_v52 }
 0x150   : > { %v2277_v5 = vpop.f32.mrf.mxu2 }
 0x151   : > { %v3028_v20 = vpack.c.bf16 %v2275_v18, %v2273_v63  ;;  %v2302_v22 = vadd.f32 %v2301_v48, %v2275_v18  ;;  %v2316_v44 = vmul.f32 %v2275_v18, %v2275_v18  ;;  %v2278_v51 = vadd.f32 %v2277_v5, %v2249_v10  ;;  %v2250_v8 = vpop.f32.mrf.mxu3 }
 0x152   : > { %v2222_v54 = vadd.f32 %v2221_v58, %v2193_v19 }
 0x153   : > { %3039 = vst [vmem:[%s3674_s17 + $0x10] sm:$0xff] %v3028_v20   ;;  %v2323_v23 = vadd.f32 %v2322_v1, %v2316_v44  ;;  %v2303_v14 = vadd.f32 %v2302_v22, %v2278_v51  ;;  %v2317_v12 = vmul.f32 %v2278_v51, %v2278_v51 }
 0x154   : > { %v2251_v25 = vadd.f32 %v2250_v8, %v2222_v54 }
 0x155   : > { %v2324_v24 = vadd.f32 %v2323_v23, %v2317_v12 }
 0x158   : > { %v2279_v9 = vpop.f32.mrf.mxu2 }
 0x159   : > { %v2280_v26 = vadd.f32 %v2279_v9, %v2251_v25 }
 0x15b   : > { %v3033_v6 = vpack.c.bf16 %v2280_v26, %v2278_v51  ;;  %v2304_v27 = vadd.f32 %v2303_v14, %v2280_v26  ;;  %v2318_v4 = vmul.f32 %v2280_v26, %v2280_v26 }
 0x15d   : > { %3040 = vst [vmem:[%s3674_s17 + $0x18] sm:$0xff] %v3033_v6   ;;  %v2305_v29 = vrot.slane %v2304_v27, 4  ;;  %v2325_v30 = vadd.f32 %v2324_v24, %v2318_v4 }
 0x15f   : > { %v2306_v32 = vadd.f32 %v2305_v29, %v2304_v27  ;;  %v2326_v3 = vrot.slane %v2325_v30, 4 }
 0x161   : > { %v2307_v33 = vrot.slane %v2306_v32, 2  ;;  %v2327_v34 = vadd.f32 %v2326_v3, %v2325_v30 }
 0x163   : > { %v2308_v35 = vadd.f32 %v2307_v33, %v2306_v32  ;;  %v2328_v37 = vrot.slane %v2327_v34, 2 }
 0x165   : > { %v2309_v15 = vrot.slane %v2308_v35, 1  ;;  %v2329_v38 = vadd.f32 %v2328_v37, %v2327_v34 }
 0x167   : > { %v2330_v39 = vrot.slane %v2329_v38, 1  ;;  %v2310_v42 = vadd.f32 %v2309_v15, %v2308_v35 }
 0x169   : > { %v2331_v43 = vadd.f32 %v2330_v39, %v2329_v38 }
 0x16b   : > { %v2333_v45 = vsel %vm290_vm0, %v2310_v42, %v2331_v43 }
 0x16c   : > { %2334 = vst [vmem:[%s235_s22] sm:$0x3] %v2333_v45 }
 0x16d PF: > { %s16_s18 = sadd.s32 1, %s3074_s18  }
 0x16e   : > { %p13_p4 = scmp.ge.s32.totalorder %s16_s18, 4  }
 0x170   :  { %15 = sbr.rel (!%p13_p4) target bundleno = 1 (0x1), region = 81 }

</bundles_post_ra>
